<compile_context>
chip_gen: v7x
topology: tpu7x:2x2x1
jax: 0.10.0
libtpu: 0.0.40
codegen_flags: <defaults>
</compile_context>

<pallas_src>
import functools

import numpy as np
import jax
import jax.numpy as jnp
from jax import lax
from jax.experimental import pallas as pl
from jax.experimental.pallas import tpu as pltpu

BN_EPS = 1e-5


# ----------------------------------------------------------------------------
# Fused kernel: conv stack + GRU + FC
# ----------------------------------------------------------------------------
def _cnn_gru_kernel(x_ref,
                    w1_ref, g1_ref, be1_ref, m1_ref, s1_ref,
                    w2_ref, g2_ref, be2_ref, m2_ref, s2_ref,
                    w3_ref, g3_ref, be3_ref, m3_ref, s3_ref,
                    wi_ref, bi_ref, wh_ref, bh_ref, wfc_ref, bfc_ref,
                    o_ref,
                    *, B, T, H, bn_counts):
    # x_ref:   (B*L, 1)        flattened channels-last input, row = b*L + l
    # w*_ref:  (3*Cin, Cout)   conv taps, row = tap*Cin + cin  (w1 is (3, 64))
    # g*/be*:  (1, Cout)       BN gamma / beta
    # m*_ref:  (N, 1)          1.0 where the conv window stays inside a batch row
    # s*_ref:  (B*Pout, N-1)   0/1 pooling-selection matrix (stage 3: time-major)
    # wi/bi:   (256, 3H)/(1,3H)  GRU input weights / b_ih, gate order [r|z|n]
    # wh/bh:   (H, 3H)/(1,3H)    GRU hidden weights / b_hh
    # wfc/bfc: (H, nc)/(1, nc)   final Linear
    # o_ref:   (B, nc)

    def bn_pool_relu(conv, g, be, mask, sel, count):
        # training-mode BatchNorm over the valid rows (biased variance)
        inv_n = 1.0 / count
        mean = jnp.sum(conv * mask, axis=0, keepdims=True) * inv_n
        centered = conv - mean
        var = jnp.sum((centered * centered) * mask, axis=0, keepdims=True) * inv_n
        normed = centered * lax.rsqrt(var + BN_EPS) * g + be
        # MaxPool1d(2): max of adjacent rows, then pick every pooled position
        # via a 0/1 selection matmul (no strided sublane access needed).
        pair_max = jnp.maximum(normed[:-1, :], normed[1:, :])
        pooled = jnp.dot(sel, pair_max, preferred_element_type=jnp.float32)
        return jnp.maximum(pooled, 0.0)                       # ReLU

    # ---- stage 1: Cin = 1  ->  conv as VPU broadcast multiply-add ----------
    x = x_ref[...]                                            # (B*L, 1)
    n1 = m1_ref.shape[0]
    conv1 = (x[0:n1, :] * w1_ref[0:1, :]
             + x[1:n1 + 1, :] * w1_ref[1:2, :]
             + x[2:n1 + 2, :] * w1_ref[2:3, :])               # (N1, 64)
    h1 = bn_pool_relu(conv1, g1_ref[...], be1_ref[...],
                      m1_ref[...], s1_ref[...], bn_counts[0])

    # ---- stages 2 & 3: im2col slab + one MXU matmul -------------------------
    def conv_stage(h, w_ref):
        n = h.shape[0] - 2
        slab = jnp.concatenate([h[0:n, :], h[1:n + 1, :], h[2:n + 2, :]],
                               axis=1)                        # (N, 3*Cin)
        return jnp.dot(slab, w_ref[...], preferred_element_type=jnp.float32)

    h2 = bn_pool_relu(conv_stage(h1, w2_ref), g2_ref[...], be2_ref[...],
                      m2_ref[...], s2_ref[...], bn_counts[1])
    h3 = bn_pool_relu(conv_stage(h2, w3_ref), g3_ref[...], be3_ref[...],
                      m3_ref[...], s3_ref[...], bn_counts[2])  # (T*B, 256) time-major

    # ---- GRU: hoisted input projection + fused hidden matmul per step ------
    xp = jnp.dot(h3, wi_ref[...], preferred_element_type=jnp.float32) + bi_ref[...]
    hstate = jnp.zeros((B, H), jnp.float32)
    for t in range(T):                                        # T is small & static
        xpt = xp[t * B:(t + 1) * B, :]                        # (B, 3H) contiguous
        hp = jnp.dot(hstate, wh_ref[...],
                     preferred_element_type=jnp.float32) + bh_ref[...]
        r = jax.nn.sigmoid(xpt[:, 0:H] + hp[:, 0:H])
        z = jax.nn.sigmoid(xpt[:, H:2 * H] + hp[:, H:2 * H])
        n = jnp.tanh(xpt[:, 2 * H:3 * H] + r * hp[:, 2 * H:3 * H])
        hstate = (1.0 - z) * n + z * hstate

    # ---- final Linear on the last hidden state ------------------------------
    o_ref[...] = (jnp.dot(hstate, wfc_ref[...],
                          preferred_element_type=jnp.float32) + bfc_ref[...])


# ----------------------------------------------------------------------------
# Static helper constants (masks + pooling selection matrices)
# ----------------------------------------------------------------------------
def _stage_dims(B, Lin):
    N = B * Lin - 2          # rows of the batch-flattened conv output
    Lout = Lin - 2           # valid conv length per batch row
    Pout = Lout // 2         # pooled length per batch row
    return N, Lout, Pout


def _valid_mask(B, Lin):
    N = B * Lin - 2
    j = np.arange(N)
    return ((j % Lin) <= Lin - 3).astype(np.float32).reshape(N, 1)


def _pool_select(B, Lin, time_major=False):
    N, _, Pout = _stage_dims(B, Lin)
    sel = np.zeros((B * Pout, N - 1), np.float32)
    for b in range(B):
        for p in range(Pout):
            row = (p * B + b) if time_major else (b * Pout + p)
            sel[row, b * Lin + 2 * p] = 1.0
    return sel


# ----------------------------------------------------------------------------
# Full forward (one pallas_call)
# ----------------------------------------------------------------------------
@jax.jit
def cnn_gru_forward(x_ncl, params):
    B, _, L = x_ncl.shape                                     # PyTorch NCL, Cin=1
    x_flat = x_ncl.astype(jnp.float32).reshape(B * L, 1)      # row = b*L + l

    L1 = L
    _, Lo1, P1 = _stage_dims(B, L1)
    L2 = P1
    _, Lo2, P2 = _stage_dims(B, L2)
    L3 = P2
    _, Lo3, P3 = _stage_dims(B, L3)
    T = P3

    c1, c2, c3 = params['conv']
    g = params['gru']
    H = g['wh'].shape[0]
    nc = g['wfc'].shape[1]

    mask1 = jnp.asarray(_valid_mask(B, L1))
    mask2 = jnp.asarray(_valid_mask(B, L2))
    mask3 = jnp.asarray(_valid_mask(B, L3))
    sel1 = jnp.asarray(_pool_select(B, L1))
    sel2 = jnp.asarray(_pool_select(B, L2))
    sel3 = jnp.asarray(_pool_select(B, L3, time_major=True))

    kernel = functools.partial(
        _cnn_gru_kernel, B=B, T=T, H=H,
        bn_counts=(float(B * Lo1), float(B * Lo2), float(B * Lo3)))

    args = (
        x_flat,
        c1['w'], c1['gamma'].reshape(1, -1), c1['beta'].reshape(1, -1), mask1, sel1,
        c2['w'], c2['gamma'].reshape(1, -1), c2['beta'].reshape(1, -1), mask2, sel2,
        c3['w'], c3['gamma'].reshape(1, -1), c3['beta'].reshape(1, -1), mask3, sel3,
        g['wi'], g['bi'].reshape(1, -1), g['wh'], g['bh'].reshape(1, -1),
        g['wfc'], g['bfc'].reshape(1, -1),
    )

    return pl.pallas_call(
        kernel,
        out_shape=jax.ShapeDtypeStruct((B, nc), jnp.float32),
        in_specs=[pl.BlockSpec(memory_space=pltpu.MemorySpace.VMEM)] * len(args),
        out_specs=pl.BlockSpec(memory_space=pltpu.MemorySpace.VMEM),
    )(*args)


# ----------------------------------------------------------------------------
# Deterministic parameter init (shapes match the PyTorch module)
# ----------------------------------------------------------------------------
def init_params(key, num_classes=5):
    keys = iter(jax.random.split(key, 32))

    def u(shape, bound):
        return jax.random.uniform(next(keys), shape, jnp.float32, -bound, bound)

    convs = []
    for cin, cout in [(1, 64), (64, 128), (128, 256)]:
        bound = 1.0 / np.sqrt(cin * 3)
        convs.append(dict(
            w=u((3 * cin, cout), bound),          # rows ordered [tap, cin]
            b=u((cout,), bound),                  # used only by the reference (BN cancels it)
            gamma=1.0 + 0.1 * jax.random.normal(next(keys), (cout,), jnp.float32),
            beta=0.1 * jax.random.normal(next(keys), (cout,), jnp.float32),
        ))

    C, H = 256, 64
    bound = 1.0 / np.sqrt(H)
    gru = dict(
        wi=u((C, 3 * H), bound),                  # [Wir | Wiz | Win]
        wh=u((H, 3 * H), bound),                  # [Whr | Whz | Whn]
        bi=u((3 * H,), bound),                    # b_ih  (r, z, n)
        bh=u((3 * H,), bound),                    # b_hh  (r, z, n)
        wfc=u((H, num_classes), bound),
        bfc=u((num_classes,), bound),
    )
    return dict(conv=convs, gru=gru)


# ----------------------------------------------------------------------------
# Pure-JAX reference (numeric sanity check; includes the conv bias)
# ----------------------------------------------------------------------------
def reference_forward(x_ncl, params):
    h = jnp.transpose(x_ncl, (0, 2, 1)).astype(jnp.float32)    # (B, L, 1)
    for s in params['conv']:
        B, Lin, Cin = h.shape
        w, b, ga, be = s['w'], s['b'], s['gamma'], s['beta']
        Lout, Cout = Lin - 2, w.shape[1]
        conv = jnp.zeros((B, Lout, Cout), jnp.float32)
        for t in range(3):
            conv = conv + jnp.einsum('blc,co->blo',
                                     h[:, t:t + Lout, :], w[t * Cin:(t + 1) * Cin, :])
        conv = conv + b[None, None, :]
        mean = jnp.mean(conv, axis=(0, 1), keepdims=True)
        var = jnp.mean((conv - mean) ** 2, axis=(0, 1), keepdims=True)
        conv = (conv - mean) / jnp.sqrt(var + BN_EPS) * ga[None, None, :] + be[None, None, :]
        Pout = Lout // 2
        pooled = jnp.maximum(conv[:, 0:2 * Pout:2, :], conv[:, 1:2 * Pout:2, :])
        h = jnp.maximum(pooled, 0.0)

    g = params['gru']
    H = g['wh'].shape[0]
    wir, wiz, win = g['wi'][:, :H], g['wi'][:, H:2 * H], g['wi'][:, 2 * H:]
    whr, whz, whn = g['wh'][:, :H], g['wh'][:, H:2 * H], g['wh'][:, 2 * H:]
    bir, biz, bin_ = g['bi'][:H], g['bi'][H:2 * H], g['bi'][2 * H:]
    bhr, bhz, bhn = g['bh'][:H], g['bh'][H:2 * H], g['bh'][2 * H:]

    B, T, _ = h.shape
    hh = jnp.zeros((B, H), jnp.float32)
    for t in range(T):
        x_t = h[:, t, :]
        r = jax.nn.sigmoid(x_t @ wir + bir + hh @ whr + bhr)
        z = jax.nn.sigmoid(x_t @ wiz + biz + hh @ whz + bhz)
        n = jnp.tanh(x_t @ win + bin_ + r * (hh @ whn + bhn))
        hh = (1.0 - z) * n + z * hh
    return hh @ g['wfc'] + g['bfc']


if __name__ == "__main__":
    key = jax.random.PRNGKey(0)
    pkey, xkey = jax.random.split(key)
    params = init_params(pkey, num_classes=5)

    B, L = 2, 64                     # conv lengths: 64->31->14->6 GRU steps
    x = jax.random.normal(xkey, (B, 1, L), jnp.float32)        # NCL like PyTorch

    out = jax.block_until_ready(cnn_gru_forward(x, params))
    ref = jax.block_until_ready(reference_forward(x, params))

    assert out.shape == (B, 5), out.shape
    if not np.allclose(np.asarray(out), np.asarray(ref), rtol=5e-3, atol=5e-3):
        raise AssertionError(f"mismatch vs reference:\n{out}\n{ref}")
    print("KERNEL_OK")
</pallas_src>

<mosaic_0001>
module attributes {stable_mosaic.version = 11 : i64} {
  func.func @_cnn_gru_kernel(%arg0: memref<128x1xf32, #tpu.memory_space<vmem>>, %arg1: memref<3x64xf32, #tpu.memory_space<vmem>>, %arg2: memref<1x64xf32, #tpu.memory_space<vmem>>, %arg3: memref<1x64xf32, #tpu.memory_space<vmem>>, %arg4: memref<126x1xf32, #tpu.memory_space<vmem>>, %arg5: memref<62x125xf32, #tpu.memory_space<vmem>>, %arg6: memref<192x128xf32, #tpu.memory_space<vmem>>, %arg7: memref<1x128xf32, #tpu.memory_space<vmem>>, %arg8: memref<1x128xf32, #tpu.memory_space<vmem>>, %arg9: memref<60x1xf32, #tpu.memory_space<vmem>>, %arg10: memref<28x59xf32, #tpu.memory_space<vmem>>, %arg11: memref<384x256xf32, #tpu.memory_space<vmem>>, %arg12: memref<1x256xf32, #tpu.memory_space<vmem>>, %arg13: memref<1x256xf32, #tpu.memory_space<vmem>>, %arg14: memref<26x1xf32, #tpu.memory_space<vmem>>, %arg15: memref<12x25xf32, #tpu.memory_space<vmem>>, %arg16: memref<256x192xf32, #tpu.memory_space<vmem>>, %arg17: memref<1x192xf32, #tpu.memory_space<vmem>>, %arg18: memref<64x192xf32, #tpu.memory_space<vmem>>, %arg19: memref<1x192xf32, #tpu.memory_space<vmem>>, %arg20: memref<64x5xf32, #tpu.memory_space<vmem>>, %arg21: memref<1x5xf32, #tpu.memory_space<vmem>>, %arg22: memref<2x5xf32, #tpu.memory_space<vmem>>) attributes {dimension_semantics = [], scalar_prefetch = 0 : i64, scratch_operands = 0 : i64, tpu.core_type = #tpu.core_type<tc>} {
    %c0 = arith.constant 0 : index
    %c0_0 = arith.constant 0 : index
    %0 = vector.load %arg0[%c0, %c0_0] : memref<128x1xf32, #tpu.memory_space<vmem>>, vector<128x1xf32>
    %1 = vector.extract_strided_slice %0 {offsets = [0, 0], sizes = [126, 1], strides = [1, 1]} : vector<128x1xf32> to vector<126x1xf32>
    %c0_1 = arith.constant 0 : index
    %c0_2 = arith.constant 0 : index
    %2 = vector.load %arg1[%c0_1, %c0_2] : memref<3x64xf32, #tpu.memory_space<vmem>>, vector<1x64xf32>
    %3 = vector.broadcast %1 : vector<126x1xf32> to vector<126x64xf32>
    %4 = vector.broadcast %2 : vector<1x64xf32> to vector<126x64xf32>
    %5 = arith.mulf %3, %4 : vector<126x64xf32>
    %6 = vector.extract_strided_slice %0 {offsets = [1, 0], sizes = [126, 1], strides = [1, 1]} : vector<128x1xf32> to vector<126x1xf32>
    %c1 = arith.constant 1 : index
    %c0_3 = arith.constant 0 : index
    %7 = vector.load %arg1[%c1, %c0_3] : memref<3x64xf32, #tpu.memory_space<vmem>>, vector<1x64xf32>
    %8 = vector.broadcast %6 : vector<126x1xf32> to vector<126x64xf32>
    %9 = vector.broadcast %7 : vector<1x64xf32> to vector<126x64xf32>
    %10 = arith.mulf %8, %9 : vector<126x64xf32>
    %11 = arith.addf %5, %10 : vector<126x64xf32>
    %12 = vector.extract_strided_slice %0 {offsets = [2, 0], sizes = [126, 1], strides = [1, 1]} : vector<128x1xf32> to vector<126x1xf32>
    %c2 = arith.constant 2 : index
    %c0_4 = arith.constant 0 : index
    %13 = vector.load %arg1[%c2, %c0_4] : memref<3x64xf32, #tpu.memory_space<vmem>>, vector<1x64xf32>
    %14 = vector.broadcast %12 : vector<126x1xf32> to vector<126x64xf32>
    %15 = vector.broadcast %13 : vector<1x64xf32> to vector<126x64xf32>
    %16 = arith.mulf %14, %15 : vector<126x64xf32>
    %17 = arith.addf %11, %16 : vector<126x64xf32>
    %c0_5 = arith.constant 0 : index
    %c0_6 = arith.constant 0 : index
    %18 = vector.load %arg2[%c0_5, %c0_6] : memref<1x64xf32, #tpu.memory_space<vmem>>, vector<1x64xf32>
    %c0_7 = arith.constant 0 : index
    %c0_8 = arith.constant 0 : index
    %19 = vector.load %arg3[%c0_7, %c0_8] : memref<1x64xf32, #tpu.memory_space<vmem>>, vector<1x64xf32>
    %c0_9 = arith.constant 0 : index
    %c0_10 = arith.constant 0 : index
    %20 = vector.load %arg4[%c0_9, %c0_10] : memref<126x1xf32, #tpu.memory_space<vmem>>, vector<126x1xf32>
    %c0_11 = arith.constant 0 : index
    %c0_12 = arith.constant 0 : index
    %21 = vector.load %arg5[%c0_11, %c0_12] : memref<62x125xf32, #tpu.memory_space<vmem>>, vector<62x125xf32>
    %22 = vector.broadcast %20 : vector<126x1xf32> to vector<126x64xf32>
    %23 = arith.mulf %17, %22 : vector<126x64xf32>
    %cst = arith.constant dense<0.000000e+00> : vector<64xf32>
    %24 = vector.multi_reduction <add>, %23, %cst [0] : vector<126x64xf32> to vector<64xf32>
    %25 = vector.shape_cast %24 : vector<64xf32> to vector<1x64xf32>
    %cst_13 = arith.constant 0.00806451589 : f32
    %26 = vector.broadcast %cst_13 : f32 to vector<1x64xf32>
    %27 = arith.mulf %25, %26 : vector<1x64xf32>
    %28 = vector.broadcast %27 : vector<1x64xf32> to vector<126x64xf32>
    %29 = arith.subf %17, %28 : vector<126x64xf32>
    %30 = arith.mulf %29, %29 : vector<126x64xf32>
    %31 = vector.broadcast %20 : vector<126x1xf32> to vector<126x64xf32>
    %32 = arith.mulf %30, %31 : vector<126x64xf32>
    %cst_14 = arith.constant dense<0.000000e+00> : vector<64xf32>
    %33 = vector.multi_reduction <add>, %32, %cst_14 [0] : vector<126x64xf32> to vector<64xf32>
    %34 = vector.shape_cast %33 : vector<64xf32> to vector<1x64xf32>
    %cst_15 = arith.constant 0.00806451589 : f32
    %35 = vector.broadcast %cst_15 : f32 to vector<1x64xf32>
    %36 = arith.mulf %34, %35 : vector<1x64xf32>
    %cst_16 = arith.constant 9.99999974E-6 : f32
    %37 = vector.broadcast %cst_16 : f32 to vector<1x64xf32>
    %38 = arith.addf %36, %37 : vector<1x64xf32>
    %39 = math.rsqrt %38 : vector<1x64xf32>
    %40 = vector.broadcast %39 : vector<1x64xf32> to vector<126x64xf32>
    %41 = arith.mulf %29, %40 : vector<126x64xf32>
    %42 = vector.broadcast %18 : vector<1x64xf32> to vector<126x64xf32>
    %43 = arith.mulf %41, %42 : vector<126x64xf32>
    %44 = vector.broadcast %19 : vector<1x64xf32> to vector<126x64xf32>
    %45 = arith.addf %43, %44 : vector<126x64xf32>
    %46 = vector.extract_strided_slice %45 {offsets = [0, 0], sizes = [125, 64], strides = [1, 1]} : vector<126x64xf32> to vector<125x64xf32>
    %47 = vector.extract_strided_slice %45 {offsets = [1, 0], sizes = [125, 64], strides = [1, 1]} : vector<126x64xf32> to vector<125x64xf32>
    %48 = arith.maximumf %46, %47 : vector<125x64xf32>
    %cst_17 = arith.constant dense<0.000000e+00> : vector<62x64xf32>
    %49 = tpu.matmul %21, %48, %cst_17 {dimension_numbers = #tpu.dot_dimension_numbers<[1], [0], [0], [1], [0, 0, 1, 1], [], []>} : vector<62x125xf32>, vector<125x64xf32>, vector<62x64xf32> -> vector<62x64xf32>
    %cst_18 = arith.constant 0.000000e+00 : f32
    %50 = vector.broadcast %cst_18 : f32 to vector<62x64xf32>
    %51 = arith.maximumf %49, %50 : vector<62x64xf32>
    %52 = vector.extract_strided_slice %51 {offsets = [0, 0], sizes = [60, 64], strides = [1, 1]} : vector<62x64xf32> to vector<60x64xf32>
    %53 = vector.extract_strided_slice %51 {offsets = [1, 0], sizes = [60, 64], strides = [1, 1]} : vector<62x64xf32> to vector<60x64xf32>
    %54 = vector.extract_strided_slice %51 {offsets = [2, 0], sizes = [60, 64], strides = [1, 1]} : vector<62x64xf32> to vector<60x64xf32>
    %55 = tpu.concatenate %52, %53, %54 in 1 : vector<60x64xf32>, vector<60x64xf32>, vector<60x64xf32> -> vector<60x192xf32>
    %c0_19 = arith.constant 0 : index
    %c0_20 = arith.constant 0 : index
    %56 = vector.load %arg6[%c0_19, %c0_20] : memref<192x128xf32, #tpu.memory_space<vmem>>, vector<192x128xf32>
    %cst_21 = arith.constant dense<0.000000e+00> : vector<60x128xf32>
    %57 = tpu.matmul %55, %56, %cst_21 {dimension_numbers = #tpu.dot_dimension_numbers<[1], [0], [0], [1], [0, 0, 1, 1], [], []>} : vector<60x192xf32>, vector<192x128xf32>, vector<60x128xf32> -> vector<60x128xf32>
    %c0_22 = arith.constant 0 : index
    %c0_23 = arith.constant 0 : index
    %58 = vector.load %arg7[%c0_22, %c0_23] : memref<1x128xf32, #tpu.memory_space<vmem>>, vector<1x128xf32>
    %c0_24 = arith.constant 0 : index
    %c0_25 = arith.constant 0 : index
    %59 = vector.load %arg8[%c0_24, %c0_25] : memref<1x128xf32, #tpu.memory_space<vmem>>, vector<1x128xf32>
    %c0_26 = arith.constant 0 : index
    %c0_27 = arith.constant 0 : index
    %60 = vector.load %arg9[%c0_26, %c0_27] : memref<60x1xf32, #tpu.memory_space<vmem>>, vector<60x1xf32>
    %c0_28 = arith.constant 0 : index
    %c0_29 = arith.constant 0 : index
    %61 = vector.load %arg10[%c0_28, %c0_29] : memref<28x59xf32, #tpu.memory_space<vmem>>, vector<28x59xf32>
    %62 = vector.broadcast %60 : vector<60x1xf32> to vector<60x128xf32>
    %63 = arith.mulf %57, %62 : vector<60x128xf32>
    %cst_30 = arith.constant dense<0.000000e+00> : vector<128xf32>
    %64 = vector.multi_reduction <add>, %63, %cst_30 [0] : vector<60x128xf32> to vector<128xf32>
    %65 = vector.shape_cast %64 : vector<128xf32> to vector<1x128xf32>
    %cst_31 = arith.constant 0.0172413792 : f32
    %66 = vector.broadcast %cst_31 : f32 to vector<1x128xf32>
    %67 = arith.mulf %65, %66 : vector<1x128xf32>
    %68 = vector.broadcast %67 : vector<1x128xf32> to vector<60x128xf32>
    %69 = arith.subf %57, %68 : vector<60x128xf32>
    %70 = arith.mulf %69, %69 : vector<60x128xf32>
    %71 = vector.broadcast %60 : vector<60x1xf32> to vector<60x128xf32>
    %72 = arith.mulf %70, %71 : vector<60x128xf32>
    %cst_32 = arith.constant dense<0.000000e+00> : vector<128xf32>
    %73 = vector.multi_reduction <add>, %72, %cst_32 [0] : vector<60x128xf32> to vector<128xf32>
    %74 = vector.shape_cast %73 : vector<128xf32> to vector<1x128xf32>
    %cst_33 = arith.constant 0.0172413792 : f32
    %75 = vector.broadcast %cst_33 : f32 to vector<1x128xf32>
    %76 = arith.mulf %74, %75 : vector<1x128xf32>
    %cst_34 = arith.constant 9.99999974E-6 : f32
    %77 = vector.broadcast %cst_34 : f32 to vector<1x128xf32>
    %78 = arith.addf %76, %77 : vector<1x128xf32>
    %79 = math.rsqrt %78 : vector<1x128xf32>
    %80 = vector.broadcast %79 : vector<1x128xf32> to vector<60x128xf32>
    %81 = arith.mulf %69, %80 : vector<60x128xf32>
    %82 = vector.broadcast %58 : vector<1x128xf32> to vector<60x128xf32>
    %83 = arith.mulf %81, %82 : vector<60x128xf32>
    %84 = vector.broadcast %59 : vector<1x128xf32> to vector<60x128xf32>
    %85 = arith.addf %83, %84 : vector<60x128xf32>
    %86 = vector.extract_strided_slice %85 {offsets = [0, 0], sizes = [59, 128], strides = [1, 1]} : vector<60x128xf32> to vector<59x128xf32>
    %87 = vector.extract_strided_slice %85 {offsets = [1, 0], sizes = [59, 128], strides = [1, 1]} : vector<60x128xf32> to vector<59x128xf32>
    %88 = arith.maximumf %86, %87 : vector<59x128xf32>
    %cst_35 = arith.constant dense<0.000000e+00> : vector<28x128xf32>
    %89 = tpu.matmul %61, %88, %cst_35 {dimension_numbers = #tpu.dot_dimension_numbers<[1], [0], [0], [1], [0, 0, 1, 1], [], []>} : vector<28x59xf32>, vector<59x128xf32>, vector<28x128xf32> -> vector<28x128xf32>
    %cst_36 = arith.constant 0.000000e+00 : f32
    %90 = vector.broadcast %cst_36 : f32 to vector<28x128xf32>
    %91 = arith.maximumf %89, %90 : vector<28x128xf32>
    %92 = vector.extract_strided_slice %91 {offsets = [0, 0], sizes = [26, 128], strides = [1, 1]} : vector<28x128xf32> to vector<26x128xf32>
    %93 = vector.extract_strided_slice %91 {offsets = [1, 0], sizes = [26, 128], strides = [1, 1]} : vector<28x128xf32> to vector<26x128xf32>
    %94 = vector.extract_strided_slice %91 {offsets = [2, 0], sizes = [26, 128], strides = [1, 1]} : vector<28x128xf32> to vector<26x128xf32>
    %95 = tpu.concatenate %92, %93, %94 in 1 : vector<26x128xf32>, vector<26x128xf32>, vector<26x128xf32> -> vector<26x384xf32>
    %c0_37 = arith.constant 0 : index
    %c0_38 = arith.constant 0 : index
    %96 = vector.load %arg11[%c0_37, %c0_38] : memref<384x256xf32, #tpu.memory_space<vmem>>, vector<384x256xf32>
    %cst_39 = arith.constant dense<0.000000e+00> : vector<26x256xf32>
    %97 = tpu.matmul %95, %96, %cst_39 {dimension_numbers = #tpu.dot_dimension_numbers<[1], [0], [0], [1], [0, 0, 1, 1], [], []>} : vector<26x384xf32>, vector<384x256xf32>, vector<26x256xf32> -> vector<26x256xf32>
    %c0_40 = arith.constant 0 : index
    %c0_41 = arith.constant 0 : index
    %98 = vector.load %arg12[%c0_40, %c0_41] : memref<1x256xf32, #tpu.memory_space<vmem>>, vector<1x256xf32>
    %c0_42 = arith.constant 0 : index
    %c0_43 = arith.constant 0 : index
    %99 = vector.load %arg13[%c0_42, %c0_43] : memref<1x256xf32, #tpu.memory_space<vmem>>, vector<1x256xf32>
    %c0_44 = arith.constant 0 : index
    %c0_45 = arith.constant 0 : index
    %100 = vector.load %arg14[%c0_44, %c0_45] : memref<26x1xf32, #tpu.memory_space<vmem>>, vector<26x1xf32>
    %c0_46 = arith.constant 0 : index
    %c0_47 = arith.constant 0 : index
    %101 = vector.load %arg15[%c0_46, %c0_47] : memref<12x25xf32, #tpu.memory_space<vmem>>, vector<12x25xf32>
    %102 = vector.broadcast %100 : vector<26x1xf32> to vector<26x256xf32>
    %103 = arith.mulf %97, %102 : vector<26x256xf32>
    %cst_48 = arith.constant dense<0.000000e+00> : vector<256xf32>
    %104 = vector.multi_reduction <add>, %103, %cst_48 [0] : vector<26x256xf32> to vector<256xf32>
    %105 = vector.shape_cast %104 : vector<256xf32> to vector<1x256xf32>
    %cst_49 = arith.constant 0.0416666679 : f32
    %106 = vector.broadcast %cst_49 : f32 to vector<1x256xf32>
    %107 = arith.mulf %105, %106 : vector<1x256xf32>
    %108 = vector.broadcast %107 : vector<1x256xf32> to vector<26x256xf32>
    %109 = arith.subf %97, %108 : vector<26x256xf32>
    %110 = arith.mulf %109, %109 : vector<26x256xf32>
    %111 = vector.broadcast %100 : vector<26x1xf32> to vector<26x256xf32>
    %112 = arith.mulf %110, %111 : vector<26x256xf32>
    %cst_50 = arith.constant dense<0.000000e+00> : vector<256xf32>
    %113 = vector.multi_reduction <add>, %112, %cst_50 [0] : vector<26x256xf32> to vector<256xf32>
    %114 = vector.shape_cast %113 : vector<256xf32> to vector<1x256xf32>
    %cst_51 = arith.constant 0.0416666679 : f32
    %115 = vector.broadcast %cst_51 : f32 to vector<1x256xf32>
    %116 = arith.mulf %114, %115 : vector<1x256xf32>
    %cst_52 = arith.constant 9.99999974E-6 : f32
    %117 = vector.broadcast %cst_52 : f32 to vector<1x256xf32>
    %118 = arith.addf %116, %117 : vector<1x256xf32>
    %119 = math.rsqrt %118 : vector<1x256xf32>
    %120 = vector.broadcast %119 : vector<1x256xf32> to vector<26x256xf32>
    %121 = arith.mulf %109, %120 : vector<26x256xf32>
    %122 = vector.broadcast %98 : vector<1x256xf32> to vector<26x256xf32>
    %123 = arith.mulf %121, %122 : vector<26x256xf32>
    %124 = vector.broadcast %99 : vector<1x256xf32> to vector<26x256xf32>
    %125 = arith.addf %123, %124 : vector<26x256xf32>
    %126 = vector.extract_strided_slice %125 {offsets = [0, 0], sizes = [25, 256], strides = [1, 1]} : vector<26x256xf32> to vector<25x256xf32>
    %127 = vector.extract_strided_slice %125 {offsets = [1, 0], sizes = [25, 256], strides = [1, 1]} : vector<26x256xf32> to vector<25x256xf32>
    %128 = arith.maximumf %126, %127 : vector<25x256xf32>
    %cst_53 = arith.constant dense<0.000000e+00> : vector<12x256xf32>
    %129 = tpu.matmul %101, %128, %cst_53 {dimension_numbers = #tpu.dot_dimension_numbers<[1], [0], [0], [1], [0, 0, 1, 1], [], []>} : vector<12x25xf32>, vector<25x256xf32>, vector<12x256xf32> -> vector<12x256xf32>
    %cst_54 = arith.constant 0.000000e+00 : f32
    %130 = vector.broadcast %cst_54 : f32 to vector<12x256xf32>
    %131 = arith.maximumf %129, %130 : vector<12x256xf32>
    %c0_55 = arith.constant 0 : index
    %c0_56 = arith.constant 0 : index
    %132 = vector.load %arg16[%c0_55, %c0_56] : memref<256x192xf32, #tpu.memory_space<vmem>>, vector<256x192xf32>
    %cst_57 = arith.constant dense<0.000000e+00> : vector<12x192xf32>
    %133 = tpu.matmul %131, %132, %cst_57 {dimension_numbers = #tpu.dot_dimension_numbers<[1], [0], [0], [1], [0, 0, 1, 1], [], []>} : vector<12x256xf32>, vector<256x192xf32>, vector<12x192xf32> -> vector<12x192xf32>
    %c0_58 = arith.constant 0 : index
    %c0_59 = arith.constant 0 : index
    %134 = vector.load %arg17[%c0_58, %c0_59] : memref<1x192xf32, #tpu.memory_space<vmem>>, vector<1x192xf32>
    %135 = vector.broadcast %134 : vector<1x192xf32> to vector<12x192xf32>
    %136 = arith.addf %133, %135 : vector<12x192xf32>
    %cst_60 = arith.constant 0.000000e+00 : f32
    %137 = vector.broadcast %cst_60 : f32 to vector<2x64xf32>
    %138 = vector.extract_strided_slice %136 {offsets = [0, 0], sizes = [2, 192], strides = [1, 1]} : vector<12x192xf32> to vector<2x192xf32>
    %c0_61 = arith.constant 0 : index
    %c0_62 = arith.constant 0 : index
    %139 = vector.load %arg18[%c0_61, %c0_62] : memref<64x192xf32, #tpu.memory_space<vmem>>, vector<64x192xf32>
    %cst_63 = arith.constant dense<0.000000e+00> : vector<2x192xf32>
    %140 = tpu.matmul %137, %139, %cst_63 {dimension_numbers = #tpu.dot_dimension_numbers<[1], [0], [0], [1], [0, 0, 1, 1], [], []>} : vector<2x64xf32>, vector<64x192xf32>, vector<2x192xf32> -> vector<2x192xf32>
    %c0_64 = arith.constant 0 : index
    %c0_65 = arith.constant 0 : index
    %141 = vector.load %arg19[%c0_64, %c0_65] : memref<1x192xf32, #tpu.memory_space<vmem>>, vector<1x192xf32>
    %142 = vector.broadcast %141 : vector<1x192xf32> to vector<2x192xf32>
    %143 = arith.addf %140, %142 : vector<2x192xf32>
    %144 = vector.extract_strided_slice %138 {offsets = [0, 0], sizes = [2, 64], strides = [1, 1]} : vector<2x192xf32> to vector<2x64xf32>
    %145 = vector.extract_strided_slice %143 {offsets = [0, 0], sizes = [2, 64], strides = [1, 1]} : vector<2x192xf32> to vector<2x64xf32>
    %146 = arith.addf %144, %145 : vector<2x64xf32>
    %147 = arith.negf %146 : vector<2x64xf32>
    %148 = math.exp %147 : vector<2x64xf32>
    %cst_66 = arith.constant 1.000000e+00 : f32
    %149 = vector.broadcast %cst_66 : f32 to vector<2x64xf32>
    %150 = arith.addf %149, %148 : vector<2x64xf32>
    %151 = arith.divf %149, %150 : vector<2x64xf32>
    %152 = vector.extract_strided_slice %138 {offsets = [0, 64], sizes = [2, 64], strides = [1, 1]} : vector<2x192xf32> to vector<2x64xf32>
    %153 = vector.extract_strided_slice %143 {offsets = [0, 64], sizes = [2, 64], strides = [1, 1]} : vector<2x192xf32> to vector<2x64xf32>
    %154 = arith.addf %152, %153 : vector<2x64xf32>
    %155 = arith.negf %154 : vector<2x64xf32>
    %156 = math.exp %155 : vector<2x64xf32>
    %cst_67 = arith.constant 1.000000e+00 : f32
    %157 = vector.broadcast %cst_67 : f32 to vector<2x64xf32>
    %158 = arith.addf %157, %156 : vector<2x64xf32>
    %159 = arith.divf %157, %158 : vector<2x64xf32>
    %160 = vector.extract_strided_slice %138 {offsets = [0, 128], sizes = [2, 64], strides = [1, 1]} : vector<2x192xf32> to vector<2x64xf32>
    %161 = vector.extract_strided_slice %143 {offsets = [0, 128], sizes = [2, 64], strides = [1, 1]} : vector<2x192xf32> to vector<2x64xf32>
    %162 = arith.mulf %151, %161 : vector<2x64xf32>
    %163 = arith.addf %160, %162 : vector<2x64xf32>
    %164 = math.tanh %163 : vector<2x64xf32>
    %cst_68 = arith.constant 1.000000e+00 : f32
    %165 = vector.broadcast %cst_68 : f32 to vector<2x64xf32>
    %166 = arith.subf %165, %159 : vector<2x64xf32>
    %167 = arith.mulf %166, %164 : vector<2x64xf32>
    %168 = arith.mulf %159, %137 : vector<2x64xf32>
    %169 = arith.addf %167, %168 : vector<2x64xf32>
    %170 = vector.extract_strided_slice %136 {offsets = [2, 0], sizes = [2, 192], strides = [1, 1]} : vector<12x192xf32> to vector<2x192xf32>
    %c0_69 = arith.constant 0 : index
    %c0_70 = arith.constant 0 : index
    %171 = vector.load %arg18[%c0_69, %c0_70] : memref<64x192xf32, #tpu.memory_space<vmem>>, vector<64x192xf32>
    %cst_71 = arith.constant dense<0.000000e+00> : vector<2x192xf32>
    %172 = tpu.matmul %169, %171, %cst_71 {dimension_numbers = #tpu.dot_dimension_numbers<[1], [0], [0], [1], [0, 0, 1, 1], [], []>} : vector<2x64xf32>, vector<64x192xf32>, vector<2x192xf32> -> vector<2x192xf32>
    %c0_72 = arith.constant 0 : index
    %c0_73 = arith.constant 0 : index
    %173 = vector.load %arg19[%c0_72, %c0_73] : memref<1x192xf32, #tpu.memory_space<vmem>>, vector<1x192xf32>
    %174 = vector.broadcast %173 : vector<1x192xf32> to vector<2x192xf32>
    %175 = arith.addf %172, %174 : vector<2x192xf32>
    %176 = vector.extract_strided_slice %170 {offsets = [0, 0], sizes = [2, 64], strides = [1, 1]} : vector<2x192xf32> to vector<2x64xf32>
    %177 = vector.extract_strided_slice %175 {offsets = [0, 0], sizes = [2, 64], strides = [1, 1]} : vector<2x192xf32> to vector<2x64xf32>
    %178 = arith.addf %176, %177 : vector<2x64xf32>
    %179 = arith.negf %178 : vector<2x64xf32>
    %180 = math.exp %179 : vector<2x64xf32>
    %cst_74 = arith.constant 1.000000e+00 : f32
    %181 = vector.broadcast %cst_74 : f32 to vector<2x64xf32>
    %182 = arith.addf %181, %180 : vector<2x64xf32>
    %183 = arith.divf %181, %182 : vector<2x64xf32>
    %184 = vector.extract_strided_slice %170 {offsets = [0, 64], sizes = [2, 64], strides = [1, 1]} : vector<2x192xf32> to vector<2x64xf32>
    %185 = vector.extract_strided_slice %175 {offsets = [0, 64], sizes = [2, 64], strides = [1, 1]} : vector<2x192xf32> to vector<2x64xf32>
    %186 = arith.addf %184, %185 : vector<2x64xf32>
    %187 = arith.negf %186 : vector<2x64xf32>
    %188 = math.exp %187 : vector<2x64xf32>
    %cst_75 = arith.constant 1.000000e+00 : f32
    %189 = vector.broadcast %cst_75 : f32 to vector<2x64xf32>
    %190 = arith.addf %189, %188 : vector<2x64xf32>
    %191 = arith.divf %189, %190 : vector<2x64xf32>
    %192 = vector.extract_strided_slice %170 {offsets = [0, 128], sizes = [2, 64], strides = [1, 1]} : vector<2x192xf32> to vector<2x64xf32>
    %193 = vector.extract_strided_slice %175 {offsets = [0, 128], sizes = [2, 64], strides = [1, 1]} : vector<2x192xf32> to vector<2x64xf32>
    %194 = arith.mulf %183, %193 : vector<2x64xf32>
    %195 = arith.addf %192, %194 : vector<2x64xf32>
    %196 = math.tanh %195 : vector<2x64xf32>
    %cst_76 = arith.constant 1.000000e+00 : f32
    %197 = vector.broadcast %cst_76 : f32 to vector<2x64xf32>
    %198 = arith.subf %197, %191 : vector<2x64xf32>
    %199 = arith.mulf %198, %196 : vector<2x64xf32>
    %200 = arith.mulf %191, %169 : vector<2x64xf32>
    %201 = arith.addf %199, %200 : vector<2x64xf32>
    %202 = vector.extract_strided_slice %136 {offsets = [4, 0], sizes = [2, 192], strides = [1, 1]} : vector<12x192xf32> to vector<2x192xf32>
    %c0_77 = arith.constant 0 : index
    %c0_78 = arith.constant 0 : index
    %203 = vector.load %arg18[%c0_77, %c0_78] : memref<64x192xf32, #tpu.memory_space<vmem>>, vector<64x192xf32>
    %cst_79 = arith.constant dense<0.000000e+00> : vector<2x192xf32>
    %204 = tpu.matmul %201, %203, %cst_79 {dimension_numbers = #tpu.dot_dimension_numbers<[1], [0], [0], [1], [0, 0, 1, 1], [], []>} : vector<2x64xf32>, vector<64x192xf32>, vector<2x192xf32> -> vector<2x192xf32>
    %c0_80 = arith.constant 0 : index
    %c0_81 = arith.constant 0 : index
    %205 = vector.load %arg19[%c0_80, %c0_81] : memref<1x192xf32, #tpu.memory_space<vmem>>, vector<1x192xf32>
    %206 = vector.broadcast %205 : vector<1x192xf32> to vector<2x192xf32>
    %207 = arith.addf %204, %206 : vector<2x192xf32>
    %208 = vector.extract_strided_slice %202 {offsets = [0, 0], sizes = [2, 64], strides = [1, 1]} : vector<2x192xf32> to vector<2x64xf32>
    %209 = vector.extract_strided_slice %207 {offsets = [0, 0], sizes = [2, 64], strides = [1, 1]} : vector<2x192xf32> to vector<2x64xf32>
    %210 = arith.addf %208, %209 : vector<2x64xf32>
    %211 = arith.negf %210 : vector<2x64xf32>
    %212 = math.exp %211 : vector<2x64xf32>
    %cst_82 = arith.constant 1.000000e+00 : f32
    %213 = vector.broadcast %cst_82 : f32 to vector<2x64xf32>
    %214 = arith.addf %213, %212 : vector<2x64xf32>
    %215 = arith.divf %213, %214 : vector<2x64xf32>
    %216 = vector.extract_strided_slice %202 {offsets = [0, 64], sizes = [2, 64], strides = [1, 1]} : vector<2x192xf32> to vector<2x64xf32>
    %217 = vector.extract_strided_slice %207 {offsets = [0, 64], sizes = [2, 64], strides = [1, 1]} : vector<2x192xf32> to vector<2x64xf32>
    %218 = arith.addf %216, %217 : vector<2x64xf32>
    %219 = arith.negf %218 : vector<2x64xf32>
    %220 = math.exp %219 : vector<2x64xf32>
    %cst_83 = arith.constant 1.000000e+00 : f32
    %221 = vector.broadcast %cst_83 : f32 to vector<2x64xf32>
    %222 = arith.addf %221, %220 : vector<2x64xf32>
    %223 = arith.divf %221, %222 : vector<2x64xf32>
    %224 = vector.extract_strided_slice %202 {offsets = [0, 128], sizes = [2, 64], strides = [1, 1]} : vector<2x192xf32> to vector<2x64xf32>
    %225 = vector.extract_strided_slice %207 {offsets = [0, 128], sizes = [2, 64], strides = [1, 1]} : vector<2x192xf32> to vector<2x64xf32>
    %226 = arith.mulf %215, %225 : vector<2x64xf32>
    %227 = arith.addf %224, %226 : vector<2x64xf32>
    %228 = math.tanh %227 : vector<2x64xf32>
    %cst_84 = arith.constant 1.000000e+00 : f32
    %229 = vector.broadcast %cst_84 : f32 to vector<2x64xf32>
    %230 = arith.subf %229, %223 : vector<2x64xf32>
    %231 = arith.mulf %230, %228 : vector<2x64xf32>
    %232 = arith.mulf %223, %201 : vector<2x64xf32>
    %233 = arith.addf %231, %232 : vector<2x64xf32>
    %234 = vector.extract_strided_slice %136 {offsets = [6, 0], sizes = [2, 192], strides = [1, 1]} : vector<12x192xf32> to vector<2x192xf32>
    %c0_85 = arith.constant 0 : index
    %c0_86 = arith.constant 0 : index
    %235 = vector.load %arg18[%c0_85, %c0_86] : memref<64x192xf32, #tpu.memory_space<vmem>>, vector<64x192xf32>
    %cst_87 = arith.constant dense<0.000000e+00> : vector<2x192xf32>
    %236 = tpu.matmul %233, %235, %cst_87 {dimension_numbers = #tpu.dot_dimension_numbers<[1], [0], [0], [1], [0, 0, 1, 1], [], []>} : vector<2x64xf32>, vector<64x192xf32>, vector<2x192xf32> -> vector<2x192xf32>
    %c0_88 = arith.constant 0 : index
    %c0_89 = arith.constant 0 : index
    %237 = vector.load %arg19[%c0_88, %c0_89] : memref<1x192xf32, #tpu.memory_space<vmem>>, vector<1x192xf32>
    %238 = vector.broadcast %237 : vector<1x192xf32> to vector<2x192xf32>
    %239 = arith.addf %236, %238 : vector<2x192xf32>
    %240 = vector.extract_strided_slice %234 {offsets = [0, 0], sizes = [2, 64], strides = [1, 1]} : vector<2x192xf32> to vector<2x64xf32>
    %241 = vector.extract_strided_slice %239 {offsets = [0, 0], sizes = [2, 64], strides = [1, 1]} : vector<2x192xf32> to vector<2x64xf32>
    %242 = arith.addf %240, %241 : vector<2x64xf32>
    %243 = arith.negf %242 : vector<2x64xf32>
    %244 = math.exp %243 : vector<2x64xf32>
    %cst_90 = arith.constant 1.000000e+00 : f32
    %245 = vector.broadcast %cst_90 : f32 to vector<2x64xf32>
    %246 = arith.addf %245, %244 : vector<2x64xf32>
    %247 = arith.divf %245, %246 : vector<2x64xf32>
    %248 = vector.extract_strided_slice %234 {offsets = [0, 64], sizes = [2, 64], strides = [1, 1]} : vector<2x192xf32> to vector<2x64xf32>
    %249 = vector.extract_strided_slice %239 {offsets = [0, 64], sizes = [2, 64], strides = [1, 1]} : vector<2x192xf32> to vector<2x64xf32>
    %250 = arith.addf %248, %249 : vector<2x64xf32>
    %251 = arith.negf %250 : vector<2x64xf32>
    %252 = math.exp %251 : vector<2x64xf32>
    %cst_91 = arith.constant 1.000000e+00 : f32
    %253 = vector.broadcast %cst_91 : f32 to vector<2x64xf32>
    %254 = arith.addf %253, %252 : vector<2x64xf32>
    %255 = arith.divf %253, %254 : vector<2x64xf32>
    %256 = vector.extract_strided_slice %234 {offsets = [0, 128], sizes = [2, 64], strides = [1, 1]} : vector<2x192xf32> to vector<2x64xf32>
    %257 = vector.extract_strided_slice %239 {offsets = [0, 128], sizes = [2, 64], strides = [1, 1]} : vector<2x192xf32> to vector<2x64xf32>
    %258 = arith.mulf %247, %257 : vector<2x64xf32>
    %259 = arith.addf %256, %258 : vector<2x64xf32>
    %260 = math.tanh %259 : vector<2x64xf32>
    %cst_92 = arith.constant 1.000000e+00 : f32
    %261 = vector.broadcast %cst_92 : f32 to vector<2x64xf32>
    %262 = arith.subf %261, %255 : vector<2x64xf32>
    %263 = arith.mulf %262, %260 : vector<2x64xf32>
    %264 = arith.mulf %255, %233 : vector<2x64xf32>
    %265 = arith.addf %263, %264 : vector<2x64xf32>
    %266 = vector.extract_strided_slice %136 {offsets = [8, 0], sizes = [2, 192], strides = [1, 1]} : vector<12x192xf32> to vector<2x192xf32>
    %c0_93 = arith.constant 0 : index
    %c0_94 = arith.constant 0 : index
    %267 = vector.load %arg18[%c0_93, %c0_94] : memref<64x192xf32, #tpu.memory_space<vmem>>, vector<64x192xf32>
    %cst_95 = arith.constant dense<0.000000e+00> : vector<2x192xf32>
    %268 = tpu.matmul %265, %267, %cst_95 {dimension_numbers = #tpu.dot_dimension_numbers<[1], [0], [0], [1], [0, 0, 1, 1], [], []>} : vector<2x64xf32>, vector<64x192xf32>, vector<2x192xf32> -> vector<2x192xf32>
    %c0_96 = arith.constant 0 : index
    %c0_97 = arith.constant 0 : index
    %269 = vector.load %arg19[%c0_96, %c0_97] : memref<1x192xf32, #tpu.memory_space<vmem>>, vector<1x192xf32>
    %270 = vector.broadcast %269 : vector<1x192xf32> to vector<2x192xf32>
    %271 = arith.addf %268, %270 : vector<2x192xf32>
    %272 = vector.extract_strided_slice %266 {offsets = [0, 0], sizes = [2, 64], strides = [1, 1]} : vector<2x192xf32> to vector<2x64xf32>
    %273 = vector.extract_strided_slice %271 {offsets = [0, 0], sizes = [2, 64], strides = [1, 1]} : vector<2x192xf32> to vector<2x64xf32>
    %274 = arith.addf %272, %273 : vector<2x64xf32>
    %275 = arith.negf %274 : vector<2x64xf32>
    %276 = math.exp %275 : vector<2x64xf32>
    %cst_98 = arith.constant 1.000000e+00 : f32
    %277 = vector.broadcast %cst_98 : f32 to vector<2x64xf32>
    %278 = arith.addf %277, %276 : vector<2x64xf32>
    %279 = arith.divf %277, %278 : vector<2x64xf32>
    %280 = vector.extract_strided_slice %266 {offsets = [0, 64], sizes = [2, 64], strides = [1, 1]} : vector<2x192xf32> to vector<2x64xf32>
    %281 = vector.extract_strided_slice %271 {offsets = [0, 64], sizes = [2, 64], strides = [1, 1]} : vector<2x192xf32> to vector<2x64xf32>
    %282 = arith.addf %280, %281 : vector<2x64xf32>
    %283 = arith.negf %282 : vector<2x64xf32>
    %284 = math.exp %283 : vector<2x64xf32>
    %cst_99 = arith.constant 1.000000e+00 : f32
    %285 = vector.broadcast %cst_99 : f32 to vector<2x64xf32>
    %286 = arith.addf %285, %284 : vector<2x64xf32>
    %287 = arith.divf %285, %286 : vector<2x64xf32>
    %288 = vector.extract_strided_slice %266 {offsets = [0, 128], sizes = [2, 64], strides = [1, 1]} : vector<2x192xf32> to vector<2x64xf32>
    %289 = vector.extract_strided_slice %271 {offsets = [0, 128], sizes = [2, 64], strides = [1, 1]} : vector<2x192xf32> to vector<2x64xf32>
    %290 = arith.mulf %279, %289 : vector<2x64xf32>
    %291 = arith.addf %288, %290 : vector<2x64xf32>
    %292 = math.tanh %291 : vector<2x64xf32>
    %cst_100 = arith.constant 1.000000e+00 : f32
    %293 = vector.broadcast %cst_100 : f32 to vector<2x64xf32>
    %294 = arith.subf %293, %287 : vector<2x64xf32>
    %295 = arith.mulf %294, %292 : vector<2x64xf32>
    %296 = arith.mulf %287, %265 : vector<2x64xf32>
    %297 = arith.addf %295, %296 : vector<2x64xf32>
    %298 = vector.extract_strided_slice %136 {offsets = [10, 0], sizes = [2, 192], strides = [1, 1]} : vector<12x192xf32> to vector<2x192xf32>
    %c0_101 = arith.constant 0 : index
    %c0_102 = arith.constant 0 : index
    %299 = vector.load %arg18[%c0_101, %c0_102] : memref<64x192xf32, #tpu.memory_space<vmem>>, vector<64x192xf32>
    %cst_103 = arith.constant dense<0.000000e+00> : vector<2x192xf32>
    %300 = tpu.matmul %297, %299, %cst_103 {dimension_numbers = #tpu.dot_dimension_numbers<[1], [0], [0], [1], [0, 0, 1, 1], [], []>} : vector<2x64xf32>, vector<64x192xf32>, vector<2x192xf32> -> vector<2x192xf32>
    %c0_104 = arith.constant 0 : index
    %c0_105 = arith.constant 0 : index
    %301 = vector.load %arg19[%c0_104, %c0_105] : memref<1x192xf32, #tpu.memory_space<vmem>>, vector<1x192xf32>
    %302 = vector.broadcast %301 : vector<1x192xf32> to vector<2x192xf32>
    %303 = arith.addf %300, %302 : vector<2x192xf32>
    %304 = vector.extract_strided_slice %298 {offsets = [0, 0], sizes = [2, 64], strides = [1, 1]} : vector<2x192xf32> to vector<2x64xf32>
    %305 = vector.extract_strided_slice %303 {offsets = [0, 0], sizes = [2, 64], strides = [1, 1]} : vector<2x192xf32> to vector<2x64xf32>
    %306 = arith.addf %304, %305 : vector<2x64xf32>
    %307 = arith.negf %306 : vector<2x64xf32>
    %308 = math.exp %307 : vector<2x64xf32>
    %cst_106 = arith.constant 1.000000e+00 : f32
    %309 = vector.broadcast %cst_106 : f32 to vector<2x64xf32>
    %310 = arith.addf %309, %308 : vector<2x64xf32>
    %311 = arith.divf %309, %310 : vector<2x64xf32>
    %312 = vector.extract_strided_slice %298 {offsets = [0, 64], sizes = [2, 64], strides = [1, 1]} : vector<2x192xf32> to vector<2x64xf32>
    %313 = vector.extract_strided_slice %303 {offsets = [0, 64], sizes = [2, 64], strides = [1, 1]} : vector<2x192xf32> to vector<2x64xf32>
    %314 = arith.addf %312, %313 : vector<2x64xf32>
    %315 = arith.negf %314 : vector<2x64xf32>
    %316 = math.exp %315 : vector<2x64xf32>
    %cst_107 = arith.constant 1.000000e+00 : f32
    %317 = vector.broadcast %cst_107 : f32 to vector<2x64xf32>
    %318 = arith.addf %317, %316 : vector<2x64xf32>
    %319 = arith.divf %317, %318 : vector<2x64xf32>
    %320 = vector.extract_strided_slice %298 {offsets = [0, 128], sizes = [2, 64], strides = [1, 1]} : vector<2x192xf32> to vector<2x64xf32>
    %321 = vector.extract_strided_slice %303 {offsets = [0, 128], sizes = [2, 64], strides = [1, 1]} : vector<2x192xf32> to vector<2x64xf32>
    %322 = arith.mulf %311, %321 : vector<2x64xf32>
    %323 = arith.addf %320, %322 : vector<2x64xf32>
    %324 = math.tanh %323 : vector<2x64xf32>
    %cst_108 = arith.constant 1.000000e+00 : f32
    %325 = vector.broadcast %cst_108 : f32 to vector<2x64xf32>
    %326 = arith.subf %325, %319 : vector<2x64xf32>
    %327 = arith.mulf %326, %324 : vector<2x64xf32>
    %328 = arith.mulf %319, %297 : vector<2x64xf32>
    %329 = arith.addf %327, %328 : vector<2x64xf32>
    %c0_109 = arith.constant 0 : index
    %c0_110 = arith.constant 0 : index
    %330 = vector.load %arg20[%c0_109, %c0_110] : memref<64x5xf32, #tpu.memory_space<vmem>>, vector<64x5xf32>
    %cst_111 = arith.constant dense<0.000000e+00> : vector<2x5xf32>
    %331 = tpu.matmul %329, %330, %cst_111 {dimension_numbers = #tpu.dot_dimension_numbers<[1], [0], [0], [1], [0, 0, 1, 1], [], []>} : vector<2x64xf32>, vector<64x5xf32>, vector<2x5xf32> -> vector<2x5xf32>
    %c0_112 = arith.constant 0 : index
    %c0_113 = arith.constant 0 : index
    %332 = vector.load %arg21[%c0_112, %c0_113] : memref<1x5xf32, #tpu.memory_space<vmem>>, vector<1x5xf32>
    %333 = vector.broadcast %332 : vector<1x5xf32> to vector<2x5xf32>
    %334 = arith.addf %331, %333 : vector<2x5xf32>
    %c0_114 = arith.constant 0 : index
    %c0_115 = arith.constant 0 : index
    %335 = vector.load %arg22[%c0_114, %c0_115] : memref<2x5xf32, #tpu.memory_space<vmem>>, vector<2x5xf32>
    tpu.vector_store %arg22[%c0_114, %c0_115], %334 {strides = array<i32>} : memref<2x5xf32, #tpu.memory_space<vmem>>, vector<2x5xf32>,
    return
  }
}

</mosaic_0001>

<bundles_post_ra>
// kernel: cnn_gru_forward.1
= control target key start
LH: loop header
LB: loop body
LE: loop exit
PB: predicated region body
PF: predicated region fallthrough
CT: control target
= control target key end

     0   :  { %s5839_s0 = inlined_call_operand.vmem [shape: f32[128,1], index: 0, kind: input, shape index: {}]   ;;  %s5840_s1 = inlined_call_operand.hbm [shape: f32[3,64], index: 1, kind: input, shape index: {}]   ;;  %s5841_s2 = inlined_call_operand.vmem [shape: f32[1,64], index: 2, kind: input, shape index: {}]   ;;  %s5842_s3 = inlined_call_operand.hbm [shape: f32[1,64], index: 3, kind: input, shape index: {}]   ;;  %s5843_s4 = inlined_call_operand.hbm [shape: f32[126,1], index: 4, kind: input, shape index: {}]   ;;  %s5844_s5 = inlined_call_operand.vmem [shape: f32[62,125], index: 5, kind: input, shape index: {}]   ;;  %s5845_s6 = inlined_call_operand.vmem [shape: f32[192,128], index: 6, kind: input, shape index: {}]   ;;  %s5846_s7 = inlined_call_operand.hbm [shape: f32[1,128], index: 7, kind: input, shape index: {}]   ;;  %s5847_s8 = inlined_call_operand.hbm [shape: f32[1,128], index: 8, kind: input, shape index: {}]   ;;  %s5848_s9 = inlined_call_operand.hbm [shape: f32[60,1], index: 9, kind: input, shape index: {}]   ;;  %s5849_s10 = inlined_call_operand.vmem [shape: f32[28,59], index: 10, kind: input, shape index: {}]   ;;  %s5850_s11 = inlined_call_operand.vmem [shape: f32[384,256], index: 11, kind: input, shape index: {}]   ;;  %s5851_s12 = inlined_call_operand.hbm [shape: f32[1,256], index: 12, kind: input, shape index: {}]   ;;  %s5852_s13 = inlined_call_operand.hbm [shape: f32[1,256], index: 13, kind: input, shape index: {}]   ;;  %s5853_s14 = inlined_call_operand.hbm [shape: f32[26,1], index: 14, kind: input, shape index: {}]   ;;  %s5854_s15 = inlined_call_operand.vmem [shape: f32[12,25], index: 15, kind: input, shape index: {}]   ;;  %s5855_s16 = inlined_call_operand.vmem [shape: f32[256,192], index: 16, kind: input, shape index: {}]   ;;  %s5856_s17 = inlined_call_operand.hbm [shape: f32[1,192], index: 17, kind: input, shape index: {}]   ;;  %s5857_s18 = inlined_call_operand.vmem [shape: f32[64,192], index: 18, kind: input, shape index: {}]   ;;  %s5858_s19 = inlined_call_operand.hbm [shape: f32[1,192], index: 19, kind: input, shape index: {}]   ;;  %s5859_s20 = inlined_call_operand.vmem [shape: f32[64,5], index: 20, kind: input, shape index: {}]   ;;  %s5860_s21 = inlined_call_operand.hbm [shape: f32[1,5], index: 21, kind: input, shape index: {}]   ;;  %s5861_s22 = inlined_call_operand.hbm [shape: f32[2,5], index: 22, kind: output, shape index: {}]  }
   0x1   :  { %5868 = sst [smem:[#allocation31_spill]] %s5839_s0 }
   0x2   :  { %5869 = sst [smem:[#allocation32_spill]] %s5840_s1 }
   0x3   :  { %5870 = sst [smem:[#allocation33_spill]] %s5841_s2 }
   0x4   :  { %5871 = sst [smem:[#allocation34_spill]] %s5842_s3 }
   0x5   :  { %5872 = sst [smem:[#allocation35_spill]] %s5843_s4 }
   0x6   :  { %5873 = sst [smem:[#allocation36_spill]] %s5844_s5 }
   0x7   :  { %5874 = sst [smem:[#allocation37_spill]] %s5845_s6 }
   0x8   :  { %27 = vsyncpa [#allocation3], 0 }
   0x9   :  { %28 = vsyncpa [#allocation6], 0 }
   0xa   :  { %29 = vsyncpa [#allocation9], 0 }
   0xb   :  { %30 = vsyncpa [#allocation12], 0 }
   0xc   :  { %31 = vsyncpa [#allocation15], 0 }
   0xd   :  { %32 = vsyncpa [#allocation18], 0 }
   0xe   :  { %33 = vsyncpa [#allocation21], 0 }
   0xf   :  { %34 = vsyncpa [#allocation4], 0  ;;  %s3982_s3 = smov [#allocation5]   ;;  %s3983_s29 = smov [#allocation8]  }
  0x10   :  { %s55_s28 = sshll.u32 %s3982_s3, 4  ;;  %s81_s30 = sshll.u32 %s3983_s29, 4  ;;  %s56_s28 = int_to_ptr.vmem [resolvable:$true] %s55_s28  ;;  %s82_s30 = int_to_ptr.vmem [resolvable:$true] %s81_s30 }
  0x11   :  { %s5875_s23 = sld [smem:[#allocation34_spill]] }
  0x17   :  { %s3680_s1 = scalar_lea.hbm %s5875_s23, 16 }
  0x18   :  { %p3681_p0 = scmp.ne.s32.totalorder %s5875_s23, %s3680_s1  ;;  %p3684_p1 = scmp.lt.u32.totalorder %s3680_s1, %s5875_s23 }
  0x1a   :  { %p3686_p2 = pnand %p3684_p1, %p3681_p0 }
  0x1c   :  { %3689 = shalt.err (!%p3686_p2)
}
  0x1d   :  { %s3690_s26 = scalar_lea.vmem %s56_s28, 16  ;;  %s3694_s2 = scalar_lea.vmem %s56_s28, 32 }
  0x1e   :  { %p3691_p3 = scmp.ne.s32.totalorder %s56_s28, %s3690_s26  ;;  %p3695_p4 = scmp.lt.s32.totalorder %s56_s28, %s56_s28 }
  0x1f   :  { %p3696_p5 = scmp.lt.s32.totalorder %s3694_s2, %s3690_s26 }
  0x21   :  { %p3697_p6 = por %p3696_p5, %p3695_p4 }
  0x23   :  { %p3698_p7 = pnand %p3697_p6, %p3691_p3 }
  0x25   :  { %3701 = shalt.err (!%p3698_p7)
}
  0x26   :  { %58 = dma.hbm_to_vmem [thread:$0]  %s5875_s23, 16, %s56_s28, [#allocation6]  }
  0x27   :  { %s3702_s0 = scalar_lea.hbm %s5846_s7, 16 }
  0x28   :  { %p3703_p8 = scmp.ne.s32.totalorder %s5846_s7, %s3702_s0  ;;  %p3706_p9 = scmp.lt.u32.totalorder %s3702_s0, %s5846_s7 }
  0x2a   :  { %p3708_p10 = pnand %p3706_p9, %p3703_p8 }
  0x2c   :  { %3711 = shalt.err (!%p3708_p10)
}
  0x2d   :  { %s3712_s25 = scalar_lea.vmem %s82_s30, 16  ;;  %s3716_s26 = scalar_lea.vmem %s82_s30, 32 }
  0x2e   :  { %p3713_p11 = scmp.ne.s32.totalorder %s82_s30, %s3712_s25  ;;  %p3717_p12 = scmp.lt.s32.totalorder %s82_s30, %s82_s30 }
  0x2f   :  { %p3718_p13 = scmp.lt.s32.totalorder %s3716_s26, %s3712_s25 }
  0x31   :  { %p3719_p0 = por %p3718_p13, %p3717_p12 }
  0x33   :  { %p3720_p1 = pnand %p3719_p0, %p3713_p11 }
  0x35   :  { %3723 = shalt.err (!%p3720_p1)
}
  0x36   :  { %84 = dma.hbm_to_vmem [thread:$0]  %s5846_s7, 16, %s82_s30, [#allocation9]  }
  0x37   :  { %s3984_s2 = smov [#allocation11]   ;;  %s3985_s3 = smov [#allocation14]  }
  0x38   :  { %s100_s27 = sshll.u32 %s3984_s2, 4  ;;  %s127_s29 = sshll.u32 %s3985_s3, 4  ;;  %s101_s27 = int_to_ptr.vmem [resolvable:$true] %s100_s27  ;;  %s128_s29 = int_to_ptr.vmem [resolvable:$true] %s127_s29 }
  0x39   :  { %s3724_s5 = scalar_lea.hbm %s5848_s9, 1024 }
  0x3a   :  { %p3725_p2 = scmp.ne.s32.totalorder %s5848_s9, %s3724_s5  ;;  %p3728_p3 = scmp.lt.u32.totalorder %s3724_s5, %s5848_s9 }
  0x3c   :  { %p3730_p4 = pnand %p3728_p3, %p3725_p2 }
  0x3e   :  { %3733 = shalt.err (!%p3730_p4)
}
  0x3f   :  { %s3734_s7 = scalar_lea.vmem %s101_s27, 1024  ;;  %p3739_p6 = scmp.lt.s32.totalorder %s101_s27, %s101_s27 }
  0x40   :  { %p3735_p5 = scmp.ne.s32.totalorder %s101_s27, %s3734_s7  ;;  %p3740_p7 = scmp.lt.s32.totalorder %s3734_s7, %s3734_s7 }
  0x42   :  { %p3741_p8 = por %p3740_p7, %p3739_p6 }
  0x44   :  { %p3742_p9 = pnand %p3741_p8, %p3735_p5 }
  0x46   :  { %3745 = shalt.err (!%p3742_p9)
}
  0x47   :  { %s3986_s30 = smov 128   ;;  %s3987_s26 = smov 8  }
  0x48   :  { %106 = dma.hbm_to_vmem [thread:$0]  %s5848_s9, 1024, %s101_s27, [#allocation12], %s3986_s30, %s3986_s30, %s3987_s26  }
  0x49   :  { %s3746_s4 = scalar_lea.hbm %s5852_s13, 32 }
  0x4a   :  { %p3747_p10 = scmp.ne.s32.totalorder %s5852_s13, %s3746_s4  ;;  %p3750_p11 = scmp.lt.u32.totalorder %s3746_s4, %s5852_s13 }
  0x4c   :  { %p3752_p12 = pnand %p3750_p11, %p3747_p10 }
  0x4e   :  { %3755 = shalt.err (!%p3752_p12)
}
  0x4f   :  { %s3756_s6 = scalar_lea.vmem %s128_s29, 32  ;;  %p3761_p0 = scmp.lt.s32.totalorder %s128_s29, %s128_s29 }
  0x50   :  { %p3757_p13 = scmp.ne.s32.totalorder %s128_s29, %s3756_s6  ;;  %p3762_p1 = scmp.lt.s32.totalorder %s3756_s6, %s3756_s6 }
  0x52   :  { %p3763_p2 = por %p3762_p1, %p3761_p0 }
  0x54   :  { %p3764_p3 = pnand %p3763_p2, %p3757_p13 }
  0x56   :  { %3767 = shalt.err (!%p3764_p3)
}
  0x57   :  { %130 = dma.hbm_to_vmem [thread:$0]  %s5852_s13, 32, %s128_s29, [#allocation15]  }
  0x58   :  { %s3988_s25 = smov [#allocation17]   ;;  %s3989_s28 = smov [#allocation2]  }
  0x59   :  { %s153_s7 = sshll.u32 %s3988_s25, 4  ;;  %s43_s23 = sshll.u32 %s3989_s28, 4  ;;  %s154_s7 = int_to_ptr.vmem [resolvable:$true] %s153_s7  ;;  %s44_s23 = int_to_ptr.vmem [resolvable:$true] %s43_s23 }
  0x5a   :  { %s3768_s4 = scalar_lea.hbm %s5856_s17, 32 }
  0x5b   :  { %p3769_p4 = scmp.ne.s32.totalorder %s5856_s17, %s3768_s4  ;;  %p3772_p5 = scmp.lt.u32.totalorder %s3768_s4, %s5856_s17 }
  0x5d   :  { %p3774_p6 = pnand %p3772_p5, %p3769_p4 }
  0x5f   :  { %3777 = shalt.err (!%p3774_p6)
}
  0x60   :  { %s3778_s13 = scalar_lea.vmem %s154_s7, 32  ;;  %p3783_p8 = scmp.lt.s32.totalorder %s154_s7, %s154_s7 }
  0x61   :  { %p3779_p7 = scmp.ne.s32.totalorder %s154_s7, %s3778_s13  ;;  %p3784_p9 = scmp.lt.s32.totalorder %s3778_s13, %s3778_s13 }
  0x63   :  { %p3785_p10 = por %p3784_p9, %p3783_p8 }
  0x65   :  { %p3786_p11 = pnand %p3785_p10, %p3779_p7 }
  0x67   :  { %3789 = shalt.err (!%p3786_p11)
}
  0x68   :  { %156 = dma.hbm_to_vmem [thread:$0]  %s5856_s17, 32, %s154_s7, [#allocation18]  }
  0x69   :  { %s5876_s25 = sld [smem:[#allocation32_spill]] }
  0x6f   :  { %s3790_s28 = scalar_lea.hbm %s5876_s25, 64 }
  0x70   :  { %p3791_p12 = scmp.ne.s32.totalorder %s5876_s25, %s3790_s28  ;;  %p3794_p13 = scmp.lt.u32.totalorder %s3790_s28, %s5876_s25 }
  0x72   :  { %p3796_p0 = pnand %p3794_p13, %p3791_p12 }
  0x74   :  { %3799 = shalt.err (!%p3796_p0)
}
  0x75   :  { %s3800_s5 = scalar_lea.vmem %s44_s23, 64  ;;  %p3805_p2 = scmp.lt.s32.totalorder %s44_s23, %s44_s23 }
  0x76   :  { %p3801_p1 = scmp.ne.s32.totalorder %s44_s23, %s3800_s5  ;;  %p3806_p3 = scmp.lt.s32.totalorder %s3800_s5, %s3800_s5 }
  0x78   :  { %p3807_p4 = por %p3806_p3, %p3805_p2 }
  0x7a   :  { %p3808_p5 = pnand %p3807_p4, %p3801_p1 }
  0x7c   :  { %3811 = shalt.err (!%p3808_p5)
}
  0x7d   :  { %46 = dma.hbm_to_vmem [thread:$0]  %s5876_s25, 64, %s44_s23, [#allocation3]  }
  0x7e   :  { %s3990_s1 = smov [#allocation7]   ;;  %s3991_s13 = smov [#allocation10]  }
  0x7f   :  { %s64_s24 = sshll.u32 %s3990_s1, 4  ;;  %s91_s29 = sshll.u32 %s3991_s13, 4  ;;  %s65_s24 = int_to_ptr.vmem [resolvable:$true] %s64_s24  ;;  %s92_s29 = int_to_ptr.vmem [resolvable:$true] %s91_s29 }
  0x80   :  { %s5877_s27 = sld [smem:[#allocation35_spill]] }
  0x86   :  { %s3812_s28 = scalar_lea.hbm %s5877_s27, 2048 }
  0x87   :  { %p3813_p6 = scmp.ne.s32.totalorder %s5877_s27, %s3812_s28  ;;  %p3816_p7 = scmp.lt.u32.totalorder %s3812_s28, %s5877_s27 }
  0x89   :  { %p3818_p8 = pnand %p3816_p7, %p3813_p6 }
  0x8b   :  { %3821 = shalt.err (!%p3818_p8)
}
  0x8c   :  { %s3822_s23 = scalar_lea.vmem %s65_s24, 2048  ;;  %p3827_p10 = scmp.lt.s32.totalorder %s65_s24, %s65_s24 }
  0x8d   :  { %p3823_p9 = scmp.ne.s32.totalorder %s65_s24, %s3822_s23  ;;  %p3828_p11 = scmp.lt.s32.totalorder %s3822_s23, %s3822_s23 }
  0x8f   :  { %p3829_p12 = por %p3828_p11, %p3827_p10 }
  0x91   :  { %p3830_p13 = pnand %p3829_p12, %p3823_p9 }
  0x93   :  { %3833 = shalt.err (!%p3830_p13)
}
  0x94   :  { %70 = dma.hbm_to_vmem [thread:$0]  %s5877_s27, 2048, %s65_s24, [#allocation6], %s3986_s30, %s3986_s30, %s3987_s26  }
  0x95   :  { %s3834_s1 = scalar_lea.hbm %s5847_s8, 16 }
  0x96   :  { %p3835_p0 = scmp.ne.s32.totalorder %s5847_s8, %s3834_s1  ;;  %p3838_p1 = scmp.lt.u32.totalorder %s3834_s1, %s5847_s8 }
  0x98   :  { %p3840_p2 = pnand %p3838_p1, %p3835_p0 }
  0x9a   :  { %3843 = shalt.err (!%p3840_p2)
}
  0x9b   :  { %s3844_s2 = scalar_lea.vmem %s92_s29, 16  ;;  %s3848_s3 = scalar_lea.vmem %s92_s29, 32 }
  0x9c   :  { %p3845_p3 = scmp.ne.s32.totalorder %s92_s29, %s3844_s2  ;;  %p3849_p4 = scmp.lt.s32.totalorder %s92_s29, %s92_s29 }
  0x9d   :  { %p3850_p5 = scmp.lt.s32.totalorder %s3848_s3, %s3844_s2 }
  0x9f   :  { %p3851_p6 = por %p3850_p5, %p3849_p4 }
  0xa1   :  { %p3852_p7 = pnand %p3851_p6, %p3845_p3 }
  0xa3   :  { %3855 = shalt.err (!%p3852_p7)
}
  0xa4   :  { %94 = dma.hbm_to_vmem [thread:$0]  %s5847_s8, 16, %s92_s29, [#allocation9]  }
  0xa5   :  { %s3992_s4 = smov [#allocation13]   ;;  %s3993_s23 = smov [#allocation16]  }
  0xa6   :  { %s117_s0 = sshll.u32 %s3992_s4, 4  ;;  %s136_s25 = sshll.u32 %s3993_s23, 4  ;;  %s118_s0 = int_to_ptr.vmem [resolvable:$true] %s117_s0  ;;  %s4220_s25 = int_to_ptr.vmem [resolvable:$true] %s136_s25 }
  0xa7   :  { %s3856_s7 = scalar_lea.hbm %s5851_s12, 32 }
  0xa8   :  { %p3857_p8 = scmp.ne.s32.totalorder %s5851_s12, %s3856_s7  ;;  %p3860_p9 = scmp.lt.u32.totalorder %s3856_s7, %s5851_s12 }
  0xaa   :  { %p3862_p10 = pnand %p3860_p9, %p3857_p8 }
  0xac   :  { %3865 = shalt.err (!%p3862_p10)
}
  0xad   :  { %s3866_s8 = scalar_lea.vmem %s118_s0, 32  ;;  %p3871_p12 = scmp.lt.s32.totalorder %s118_s0, %s118_s0 }
  0xae   :  { %p3867_p11 = scmp.ne.s32.totalorder %s118_s0, %s3866_s8  ;;  %p3872_p13 = scmp.lt.s32.totalorder %s3866_s8, %s3866_s8 }
  0xb0   :  { %p3873_p0 = por %p3872_p13, %p3871_p12 }
  0xb2   :  { %p3874_p1 = pnand %p3873_p0, %p3867_p11 }
  0xb4   :  { %3877 = shalt.err (!%p3874_p1)
}
  0xb5   :  { %120 = dma.hbm_to_vmem [thread:$0]  %s5851_s12, 32, %s118_s0, [#allocation12]  }
  0xb6   :  { %s3878_s24 = scalar_lea.hbm %s5853_s14, 512 }
  0xb7   :  { %p3879_p2 = scmp.ne.s32.totalorder %s5853_s14, %s3878_s24  ;;  %p3882_p3 = scmp.lt.u32.totalorder %s3878_s24, %s5853_s14 }
  0xb9   :  { %p3884_p4 = pnand %p3882_p3, %p3879_p2 }
  0xbb   :  { %3887 = shalt.err (!%p3884_p4)
}
  0xbc   :  { %s3888_s17 = scalar_lea.vmem %s4220_s25, 512  ;;  %p3893_p6 = scmp.lt.s32.totalorder %s4220_s25, %s4220_s25 }
  0xbd   :  { %p3889_p5 = scmp.ne.s32.totalorder %s4220_s25, %s3888_s17  ;;  %p3894_p7 = scmp.lt.s32.totalorder %s3888_s17, %s3888_s17 }
  0xbf   :  { %p3895_p8 = por %p3894_p7, %p3893_p6 }
  0xc1   :  { %p3896_p9 = pnand %p3895_p8, %p3889_p5 }
  0xc3   :  { %3899 = shalt.err (!%p3896_p9)
}
  0xc4   :  { %142 = dma.hbm_to_vmem [thread:$0]  %s5853_s14, 512, %s4220_s25, [#allocation15], %s3986_s30, %s3986_s30, %s3987_s26  }
  0xc5   :  { %s3994_s7 = smov [#allocation19]   ;;  %s3995_s13 = smov [#allocation20]  }
  0xc6   :  { %s165_s1 = sshll.u32 %s3994_s7, 4  ;;  %s177_s6 = sshll.u32 %s3995_s13, 4  ;;  %s166_s1 = int_to_ptr.vmem [resolvable:$true] %s165_s1  ;;  %s178_s6 = int_to_ptr.vmem [resolvable:$true] %s177_s6 }
  0xc7   :  { %s3900_s29 = scalar_lea.hbm %s5858_s19, 32 }
  0xc8   :  { %p3901_p10 = scmp.ne.s32.totalorder %s5858_s19, %s3900_s29  ;;  %p3904_p11 = scmp.lt.u32.totalorder %s3900_s29, %s5858_s19 }
  0xca   :  { %p3906_p12 = pnand %p3904_p11, %p3901_p10 }
  0xcc   :  { %3909 = shalt.err (!%p3906_p12)
}
  0xcd   :  { %s3910_s14 = scalar_lea.vmem %s166_s1, 32  ;;  %p3915_p0 = scmp.lt.s32.totalorder %s166_s1, %s166_s1 }
  0xce   :  { %p3911_p13 = scmp.ne.s32.totalorder %s166_s1, %s3910_s14  ;;  %p3916_p1 = scmp.lt.s32.totalorder %s3910_s14, %s3910_s14 }
  0xd0   :  { %p3917_p2 = por %p3916_p1, %p3915_p0 }
  0xd2   :  { %p3918_p3 = pnand %p3917_p2, %p3911_p13 }
  0xd4   :  { %3921 = shalt.err (!%p3918_p3)
}
  0xd5   :  { %168 = dma.hbm_to_vmem [thread:$0]  %s5858_s19, 32, %s166_s1, [#allocation18]  }
  0xd6   :  { %s3922_s4 = scalar_lea.hbm %s5860_s21, 16 }
  0xd7   :  { %p3923_p4 = scmp.ne.s32.totalorder %s5860_s21, %s3922_s4  ;;  %p3926_p5 = scmp.lt.u32.totalorder %s3922_s4, %s5860_s21 }
  0xd9   :  { %p3928_p6 = pnand %p3926_p5, %p3923_p4 }
  0xdb   :  { %3931 = shalt.err (!%p3928_p6)
}
  0xdc   :  { %s3932_s0 = scalar_lea.vmem %s178_s6, 16  ;;  %s3936_s7 = scalar_lea.vmem %s178_s6, 32 }
  0xdd   :  { %p3933_p7 = scmp.ne.s32.totalorder %s178_s6, %s3932_s0  ;;  %p3937_p8 = scmp.lt.s32.totalorder %s178_s6, %s178_s6 }
  0xde   :  { %p3938_p9 = scmp.lt.s32.totalorder %s3936_s7, %s3932_s0 }
  0xe0   :  { %p3939_p10 = por %p3938_p9, %p3937_p8 }
  0xe2   :  { %p3940_p11 = pnand %p3939_p10, %p3933_p7 }
  0xe4   :  { %3943 = shalt.err (!%p3940_p11)
}
  0xe5   :  { %180 = dma.hbm_to_vmem [thread:$0]  %s5860_s21, 16, %s178_s6, [#allocation21]  }
  0xe6   :  { %3966 = dma.done.wait [#allocation3], 64  }
  0xe7   :  { %3967 = vsyncadd [#allocation3], 4294967232 }
  0xe8   :  { %3968 = dma.done.wait [#allocation6], 2064  }
  0xe9   :  { %3969 = vsyncadd [#allocation6], 4294965232 }
  0xea   :  { %3970 = dma.done.wait [#allocation9], 32  }
  0xeb   :  { %3971 = vsyncadd [#allocation9], 4294967264 }
  0xec   :  { %3972 = dma.done.wait [#allocation12], 1056  }
  0xed   :  { %3973 = vsyncadd [#allocation12], 4294966240 }
  0xee   :  { %3974 = dma.done.wait [#allocation15], 544  }
  0xef   :  { %3975 = vsyncadd [#allocation15], 4294966752 }
  0xf0   :  { %3976 = dma.done.wait [#allocation18], 64  }
  0xf1   :  { %3977 = vsyncadd [#allocation18], 4294967232 }
  0xf2   :  { %3978 = dma.done.wait [#allocation21], 16  }
  0xf3   :  { %3979 = vsyncadd [#allocation21], 4294967280  ;;  %v3996_v0 = vmov 0   ;;  %s5878_s21 = sld [smem:[#allocation31_spill]]  ;;  %v538_v7 = vld [vmem:[#allocation7] sm:$0xff]  ;;  %v539_v10 = vld [vmem:[#allocation7 + $0x8] sm:$0xff] }
  0xf4   :  { %3635 = vset.pattern.permute.xlu1 %v3996_v0  ;;  %3634 = vset.pattern.permute.xlu0 %v3996_v0  ;;  %v540_v12 = vld [vmem:[#allocation7 + $0x10] sm:$0xff]  ;;  %v541_v14 = vld [vmem:[#allocation7 + $0x18] sm:$0xff]  ;;  %v542_v16 = vld [vmem:[#allocation7 + $0x20] sm:$0xff]  ;;  %vm371_vm0 = vcmask 1046528   ;;  %vm472_vm1 = vcmask 1045504   ;;  %vm658_vm2 = vcmask 523264  }
  0xf5   :  { %v543_v18 = vld [vmem:[#allocation7 + $0x28] sm:$0xff]  ;;  %v544_v20 = vld [vmem:[#allocation7 + $0x30] sm:$0xff]  ;;  %v545_v22 = vld [vmem:[#allocation7 + $0x38] sm:$0xff]  ;;  %vm688_vm3 = vcmask 521216   ;;  %s5879_s30 = sld [smem:[#allocation36_spill]]  ;;  %vm925_vm4 = vcmask 1022976  }
  0xf6   :  { %v546_v24 = vld [vmem:[#allocation7 + $0x40] sm:$0xff]  ;;  %v547_v26 = vld [vmem:[#allocation7 + $0x48] sm:$0xff]  ;;  %v549_v27 = vld [vmem:[#allocation7 + $0x58] sm:$0xff]  ;;  %s5880_s27 = sld [smem:[#allocation33_spill]]  ;;  %vm950_vm5 = vcmask 1044480   ;;  %vm3997_vm6 = vmmov 1  }
  0xf7   :  { %v548_v28 = vld [vmem:[#allocation7 + $0x50] sm:$0xff]  ;;  %v551_v29 = vld [vmem:[#allocation7 + $0x68] sm:$0xff]  ;;  %v550_v30 = vld [vmem:[#allocation7 + $0x60] sm:$0xff]  ;;  %s5881_s3 = sld [smem:[#allocation37_spill]]  ;;  %vm1476_vm8 = vcmask 482304   ;;  %vm1350_vm9 = vcmask 1043456  }
  0xf8   :  { %v553_v31 = vld [vmem:[#allocation7 + $0x78] sm:$0x3f]  ;;  %v552_v32 = vld [vmem:[#allocation7 + $0x70] sm:$0xff]  ;;  %vm3268_vm7 = vmpackc.low %vm950_vm5, %vm3997_vm6  ;;  %vm1489_vm10 = vcmask 1042432   ;;  %vm1920_vm12 = vcmask 1041408   ;;  %vm2082_vm13 = vcmask 1040384  }
  0xf9   :  { %v219_v1 = vld [vmem:[%s5878_s21 + $0x10] sm:$0xff]  ;;  %v217_v2 = vld [vmem:[%s5878_s21] sm:$0xff]  ;;  %v220_v3 = vld [vmem:[%s5878_s21 + $0x18] sm:$0xff]  ;;  %vm2075_vm15 = vcmask 203776   ;;  %s4002_s19 = smov [#allocation22]  }
  0xfa   :  { %246 = vperm.xlu1 %3635, %v219_v1   ;;  %236 = vperm.xlu0 %3634, %v217_v2   ;;  %v218_v4 = vld [vmem:[%s5878_s21 + $0x8] sm:$0xff]  ;;  %v221_v6 = vld [vmem:[%s5878_s21 + $0x20] sm:$0xff]  ;;  %v223_v8 = vld [vmem:[%s5878_s21 + $0x30] sm:$0xff]  ;;  %s3048_s1 = sshll.u32 %s4002_s19, 4  ;;  %s3049_s1 = int_to_ptr.vmem [resolvable:$true] %s3048_s1 }
  0xfb   :  { %v222_v5 = vld [vmem:[%s5878_s21 + $0x28] sm:$0xff]  ;;  %v224_v9 = vld [vmem:[%s5878_s21 + $0x38] sm:$0xff]  ;;  %v225_v11 = vld [vmem:[%s5878_s21 + $0x40] sm:$0xff]  ;;  %p3949_p13 = scmp.lt.s32.totalorder %s3049_s1, %s3049_s1 }
  0xfc   :  { %v226_v13 = vld [vmem:[%s5878_s21 + $0x48] sm:$0xff]  ;;  %v227_v15 = vld [vmem:[%s5878_s21 + $0x50] sm:$0xff]  ;;  %v228_v17 = vld [vmem:[%s5878_s21 + $0x58] sm:$0xff] }
  0xfd   :  { %v229_v19 = vld [vmem:[%s5878_s21 + $0x60] sm:$0xff]  ;;  %v230_v21 = vld [vmem:[%s5878_s21 + $0x68] sm:$0xff]  ;;  %v231_v23 = vld [vmem:[%s5878_s21 + $0x70] sm:$0xff] }
  0xfe   :  { %251 = vperm.xlu1 %3635, %v220_v3   ;;  %241 = vperm.xlu0 %3634, %v218_v4   ;;  %v232_v25 = vld [vmem:[%s5878_s21 + $0x78] sm:$0xff]  ;;  %v4326_v37 = vld [vmem:[#allocation2 + $0x1] ss:$0 sm:$0xff]  ;;  %v4334_v45 = vld [vmem:[#allocation2 + $0x2] ss:$0 sm:$0xff] }
  0xff   :  { %v4338_v48 = vld [vmem:[#allocation2] ss:$0 sm:$0xff]  ;;  %vm3322_vm11 = vmpackc.low %vm1489_vm10, %vm3997_vm6 }
 0x100   :  { %vm3428_vm14 = vmpackc.low %vm2082_vm13, %vm3997_vm6 }
 0x102   :  { %261 = vperm.xlu1 %3635, %v222_v5   ;;  %256 = vperm.xlu0 %3634, %v221_v6  }
 0x106   :  { %564 = vperm.xlu1 %3635, %v538_v7   ;;  %266 = vperm.xlu0 %3634, %v223_v8  }
 0x10a   :  { %271 = vperm.xlu1 %3635, %v224_v9   ;;  %569 = vperm.xlu0 %3634, %v539_v10  }
 0x10e   :  { %276 = vperm.xlu1 %3635, %v225_v11   ;;  %574 = vperm.xlu0 %3634, %v540_v12  }
 0x112   :  { %281 = vperm.xlu1 %3635, %v226_v13   ;;  %579 = vperm.xlu0 %3634, %v541_v14  }
 0x116   :  { %286 = vperm.xlu1 %3635, %v227_v15   ;;  %584 = vperm.xlu0 %3634, %v542_v16  }
 0x11a   :  { %291 = vperm.xlu1 %3635, %v228_v17   ;;  %589 = vperm.xlu0 %3634, %v543_v18  }
 0x11e   :  { %296 = vperm.xlu1 %3635, %v229_v19   ;;  %594 = vperm.xlu0 %3634, %v544_v20  }
 0x122   :  { %301 = vperm.xlu1 %3635, %v230_v21   ;;  %599 = vperm.xlu0 %3634, %v545_v22  }
 0x126   :  { %306 = vperm.xlu1 %3635, %v231_v23   ;;  %604 = vperm.xlu0 %3634, %v546_v24  }
 0x12a   :  { %311 = vperm.xlu1 %3635, %v232_v25   ;;  %609 = vperm.xlu0 %3634, %v547_v26  }
 0x12e   :  { %619 = vperm.xlu1 %3635, %v549_v27   ;;  %614 = vperm.xlu0 %3634, %v548_v28  }
 0x132   :  { %629 = vperm.xlu1 %3635, %v551_v29   ;;  %624 = vperm.xlu0 %3634, %v550_v30  }
 0x136   :  { %639 = vperm.xlu1 %3635, %v553_v31   ;;  %634 = vperm.xlu0 %3634, %v552_v32  }
 0x179   :  { %v247_v33 = vpop.permute.xlu1 %246  ;;  %v237_v34 = vpop.permute.xlu0 %236 }
 0x17a   :  { %v339_v41 = vmul.f32 %v4326_v37, %v237_v34  ;;  %v341_v42 = vmul.f32 %v4326_v37, %v247_v33  ;;  %v442_v54 = vmul.f32 %v4334_v45, %v247_v33  ;;  %v440_v55 = vmul.f32 %v4334_v45, %v237_v34 }
 0x17b   :  { %v318_v57 = vmul.f32 %v4338_v48, %v237_v34  ;;  %v320_v2 = vmul.f32 %v4338_v48, %v247_v33 }
 0x17c   :  { %v372_v49 = vrot.slane %v339_v41, 1  ;;  %v375_v52 = vrot.slane %v341_v42, 1  ;;  %v473_v5 = vrot.slane %v440_v55, 2  ;;  %v476_v9 = vrot.slane %v442_v54, 2 }
 0x17d   :  { %v252_v35 = vpop.permute.xlu1 %251  ;;  %v242_v36 = vpop.permute.xlu0 %241 }
 0x17e   :  { %v340_v38 = vmul.f32 %v4326_v37, %v242_v36  ;;  %v342_v43 = vmul.f32 %v4326_v37, %v252_v35  ;;  %v441_v50 = vmul.f32 %v4334_v45, %v242_v36  ;;  %v443_v58 = vmul.f32 %v4334_v45, %v252_v35 }
 0x17f   :  { %v319_v63 = vmul.f32 %v4338_v48, %v242_v36  ;;  %v321_v19 = vmul.f32 %v4338_v48, %v252_v35 }
 0x180   :  { %v373_v44 = vrot.slane %v340_v38, 1  ;;  %v377_v53 = vrot.slane %v342_v43, 1  ;;  %v474_v0 = vrot.slane %v441_v50, 2  ;;  %v478_v10 = vrot.slane %v443_v58, 2 }
 0x181   :  { %v4329_v39 = vpop.permute.xlu1 %261  ;;  %v257_v40 = vpop.permute.xlu0 %256 }
 0x182   :  { %v343_v51 = vmul.f32 %v4326_v37, %v257_v40  ;;  %v374_v56 = vsel %vm371_vm0, %v372_v49, %v373_v44  ;;  %v376_v59 = vsel %vm371_vm0, %v373_v44, %v375_v52  ;;  %v344_v60 = vmul.f32 %v4326_v37, %v4329_v39 }
 0x183   :  { %v419_v3 = vadd.f32 %v374_v56, %v318_v57  ;;  %v378_v4 = vsel %vm371_vm0, %v375_v52, %v377_v53  ;;  %v420_v6 = vadd.f32 %v376_v59, %v319_v63  ;;  %v445_v7 = vmul.f32 %v4334_v45, %v4329_v39 }
 0x184   :  { %v379_v1 = vrot.slane %v343_v51, 1  ;;  %v444_v8 = vmul.f32 %v4334_v45, %v257_v40  ;;  %v381_v11 = vrot.slane %v344_v60, 1  ;;  %v475_v15 = vsel %vm472_vm1, %v473_v5, %v474_v0 }
 0x185   :  { %v4336_v46 = vpop.permute.xlu1 %564  ;;  %v267_v47 = vpop.permute.xlu0 %266  ;;  %v421_v17 = vadd.f32 %v378_v4, %v320_v2  ;;  %v322_v20 = vmul.f32 %v4338_v48, %v257_v40  ;;  %v4366_v21 = vadd.f32 %v475_v15, %v419_v3  ;;  %v477_v22 = vsel %vm472_vm1, %v474_v0, %v476_v9 }
 0x186   :  { %v345_v12 = vmul.f32 %v4326_v37, %v267_v47  ;;  %v380_v18 = vsel %vm371_vm0, %v377_v53, %v379_v1  ;;  %v482_v23 = vrot.slane %v445_v7, 2  ;;  %v480_v24 = vrot.slane %v444_v8, 2 }
 0x187   :  { %v446_v25 = vmul.f32 %v4334_v45, %v267_v47  ;;  %v4370_v26 = vadd.f32 %v477_v22, %v420_v6  ;;  %v382_v27 = vsel %vm371_vm0, %v379_v1, %v381_v11  ;;  %v479_v29 = vsel %vm472_vm1, %v476_v9, %v478_v10 }
 0x188   :  { %v383_v28 = vrot.slane %v345_v12, 1  ;;  %v422_v31 = vadd.f32 %v380_v18, %v321_v19  ;;  %v4379_v36 = vadd.f32 %v479_v29, %v421_v17  ;;  %v323_v38 = vmul.f32 %v4338_v48, %v4329_v39 }
 0x189   :  { %v272_v61 = vpop.permute.xlu1 %271  ;;  %v4350_v62 = vpop.permute.xlu0 %569  ;;  %v642_v40 = vmul.f32 %v4336_v46, %v4366_v21  ;;  %v324_v41 = vmul.f32 %v4338_v48, %v267_v47  ;;  %v423_v43 = vadd.f32 %v382_v27, %v322_v20  ;;  %v481_v50 = vsel %vm472_vm1, %v478_v10, %v480_v24 }
 0x18a   :  { %v346_v16 = vmul.f32 %v4326_v37, %v272_v61  ;;  %v643_v34 = vmul.f32 %v4350_v62, %v4370_v26  ;;  %v447_v42 = vmul.f32 %v4334_v45, %v272_v61  ;;  %v484_v51 = vrot.slane %v446_v25, 2 }
 0x18b   :  { %v4391_v52 = vadd.f32 %v481_v50, %v422_v31  ;;  %v483_v39 = vsel %vm472_vm1, %v480_v24, %v482_v23  ;;  %v384_v47 = vsel %vm371_vm0, %v381_v11, %v383_v28  ;;  %v659_v59 = vsel %vm658_vm2, %v642_v40, 0.0 }
 0x18c   :  { %v385_v33 = vrot.slane %v346_v16, 1  ;;  %v660_v55 = vsel %vm658_vm2, %v643_v34, 0.0  ;;  %v325_v60 = vmul.f32 %v4338_v48, %v272_v61  ;;  %v486_v63 = vrot.slane %v447_v42, 2 }
 0x18d   :  { %v277_v13 = vpop.permute.xlu1 %276  ;;  %v4359_v14 = vpop.permute.xlu0 %574  ;;  %v4406_v4 = vadd.f32 %v483_v39, %v423_v43  ;;  %v661_v5 = vadd.f32 %v660_v55, %v659_v59  ;;  %v424_v7 = vadd.f32 %v384_v47, %v323_v38  ;;  %v485_v8 = vsel %vm472_vm1, %v482_v23, %v484_v51 }
 0x18e   :  { %v347_v35 = vmul.f32 %v4326_v37, %v277_v13  ;;  %v644_v44 = vmul.f32 %v4359_v14, %v4379_v36  ;;  %v448_v57 = vmul.f32 %v4334_v45, %v277_v13  ;;  %v386_v58 = vsel %vm371_vm0, %v383_v28, %v385_v33 }
 0x18f   :  { %v425_v10 = vadd.f32 %v386_v58, %v324_v41  ;;  %v326_v61 = vmul.f32 %v4338_v48, %v277_v13  ;;  %v487_v19 = vsel %vm472_vm1, %v484_v51, %v486_v63  ;;  %v4424_v25 = vadd.f32 %v485_v8, %v424_v7 }
 0x190   :  { %v387_v56 = vrot.slane %v347_v35, 1  ;;  %v662_v1 = vsel %vm658_vm2, %v644_v44, 0.0  ;;  %v488_v11 = vrot.slane %v448_v57, 2 }
 0x191   :  { %v282_v30 = vpop.permute.xlu1 %281  ;;  %v4374_v32 = vpop.permute.xlu0 %579  ;;  %v663_v16 = vadd.f32 %v662_v1, %v661_v5  ;;  %v4426_v28 = vadd.f32 %v487_v19, %v425_v10 }
 0x192   :  { %v348_v49 = vmul.f32 %v4326_v37, %v282_v30  ;;  %v645_v0 = vmul.f32 %v4374_v32, %v4391_v52  ;;  %v449_v12 = vmul.f32 %v4334_v45, %v282_v30  ;;  %v388_v15 = vsel %vm371_vm0, %v385_v33, %v387_v56 }
 0x193   :  { %v327_v24 = vmul.f32 %v4338_v48, %v282_v30  ;;  %v426_v31 = vadd.f32 %v388_v15, %v325_v60  ;;  %v489_v38 = vsel %vm472_vm1, %v486_v63, %v488_v11 }
 0x194   :  { %v389_v2 = vrot.slane %v348_v49, 1  ;;  %v664_v17 = vsel %vm658_vm2, %v645_v0, 0.0  ;;  %v490_v33 = vrot.slane %v449_v12, 2 }
 0x195   :  { %v287_v53 = vpop.permute.xlu1 %286  ;;  %v4394_v54 = vpop.permute.xlu0 %584  ;;  %v665_v34 = vadd.f32 %v664_v17, %v663_v16  ;;  %v4442_v55 = vadd.f32 %v489_v38, %v426_v31 }
 0x196   :  { %v349_v3 = vmul.f32 %v4326_v37, %v287_v53  ;;  %v646_v18 = vmul.f32 %v4394_v54, %v4406_v4  ;;  %v4419_v22 = vmul.f32 %v4334_v45, %v287_v53  ;;  %v390_v13 = vsel %vm371_vm0, %v387_v56, %v389_v2 }
 0x197   :  { %v328_v40 = vmul.f32 %v4338_v48, %v287_v53  ;;  %v427_v42 = vadd.f32 %v390_v13, %v326_v61  ;;  %v491_v60 = vsel %vm472_vm1, %v488_v11, %v490_v33 }
 0x198   :  { %v391_v20 = vrot.slane %v349_v3, 1  ;;  %v666_v41 = vsel %vm658_vm2, %v646_v18, 0.0  ;;  %v492_v43 = vrot.slane %v4419_v22, 2 }
 0x199   :  { %v292_v6 = vpop.permute.xlu1 %291  ;;  %v4409_v9 = vpop.permute.xlu0 %589  ;;  %v667_v57 = vadd.f32 %v666_v41, %v665_v34  ;;  %v4452_v1 = vadd.f32 %v491_v60, %v427_v42 }
 0x19a   :  { %v350_v23 = vmul.f32 %v4326_v37, %v292_v6  ;;  %v647_v30 = vmul.f32 %v4409_v9, %v4424_v25  ;;  %v451_v49 = vmul.f32 %v4334_v45, %v292_v6  ;;  %v392_v50 = vsel %vm371_vm0, %v389_v2, %v391_v20 }
 0x19b   :  { %v329_v58 = vmul.f32 %v4338_v48, %v292_v6  ;;  %v428_v2 = vadd.f32 %v392_v50, %v327_v24  ;;  %v493_v7 = vsel %vm472_vm1, %v490_v33, %v492_v43 }
 0x19c   :  { %v393_v44 = vrot.slane %v350_v23, 1  ;;  %v668_v63 = vsel %vm658_vm2, %v647_v30, 0.0  ;;  %v494_v3 = vrot.slane %v451_v49, 2 }
 0x19d   :  { %v297_v27 = vpop.permute.xlu1 %296  ;;  %v4428_v29 = vpop.permute.xlu0 %594  ;;  %v669_v16 = vadd.f32 %v668_v63, %v667_v57  ;;  %v4467_v23 = vadd.f32 %v493_v7, %v428_v2 }
 0x19e   :  { %v351_v35 = vmul.f32 %v4326_v37, %v297_v27  ;;  %v452_v39 = vmul.f32 %v4334_v45, %v297_v27  ;;  %v648_v47 = vmul.f32 %v4428_v29, %v4426_v28  ;;  %v394_v8 = vsel %vm371_vm0, %v391_v20, %v393_v44 }
 0x19f   :  { %v330_v17 = vmul.f32 %v4338_v48, %v297_v27  ;;  %v429_v13 = vadd.f32 %v394_v8, %v328_v40  ;;  %v495_v42 = vsel %vm472_vm1, %v492_v43, %v494_v3 }
 0x1a0   :  { %v395_v51 = vrot.slane %v351_v35, 1  ;;  %v496_v10 = vrot.slane %v452_v39, 2  ;;  %v670_v6 = vsel %vm658_vm2, %v648_v47, 0.0 }
 0x1a1   :  { %v302_v53 = vpop.permute.xlu1 %301  ;;  %v4444_v56 = vpop.permute.xlu0 %599  ;;  %v671_v24 = vadd.f32 %v670_v6, %v669_v16 }
 0x1a2   :  { %v352_v59 = vmul.f32 %v4326_v37, %v302_v53  ;;  %v649_v0 = vmul.f32 %v4444_v56, %v4442_v55  ;;  %v453_v61 = vmul.f32 %v4334_v45, %v302_v53  ;;  %v396_v15 = vsel %vm371_vm0, %v393_v44, %v395_v51 }
 0x1a3   :  { %v430_v33 = vadd.f32 %v396_v15, %v329_v58  ;;  %v331_v35 = vmul.f32 %v4338_v48, %v302_v53  ;;  %v497_v30 = vsel %vm472_vm1, %v494_v3, %v496_v10 }
 0x1a4   :  { %v397_v5 = vrot.slane %v352_v59, 1  ;;  %v672_v22 = vsel %vm658_vm2, %v649_v0, 0.0  ;;  %v498_v27 = vrot.slane %v453_v61, 2  ;;  %v4483_v59 = vadd.f32 %v495_v42, %v429_v13 }
 0x1a5   :  { %v307_v11 = vpop.permute.xlu1 %306  ;;  %v4458_v12 = vpop.permute.xlu0 %604  ;;  %v673_v44 = vadd.f32 %v672_v22, %v671_v24  ;;  %v4481_v58 = vadd.f32 %v497_v30, %v430_v33 }
 0x1a6   :  { %v353_v18 = vmul.f32 %v4326_v37, %v307_v11  ;;  %v454_v19 = vmul.f32 %v4334_v45, %v307_v11  ;;  %v650_v20 = vmul.f32 %v4458_v12, %v4452_v1  ;;  %v398_v34 = vsel %vm371_vm0, %v395_v51, %v397_v5 }
 0x1a7   :  { %v431_v53 = vadd.f32 %v398_v34, %v330_v17  ;;  %v332_v60 = vmul.f32 %v4338_v48, %v307_v11  ;;  %v499_v2 = vsel %vm472_vm1, %v496_v10, %v498_v27 }
 0x1a8   :  { %v399_v31 = vrot.slane %v353_v18, 1  ;;  %v500_v49 = vrot.slane %v454_v19, 2  ;;  %v674_v50 = vsel %vm658_vm2, %v650_v20, 0.0 }
 0x1a9   :  { %v312_v38 = vpop.permute.xlu1 %311  ;;  %v4471_v41 = vpop.permute.xlu0 %609  ;;  %v675_v63 = vadd.f32 %v674_v50, %v673_v44  ;;  %v4498_v11 = vadd.f32 %v499_v2, %v431_v53 }
 0x1aa   :  { %v354_v40 = vmul.f32 %v4326_v37, %v312_v38  ;;  %v455_v39 = vmul.f32 %v4334_v45, %v312_v38  ;;  %v651_v51 = vmul.f32 %v4471_v41, %v4467_v23  ;;  %v400_v47 = vsel %vm371_vm0, %v397_v5, %v399_v31 }
 0x1ab   :  { %v432_v43 = vadd.f32 %v400_v47, %v331_v35  ;;  %v333_v3 = vmul.f32 %v4338_v48, %v312_v38  ;;  %v501_v8 = vsel %vm472_vm1, %v498_v27, %v500_v49 }
 0x1ac   :  { %v401_v57 = vrot.slane %v354_v40, 1  ;;  %v676_v0 = vsel %vm658_vm2, %v651_v51, 0.0  ;;  %v502_v6 = vrot.slane %v455_v39, 2 }
 0x1ad   :  { %v4487_v37 = vpop.permute.xlu1 %619  ;;  %v4489_v45 = vpop.permute.xlu0 %614  ;;  %v677_v61 = vadd.f32 %v676_v0, %v675_v63  ;;  %v4502_v10 = vadd.f32 %v501_v8, %v432_v43 }
 0x1ae   :  { %v653_v5 = vmul.f32 %v4487_v37, %v4481_v58  ;;  %v652_v7 = vmul.f32 %v4489_v45, %v4483_v59  ;;  %v402_v15 = vsel %vm371_vm0, %v399_v31, %v401_v57  ;;  %v434_v16 = vadd.f32 %v401_v57, %v333_v3  ;;  %v554_v57 = vld [vmem:[%s5879_s30] sm:$0xff] }
 0x1af   :  { %v433_v48 = vadd.f32 %v402_v15, %v332_v60  ;;  %v503_v33 = vsel %vm472_vm1, %v500_v49, %v502_v6  ;;  %3186 = vmatprep.mubr.msk.f32.mxu0 %vm925_vm4, %v554_v57 }
 0x1b0   :  { %v678_v17 = vsel %vm658_vm2, %v652_v7, 0.0  ;;  %v680_v20 = vsel %vm658_vm2, %v653_v5, 0.0  ;;  %v4515_v35 = vadd.f32 %v502_v6, %v434_v16 }
 0x1b1   :  { %v679_v18 = vadd.f32 %v678_v17, %v677_v61  ;;  %v4504_v19 = vpop.permute.xlu1 %629  ;;  %v4506_v22 = vpop.permute.xlu0 %624  ;;  %v4517_v27 = vadd.f32 %v503_v33, %v433_v48 }
 0x1b2   :  { %v655_v13 = vmul.f32 %v4504_v19, %v4502_v10  ;;  %v654_v24 = vmul.f32 %v4506_v22, %v4498_v11 }
 0x1b3   :  { %v681_v31 = vadd.f32 %v680_v20, %v679_v18 }
 0x1b4   :  { %v682_v34 = vsel %vm658_vm2, %v654_v24, 0.0  ;;  %v684_v44 = vsel %vm658_vm2, %v655_v13, 0.0 }
 0x1b5   :  { %v683_v38 = vadd.f32 %v682_v34, %v681_v31  ;;  %v4519_v30 = vpop.permute.xlu1 %639  ;;  %v4521_v42 = vpop.permute.xlu0 %634 }
 0x1b6   :  { %v657_v50 = vmul.f32 %v4519_v30, %v4515_v35  ;;  %v656_v40 = vmul.f32 %v4521_v42, %v4517_v27 }
 0x1b7   :  { %v685_v49 = vadd.f32 %v684_v44, %v683_v38 }
 0x1b8   :  { %v686_v39 = vsel %vm658_vm2, %v656_v40, 0.0  ;;  %v689_v47 = vsel %vm688_vm3, %v657_v50, 0.0 }
 0x1b9   :  { %v687_v51 = vadd.f32 %v686_v39, %v685_v49 }
 0x1bb   :  { %v690_v53 = vadd.f32 %v689_v47, %v687_v51 }
 0x1bd   :  { %v691_v43 = vrot.slane %v690_v53, 4 }
 0x1bf   :  { %v692_v60 = vadd.f32 %v691_v43, %v690_v53 }
 0x1c1   :  { %v693_v63 = vrot.slane %v692_v60, 2 }
 0x1c3   :  { %v694_v0 = vadd.f32 %v693_v63, %v692_v60 }
 0x1c5   :  { %v695_v2 = vrot.slane %v694_v0, 1 }
 0x1c7   :  { %v696_v3 = vadd.f32 %v695_v2, %v694_v0 }
 0x1c9   :  { %v697_v5 = vmul.f32 0.008064516, %v696_v3 }
 0x1cb   :  { %v4535_v7 = vsub.f32 %v4366_v21, %v697_v5  ;;  %v4538_v8 = vsub.f32 %v4370_v26, %v697_v5  ;;  %v4541_v6 = vsub.f32 %v4379_v36, %v697_v5  ;;  %v4544_v61 = vsub.f32 %v4391_v52, %v697_v5 }
 0x1cc   :  { %v4551_v17 = vsub.f32 %v4406_v4, %v697_v5  ;;  %v4556_v26 = vsub.f32 %v4424_v25, %v697_v5  ;;  %v4563_v18 = vsub.f32 %v4426_v28, %v697_v5  ;;  %v4569_v13 = vsub.f32 %v4442_v55, %v697_v5 }
 0x1cd   :  { %v714_v15 = vmul.f32 %v4535_v7, %v4535_v7  ;;  %v715_v16 = vmul.f32 %v4538_v8, %v4538_v8  ;;  %v716_v21 = vmul.f32 %v4541_v6, %v4541_v6  ;;  %v717_v36 = vmul.f32 %v4544_v61, %v4544_v61 }
 0x1ce   :  { %v718_v4 = vmul.f32 %v4551_v17, %v4551_v17  ;;  %v719_v25 = vmul.f32 %v4556_v26, %v4556_v26  ;;  %v4577_v28 = vsub.f32 %v4452_v1, %v697_v5  ;;  %v720_v33 = vmul.f32 %v4563_v18, %v4563_v18 }
 0x1cf   :  { %v730_v52 = vmul.f32 %v714_v15, %v4336_v46  ;;  %v731_v48 = vmul.f32 %v715_v16, %v4350_v62  ;;  %v732_v20 = vmul.f32 %v716_v21, %v4359_v14  ;;  %v733_v24 = vmul.f32 %v717_v36, %v4374_v32 }
 0x1d0   :  { %v734_v14 = vmul.f32 %v718_v4, %v4394_v54  ;;  %v4584_v38 = vsub.f32 %v4467_v23, %v697_v5  ;;  %v721_v32 = vmul.f32 %v4569_v13, %v4569_v13  ;;  %v735_v44 = vmul.f32 %v719_v25, %v4409_v9 }
 0x1d1   :  { %v746_v46 = vsel %vm658_vm2, %v730_v52, 0.0  ;;  %v747_v62 = vsel %vm658_vm2, %v731_v48, 0.0  ;;  %v749_v55 = vsel %vm658_vm2, %v732_v20, 0.0  ;;  %v751_v50 = vsel %vm658_vm2, %v733_v24, 0.0 }
 0x1d2   :  { %v748_v31 = vadd.f32 %v747_v62, %v746_v46  ;;  %v4591_v40 = vsub.f32 %v4483_v59, %v697_v5  ;;  %v722_v54 = vmul.f32 %v4577_v28, %v4577_v28  ;;  %v736_v49 = vmul.f32 %v720_v33, %v4428_v29 }
 0x1d3   :  { %v753_v39 = vsel %vm658_vm2, %v734_v14, 0.0  ;;  %v4598_v51 = vsub.f32 %v4481_v58, %v697_v5  ;;  %v723_v9 = vmul.f32 %v4584_v38, %v4584_v38  ;;  %v737_v47 = vmul.f32 %v721_v32, %v4444_v56 }
 0x1d4   :  { %v750_v34 = vadd.f32 %v749_v55, %v748_v31  ;;  %v755_v53 = vsel %vm658_vm2, %v735_v44, 0.0  ;;  %v4605_v57 = vsub.f32 %v4498_v11, %v697_v5  ;;  %v724_v29 = vmul.f32 %v4591_v40, %v4591_v40 }
 0x1d5   :  { %v738_v43 = vmul.f32 %v722_v54, %v4458_v12  ;;  %v757_v60 = vsel %vm658_vm2, %v736_v49, 0.0  ;;  %v4612_v63 = vsub.f32 %v4502_v10, %v697_v5  ;;  %v725_v56 = vmul.f32 %v4598_v51, %v4598_v51 }
 0x1d6   :  { %v752_v1 = vadd.f32 %v751_v50, %v750_v34  ;;  %v739_v0 = vmul.f32 %v723_v9, %v4471_v41  ;;  %v759_v2 = vsel %vm658_vm2, %v737_v47, 0.0  ;;  %v712_v3 = vsub.f32 %v4517_v27, %v697_v5 }
 0x1d7   :  { %v726_v15 = vmul.f32 %v4605_v57, %v4605_v57  ;;  %v740_v12 = vmul.f32 %v724_v29, %v4489_v45  ;;  %v761_v16 = vsel %vm658_vm2, %v738_v43, 0.0  ;;  %v4624_v10 = vsub.f32 %v4515_v35, %v697_v5  ;;  %v4656_v29 = vld [vmem:[#allocation5] ss:$0 sm:$0xff] }
 0x1d8   :  { %v754_v23 = vadd.f32 %v753_v39, %v752_v1  ;;  %v727_v36 = vmul.f32 %v4612_v63, %v4612_v63  ;;  %v741_v41 = vmul.f32 %v725_v56, %v4487_v37  ;;  %v763_v52 = vsel %vm658_vm2, %v739_v0, 0.0 }
 0x1d9   :  { %v728_v27 = vmul.f32 %v712_v3, %v712_v3  ;;  %v742_v4 = vmul.f32 %v726_v15, %v4506_v22  ;;  %v765_v20 = vsel %vm658_vm2, %v740_v12, 0.0  ;;  %v729_v25 = vmul.f32 %v4624_v10, %v4624_v10 }
 0x1da   :  { %v756_v59 = vadd.f32 %v755_v53, %v754_v23  ;;  %v743_v35 = vmul.f32 %v727_v36, %v4504_v19  ;;  %v767_v5 = vsel %vm658_vm2, %v741_v41, 0.0 }
 0x1db   :  { %v744_v46 = vmul.f32 %v728_v27, %v4521_v42  ;;  %v769_v37 = vsel %vm658_vm2, %v742_v4, 0.0  ;;  %v745_v31 = vmul.f32 %v729_v25, %v4519_v30  ;;  %v4647_v30 = vld [vmem:[%s5880_s27] ss:$0 sm:$0xff] }
 0x1dc   :  { %v758_v58 = vadd.f32 %v757_v60, %v756_v59  ;;  %v771_v22 = vsel %vm658_vm2, %v743_v35, 0.0 }
 0x1dd   :  { %v773_v14 = vsel %vm658_vm2, %v744_v46, 0.0  ;;  %v775_v34 = vsel %vm688_vm3, %v745_v31, 0.0 }
 0x1de   :  { %v760_v11 = vadd.f32 %v759_v2, %v758_v58 }
 0x1e0   :  { %v762_v21 = vadd.f32 %v761_v16, %v760_v11 }
 0x1e2   :  { %v764_v48 = vadd.f32 %v763_v52, %v762_v21 }
 0x1e4   :  { %v766_v45 = vadd.f32 %v765_v20, %v764_v48 }
 0x1e6   :  { %v768_v24 = vadd.f32 %v767_v5, %v766_v45 }
 0x1e8   :  { %v770_v62 = vadd.f32 %v769_v37, %v768_v24 }
 0x1ea   :  { %v772_v33 = vadd.f32 %v771_v22, %v770_v62 }
 0x1ec   :  { %v774_v55 = vadd.f32 %v773_v14, %v772_v33 }
 0x1ee   :  { %v776_v32 = vadd.f32 %v775_v34, %v774_v55 }
 0x1f0   :  { %v777_v19 = vrot.slane %v776_v32, 4 }
 0x1f2   :  { %v778_v44 = vadd.f32 %v777_v19, %v776_v32 }
 0x1f4   :  { %v779_v50 = vrot.slane %v778_v44, 2 }
 0x1f6   :  { %v780_v1 = vadd.f32 %v779_v50, %v778_v44 }
 0x1f8   :  { %v781_v54 = vrot.slane %v780_v1, 1 }
 0x1fa   :  { %v782_v42 = vadd.f32 %v781_v54, %v780_v1 }
 0x1fc   :  { %v783_v49 = vmul.f32 0.008064516, %v782_v42 }
 0x1fe   :  { %v784_v39 = vadd.f32 1e-05, %v783_v49 }
 0x200   :  { %3636 = vrsqrt.f32 %v784_v39 }
 0x20a   :  { %v4642_v23 = vpop.eup %3636 }
 0x20b   :  { %v800_v9 = vmul.f32 %v4642_v23, %v712_v3  ;;  %v786_v47 = vmul.f32 %v4642_v23, %v4535_v7  ;;  %v787_v53 = vmul.f32 %v4642_v23, %v4538_v8  ;;  %v788_v59 = vmul.f32 %v4642_v23, %v4541_v6 }
 0x20c   :  { %v789_v43 = vmul.f32 %v4642_v23, %v4544_v61  ;;  %v790_v60 = vmul.f32 %v4642_v23, %v4551_v17  ;;  %v791_v58 = vmul.f32 %v4642_v23, %v4556_v26  ;;  %v792_v7 = vmul.f32 %v4642_v23, %v4563_v18 }
 0x20d   :  { %v808_v56 = vmul.f32 %v4647_v30, %v786_v47  ;;  %v809_v8 = vmul.f32 %v4647_v30, %v787_v53  ;;  %v810_v6 = vmul.f32 %v4647_v30, %v788_v59  ;;  %v822_v11 = vmul.f32 %v4647_v30, %v800_v9 }
 0x20e   :  { %v811_v0 = vmul.f32 %v4647_v30, %v789_v43  ;;  %v812_v2 = vmul.f32 %v4647_v30, %v790_v60  ;;  %v813_v61 = vmul.f32 %v4647_v30, %v791_v58  ;;  %v814_v17 = vmul.f32 %v4647_v30, %v792_v7 }
 0x20f   :  { %v830_v26 = vadd.f32 %v4656_v29, %v808_v56  ;;  %v831_v18 = vadd.f32 %v4656_v29, %v809_v8  ;;  %v832_v3 = vadd.f32 %v4656_v29, %v810_v6  ;;  %v793_v48 = vmul.f32 %v4642_v23, %v4569_v13 }
 0x210   :  { %v833_v15 = vadd.f32 %v4656_v29, %v811_v0  ;;  %v834_v12 = vadd.f32 %v4656_v29, %v812_v2  ;;  %v835_v16 = vadd.f32 %v4656_v29, %v813_v61  ;;  %v4681_v21 = vadd.f32 %v4656_v29, %v814_v17 }
 0x211   :  { %v862_v36 = vrot.slane %v830_v26, 1  ;;  %v863_v41 = vrot.slane %v831_v18, 1  ;;  %v865_v52 = vrot.slane %v832_v3, 1  ;;  %v794_v5 = vmul.f32 %v4642_v23, %v4577_v28 }
 0x212   :  { %v867_v27 = vrot.slane %v833_v15, 1  ;;  %v869_v4 = vrot.slane %v834_v12, 1  ;;  %v871_v20 = vrot.slane %v835_v16, 1  ;;  %v873_v45 = vrot.slane %v4681_v21, 1 }
 0x213   :  { %v864_v25 = vsel %vm371_vm0, %v862_v36, %v863_v41  ;;  %v866_v35 = vsel %vm371_vm0, %v863_v41, %v865_v52  ;;  %v815_v24 = vmul.f32 %v4647_v30, %v793_v48  ;;  %v816_v19 = vmul.f32 %v4647_v30, %v794_v5 }
 0x214   :  { %v909_v46 = vmax.f32 %v830_v26, %v864_v25  ;;  %v910_v37 = vmax.f32 %v831_v18, %v866_v35  ;;  %v868_v62 = vsel %vm371_vm0, %v865_v52, %v867_v27  ;;  %v870_v13 = vsel %vm371_vm0, %v867_v27, %v869_v4 }
 0x215   :  { %v911_v31 = vmax.f32 %v832_v3, %v868_v62  ;;  %v912_v22 = vmax.f32 %v833_v15, %v870_v13  ;;  %v872_v33 = vsel %vm371_vm0, %v869_v4, %v871_v20  ;;  %v874_v14 = vsel %vm371_vm0, %v871_v20, %v873_v45 }
 0x216   :  { %v3239_v55 = vpack.c.bf16 %v910_v37, %v909_v46  ;;  %v913_v34 = vmax.f32 %v834_v12, %v872_v33  ;;  %v914_v32 = vmax.f32 %v835_v16, %v874_v14  ;;  %v4697_v28 = vadd.f32 %v4656_v29, %v822_v11  ;;  %v557_v33 = vld [vmem:[%s5879_s30 + $0x18] sm:$0xff]  ;;  %v558_v14 = vld [vmem:[%s5879_s30 + $0x20] sm:$0xff] }
 0x217   :  { %v837_v44 = vadd.f32 %v4656_v29, %v815_v24  ;;  %v795_v50 = vmul.f32 %v4642_v23, %v4584_v38  ;;  %v796_v1 = vmul.f32 %v4642_v23, %v4591_v40  ;;  %v3243_v54 = vpack.c.bf16 %v912_v22, %v911_v31  ;;  %v555_v31 = vld [vmem:[%s5879_s30 + $0x8] sm:$0xff]  ;;  %v556_v22 = vld [vmem:[%s5879_s30 + $0x10] sm:$0xff] }
 0x218   :  { %3240 = vmatprep.subr.bf16.mxu0 %v3239_v55  ;;  %v838_v42 = vadd.f32 %v4656_v29, %v816_v19  ;;  %v797_v49 = vmul.f32 %v4642_v23, %v4598_v51  ;;  %v798_v39 = vmul.f32 %v4642_v23, %v4605_v57  ;;  %v799_v38 = vmul.f32 %v4642_v23, %v4612_v63  ;;  %v1137_v19 = vld [vmem:[%s5881_s3] sm:$0xff] }
 0x219   :  { %3242 = vmatpush3.bf16.msra.mxu0 %v3239_v55  ;;  %v875_v9 = vrot.slane %v837_v44, 1  ;;  %v817_v47 = vmul.f32 %v4647_v30, %v795_v50  ;;  %v818_v53 = vmul.f32 %v4647_v30, %v796_v1  ;;  %v3247_v40 = vpack.c.bf16 %v914_v32, %v913_v34  ;;  %v559_v55 = vld [vmem:[%s5879_s30 + $0x28] sm:$0xff]  ;;  %v560_v34 = vld [vmem:[%s5879_s30 + $0x30] sm:$0xff]  ;;  %v561_v32 = vld [vmem:[%s5879_s30 + $0x38] sm:$0x3f] }
 0x21a   :  { %3244 = vmatprep.subr.bf16.mxu0 %v3243_v54  ;;  %v877_v59 = vrot.slane %v838_v42, 1  ;;  %v819_v43 = vmul.f32 %v4647_v30, %v797_v49  ;;  %v820_v60 = vmul.f32 %v4647_v30, %v798_v39  ;;  %v821_v7 = vmul.f32 %v4647_v30, %v799_v38  ;;  %v1141_v49 = vld [vmem:[%s5881_s3 + $0x20] sm:$0xff]  ;;  %v1142_v39 = vld [vmem:[%s5881_s3 + $0x28] sm:$0xff] }
 0x21b   :  { %v876_v51 = vsel %vm371_vm0, %v873_v45, %v875_v9  ;;  %v839_v57 = vadd.f32 %v4656_v29, %v817_v47  ;;  %v840_v58 = vadd.f32 %v4656_v29, %v818_v53  ;;  %v801_v18 = vmul.f32 %v4642_v23, %v4624_v10  ;;  %v1143_v47 = vld [vmem:[%s5881_s3 + $0x30] sm:$0xff]  ;;  %v1144_v53 = vld [vmem:[%s5881_s3 + $0x38] sm:$0xff] }
 0x21c   :  { %v878_v56 = vsel %vm371_vm0, %v875_v9, %v877_v59  ;;  %v915_v8 = vmax.f32 %v4681_v21, %v876_v51  ;;  %v841_v63 = vadd.f32 %v4656_v29, %v819_v43  ;;  %v842_v6 = vadd.f32 %v4656_v29, %v820_v60  ;;  %v1147_v60 = vld [vmem:[%s5881_s3 + $0x50] sm:$0xff]  ;;  %v1148_v51 = vld [vmem:[%s5881_s3 + $0x58] sm:$0xff] }
 0x21d   :  { %3246 = vmatpush3.bf16.msra.mxu0 %v3243_v54  ;;  %v916_v0 = vmax.f32 %v837_v44, %v878_v56  ;;  %v879_v2 = vrot.slane %v839_v57, 1  ;;  %v881_v61 = vrot.slane %v840_v58, 1  ;;  %v843_v17 = vadd.f32 %v4656_v29, %v821_v7  ;;  %v1139_v44 = vld [vmem:[%s5881_s3 + $0x10] sm:$0xff]  ;;  %v1140_v54 = vld [vmem:[%s5881_s3 + $0x18] sm:$0xff]  ;;  %v1150_v7 = vld [vmem:[%s5881_s3 + $0x68] sm:$0xff] }
 0x21e   :  { %3248 = vmatprep.subr.bf16.mxu0 %v3247_v40  ;;  %v883_v11 = vrot.slane %v841_v63, 1  ;;  %v885_v26 = vrot.slane %v842_v6, 1  ;;  %v889_v48 = vrot.slane %v4697_v28, 1  ;;  %v823_v27 = vmul.f32 %v4647_v30, %v801_v18  ;;  %v1157_v18 = vld [vmem:[%s5881_s3 + $0xa0] sm:$0xff] }
 0x21f   :  { %v880_v3 = vsel %vm371_vm0, %v877_v59, %v879_v2  ;;  %v882_v15 = vsel %vm371_vm0, %v879_v2, %v881_v61  ;;  %v3251_v12 = vpack.c.bf16 %v916_v0, %v915_v8  ;;  %v887_v52 = vrot.slane %v843_v17, 1  ;;  %v1146_v59 = vld [vmem:[%s5881_s3 + $0x48] sm:$0xff]  ;;  %v1151_v8 = vld [vmem:[%s5881_s3 + $0x70] sm:$0xff]  ;;  %v1153_v0 = vld [vmem:[%s5881_s3 + $0x80] sm:$0xff] }
 0x220   :  { %v917_v16 = vmax.f32 %v838_v42, %v880_v3  ;;  %v918_v21 = vmax.f32 %v839_v57, %v882_v15  ;;  %v884_v36 = vsel %vm371_vm0, %v881_v61, %v883_v11  ;;  %v886_v41 = vsel %vm371_vm0, %v883_v11, %v885_v26  ;;  %v1154_v2 = vld [vmem:[%s5881_s3 + $0x88] sm:$0xff]  ;;  %v1156_v11 = vld [vmem:[%s5881_s3 + $0x98] sm:$0xff] }
 0x221   :  { %3250 = vmatpush3.bf16.msra.mxu0 %v3247_v40  ;;  %v919_v10 = vmax.f32 %v840_v58, %v884_v36  ;;  %v920_v23 = vmax.f32 %v841_v63, %v886_v41  ;;  %v845_v20 = vadd.f32 %v4656_v29, %v823_v27  ;;  %v888_v45 = vsel %vm371_vm0, %v885_v26, %v887_v52  ;;  %v1145_v40 = vld [vmem:[%s5881_s3 + $0x40] sm:$0xff]  ;;  %v1152_v63 = vld [vmem:[%s5881_s3 + $0x78] sm:$0xff]  ;;  %v1158_v3 = vld [vmem:[%s5881_s3 + $0xa8] sm:$0xff] }
 0x222   :  { %3252 = vmatprep.subr.bf16.mxu0 %v3251_v12  ;;  %v3255_v4 = vpack.c.bf16 %v918_v21, %v917_v16  ;;  %v890_v25 = vsel %vm371_vm0, %v887_v52, %v889_v48  ;;  %v921_v24 = vmax.f32 %v842_v6, %v888_v45  ;;  %v3998_v50 = vmov 0.0|0.0   ;;  %v1149_v58 = vld [vmem:[%s5881_s3 + $0x60] sm:$0xff]  ;;  %v1160_v16 = vld [vmem:[%s5881_s3 + $0xb8] sm:$0xff] }
 0x223   :  { %v891_v35 = vrot.slane %v845_v20, 1  ;;  %v3259_v5 = vpack.c.bf16 %v920_v23, %v919_v10  ;;  %v922_v46 = vmax.f32 %v843_v17, %v890_v25  ;;  %3273 = vmatprep.subr.bf16.mxu1 %v3998_v50  ;;  %v3277_v42 = vpack.c.bf16 %v1140_v54, %v1139_v44  ;;  %v1155_v17 = vld [vmem:[%s5881_s3 + $0x90] sm:$0xff] }
 0x224   :  { %v3280_v9 = vpack.c.bf16 %v1142_v39, %v1141_v49  ;;  %v3283_v38 = vpack.c.bf16 %v1144_v53, %v1143_v47  ;;  %v3286_v43 = vpack.c.bf16 %v1146_v59, %v1145_v40  ;;  %v3289_v57 = vpack.c.bf16 %v1148_v51, %v1147_v60  ;;  %v1284_v39 = vld [vmem:[#allocation11] sm:$0xff]  ;;  %v1285_v47 = vld [vmem:[#allocation11 + $0x8] sm:$0xff]  ;;  %v1290_v40 = vld [vmem:[#allocation11 + $0x30] sm:$0xff] }
 0x225   :  { %3254 = vmatpush3.bf16.msra.mxu0 %v3251_v12  ;;  %v892_v37 = vsel %vm371_vm0, %v889_v48, %v891_v35  ;;  %v3263_v30 = vpack.c.bf16 %v922_v46, %v921_v24  ;;  %v924_v13 = vmax.f32 %v845_v20, %v891_v35  ;;  %v3292_v56 = vpack.c.bf16 %v1150_v7, %v1149_v58  ;;  %v1159_v12 = vld [vmem:[%s5881_s3 + $0xb0] sm:$0xff]  ;;  %v1291_v60 = vld [vmem:[#allocation11 + $0x38] sm:$0xf]  ;;  %v1887_v58 = vld [vmem:[#allocation16 + $0x18] sm:$0x3] }
 0x226   :  { %3256 = vmatprep.subr.bf16.mxu0 %v3255_v4  ;;  %v923_v62 = vmax.f32 %v4697_v28, %v892_v37  ;;  %v1138_v28 = vld [vmem:[%s5881_s3 + $0x8] sm:$0xff]  ;;  %v3295_v6 = vpack.c.bf16 %v1152_v63, %v1151_v8  ;;  %v3298_v61 = vpack.c.bf16 %v1154_v2, %v1153_v0  ;;  %v3301_v26 = vpack.c.bf16 %v1156_v11, %v1155_v17  ;;  %s3999_s3 = smov 64   ;;  %v1289_v59 = vld [vmem:[#allocation11 + $0x28] sm:$0xff]  ;;  %v1886_v51 = vld [vmem:[#allocation16 + $0x10] sm:$0xff] }
 0x227   :  { %v3274_v1 = vpack.c.bf16 %v1138_v28, %v1137_v19  ;;  %v3304_v15 = vpack.c.bf16 %v1158_v3, %v1157_v18  ;;  %v3307_v21 = vpack.c.bf16 %v1160_v16, %v1159_v12  ;;  %v1288_v53 = vld [vmem:[#allocation11 + $0x20] sm:$0xff] }
 0x228   :  { %v3267_v29 = vpack.c.bf16 %v924_v13, %v923_v62 }
 0x229   :  { %3258 = vmatpush3.bf16.msra.mxu0 %v3255_v4  ;;  %3275 = vmatpush1.bf16.msra.mxu1 %v3274_v1 }
 0x22a   :  { %3260 = vmatprep.subr.bf16.mxu0 %v3259_v5  ;;  %3276 = vmatprep.subr.bf16.mxu1 %v3998_v50 }
 0x22d   :  { %3262 = vmatpush3.bf16.msra.mxu0 %v3259_v5  ;;  %3278 = vmatpush1.bf16.msra.mxu1 %v3277_v42 }
 0x22e   :  { %3264 = vmatprep.subr.bf16.mxu0 %v3263_v30  ;;  %3279 = vmatprep.subr.bf16.mxu1 %v3998_v50 }
 0x231   :  { %3266 = vmatpush3.bf16.msra.mxu0 %v3263_v30  ;;  %3281 = vmatpush1.bf16.msra.mxu1 %v3280_v9  ;;  %v1286_v9 = vld [vmem:[#allocation11 + $0x10] sm:$0xff] }
 0x232   :  { %3269 = vmatprep.subr.msk.bf16.mxu0 %vm3268_vm7, %v3267_v29  ;;  %3282 = vmatprep.subr.bf16.mxu1 %v3998_v50 }
 0x235   :  { %3272 = vmatpush3.bf16.msk.msra.mxu0 %vm3268_vm7, %v3267_v29  ;;  %3284 = vmatpush1.bf16.msra.mxu1 %v3283_v38  ;;  %v1287_v38 = vld [vmem:[#allocation11 + $0x18] sm:$0xff] }
 0x236   :  { %3285 = vmatprep.subr.bf16.mxu1 %v3998_v50 }
 0x238   :  { %3187 = vmatmul.mubr.msk.f32.vlgmr.msra.gmra.mrb[0].mxu0 %vm925_vm4, %v555_v31 }
 0x239   :  { %3189 = vmatprep.mubr.msk.f32.mxu0 %vm925_vm4, %v556_v22  ;;  %3287 = vmatpush1.bf16.msra.mxu1 %v3286_v43  ;;  %v1884_v43 = vld [vmem:[#allocation16] sm:$0xff] }
 0x23a   :  { %3288 = vmatprep.subr.bf16.mxu1 %v3998_v50 }
 0x23c   :  { %3190 = vmatmul.mubr.msk.f32.gmra.mrb[2].mxu0 %vm925_vm4, %v557_v33 }
 0x23d   :  { %3192 = vmatprep.mubr.msk.f32.mxu0 %vm925_vm4, %v558_v14  ;;  %3290 = vmatpush1.bf16.msra.mxu1 %v3289_v57  ;;  %v1885_v57 = vld [vmem:[#allocation16 + $0x8] sm:$0xff] }
 0x23e   :  { %3291 = vmatprep.subr.bf16.mxu1 %v3998_v50 }
 0x240   :  { %3193 = vmatmul.mubr.msk.f32.gmra.mrb[4].mxu0 %vm925_vm4, %v559_v55 }
 0x241   :  { %3195 = vmatprep.mubr.msk.f32.mxu0 %vm925_vm4, %v560_v34  ;;  %3293 = vmatpush1.bf16.msra.mxu1 %v3292_v56 }
 0x242   :  { %3294 = vmatprep.subr.bf16.mxu1 %v3998_v50 }
 0x244   :  { %3196 = vmatmul.mubr.msk.f32.gmra.mrb[6].mxu0 %vm925_vm4, %v561_v32 }
 0x245   :  { %3296 = vmatpush1.bf16.msra.mxu1 %v3295_v6 }
 0x246   :  { %3297 = vmatprep.subr.bf16.mxu1 %v3998_v50 }
 0x249   :  { %3299 = vmatpush1.bf16.msra.mxu1 %v3298_v61 }
 0x24a   :  { %3300 = vmatprep.subr.bf16.mxu1 %v3998_v50 }
 0x24d   :  { %3302 = vmatpush1.bf16.msra.mxu1 %v3301_v26 }
 0x24e   :  { %3303 = vmatprep.subr.bf16.mxu1 %v3998_v50 }
 0x251   :  { %3305 = vmatpush1.bf16.msra.mxu1 %v3304_v15 }
 0x252   :  { %3306 = vmatprep.subr.bf16.mxu1 %v3998_v50 }
 0x255   :  { %3308 = vmatpush1.bf16.msra.mxu1 %v3307_v21 }
 0x30b   :  { %v3188_v36 = vpop.f32.mrb[0].mxu0 }
 0x30c   :  { %v4850_v41 = vmax.f32 %v3188_v36, 0.0  ;;  %v1020_v52 = vpop.f32.mrb[1].mxu0 }
 0x30d   :  { %v4852_v48 = vmax.f32 %v1020_v52, 0.0 }
 0x30e   :  { %v1076_v27 = vrot.slane %v4850_v41, 1  ;;  %v1115_v4 = vrot.slane %v4850_v41, 2 }
 0x30f   :  { %v1075_v10 = vrot.slane %v4852_v48, 1  ;;  %v3191_v23 = vpop.f32.mrb[2].mxu0  ;;  %v1114_v20 = vrot.slane %v4852_v48, 2 }
 0x310   :  { %v4858_v45 = vmax.f32 %v3191_v23, 0.0  ;;  %v1030_v25 = vpop.f32.mrb[3].mxu0 }
 0x311   :  { %v4860_v35 = vmax.f32 %v1030_v25, 0.0  ;;  %v1116_v5 = vsel %vm472_vm1, %v1114_v20, %v1115_v4  ;;  %v1077_v24 = vsel %vm371_vm0, %v1075_v10, %v1076_v27 }
 0x312   :  { %v1080_v46 = vrot.slane %v4858_v45, 1  ;;  %3077 = vmatprep.mubr.msk.f32.mxu1 %vm658_vm2, %v1116_v5  ;;  %1090 = vrot.lane.b32.xlu0 %v1077_v24, %s3999_s3  ;;  %v1119_v63 = vrot.slane %v4858_v45, 2 }
 0x313   :  { %v1078_v37 = vrot.slane %v4860_v35, 1  ;;  %v3194_v30 = vpop.f32.mrb[4].mxu0  ;;  %v1117_v7 = vrot.slane %v4860_v35, 2 }
 0x314   :  { %v4870_v62 = vmax.f32 %v3194_v30, 0.0  ;;  %v1040_v13 = vpop.f32.mrb[5].mxu0  ;;  %v1608_v30 = vld [vmem:[%s5850_s11] sm:$0xff] }
 0x315   :  { %v4872_v29 = vmax.f32 %v1040_v13, 0.0  ;;  %v1081_v31 = vsel %vm371_vm0, %v1078_v37, %v1080_v46  ;;  %v1079_v22 = vsel %vm371_vm0, %v1076_v27, %v1078_v37  ;;  %v1118_v6 = vsel %vm472_vm1, %v1115_v4, %v1117_v7  ;;  %v1611_v37 = vld [vmem:[%s5850_s11 + $0x18] sm:$0xff] }
 0x316   :  { %v1084_v33 = vrot.slane %v4870_v62, 1  ;;  %1094 = vrot.lane.b32.xlu0 %v1081_v31, %s3999_s3  ;;  %1092 = vrot.lane.b32.xlu1 %v1079_v22, %s3999_s3  ;;  %v1120_v11 = vsel %vm472_vm1, %v1117_v7, %v1119_v63  ;;  %v1123_v18 = vrot.slane %v4870_v62, 2  ;;  %v1613_v31 = vld [vmem:[%s5850_s11 + $0x28] sm:$0xff]  ;;  %v1615_v22 = vld [vmem:[%s5850_s11 + $0x38] sm:$0xff] }
 0x317   :  { %v1082_v14 = vrot.slane %v4872_v29, 1  ;;  %v3197_v55 = vpop.f32.mrb[6].mxu0  ;;  %v1121_v61 = vrot.slane %v4872_v29, 2  ;;  %v1620_v7 = vld [vmem:[%s5850_s11 + $0x60] sm:$0xff] }
 0x318   :  { %v4880_v34 = vmax.f32 %v3197_v55, 0.0  ;;  %v1050_v32 = vpop.f32.mrb[7].mxu0  ;;  %v1612_v55 = vld [vmem:[%s5850_s11 + $0x20] sm:$0xff] }
 0x319   :  { %v4882_v19 = vmax.f32 %v1050_v32, 0.0  ;;  %v1085_v28 = vsel %vm371_vm0, %v1082_v14, %v1084_v33  ;;  %v1083_v44 = vsel %vm371_vm0, %v1080_v46, %v1082_v14  ;;  %v1122_v15 = vsel %vm472_vm1, %v1119_v63, %v1121_v61  ;;  %v1609_v46 = vld [vmem:[%s5850_s11 + $0x8] sm:$0xff] }
 0x31a   :  { %v1088_v1 = vrot.slane %v4880_v34, 1  ;;  %1098 = vrot.lane.b32.xlu0 %v1085_v28, %s3999_s3  ;;  %1096 = vrot.lane.b32.xlu1 %v1083_v44, %s3999_s3  ;;  %v1124_v36 = vsel %vm472_vm1, %v1121_v61, %v1123_v18  ;;  %v1127_v52 = vrot.slane %v4880_v34, 2  ;;  %v3327_v13 = vpack.c.bf16 %v1611_v37, %v1609_v46  ;;  %v1617_v32 = vld [vmem:[%s5850_s11 + $0x48] sm:$0xff]  ;;  %v1619_v44 = vld [vmem:[%s5850_s11 + $0x58] sm:$0xff] }
 0x31b   :  { %v1086_v54 = vrot.slane %v4882_v19, 1  ;;  %v1125_v16 = vrot.slane %v4882_v19, 2  ;;  %v3331_v14 = vpack.c.bf16 %v1615_v22, %v1613_v31  ;;  %v1625_v63 = vld [vmem:[%s5850_s11 + $0x88] sm:$0xff] }
 0x31c   :  { %3328 = vmatprep.subr.bf16.mxu0 %v3327_v13  ;;  %v1632_v13 = vld [vmem:[%s5850_s11 + $0xc0] sm:$0xff]  ;;  %v1637_v22 = vld [vmem:[%s5850_s11 + $0xe8] sm:$0xff] }
 0x31d   :  { %v1089_v42 = vsel %vm371_vm0, %v1086_v54, %v1088_v1  ;;  %v1087_v49 = vsel %vm371_vm0, %v1084_v33, %v1086_v54  ;;  %v1126_v27 = vsel %vm472_vm1, %v1123_v18, %v1125_v16  ;;  %v1128_v23 = vsel %vm472_vm1, %v1125_v16, %v1127_v52  ;;  %v1624_v18 = vld [vmem:[%s5850_s11 + $0x80] sm:$0xff]  ;;  %v1631_v16 = vld [vmem:[%s5850_s11 + $0xb8] sm:$0xff] }
 0x31e   :  { %1102 = vrot.lane.b32.xlu0 %v1089_v42, %s3999_s3  ;;  %1100 = vrot.lane.b32.xlu1 %v1087_v49, %s3999_s3 }
 0x322   :  { %1298 = vperm.xlu0 %3634, %v1284_v39   ;;  %1104 = vrot.lane.b32.xlu1 %v1088_v1, %s3999_s3  ;;  %v3335_v39 = vpack.c.bf16 %v1619_v44, %v1617_v32 }
 0x326   :  { %1308 = vperm.xlu0 %3634, %v1286_v9   ;;  %1303 = vperm.xlu1 %3635, %v1285_v47   ;;  %v1616_v9 = vld [vmem:[%s5850_s11 + $0x40] sm:$0xff]  ;;  %v1618_v47 = vld [vmem:[%s5850_s11 + $0x50] sm:$0xff] }
 0x32a   :  { %1318 = vperm.xlu0 %3634, %v1288_v53   ;;  %1313 = vperm.xlu1 %3635, %v1287_v38   ;;  %v1621_v38 = vld [vmem:[%s5850_s11 + $0x68] sm:$0xff] }
 0x32e   :  { %1328 = vperm.xlu0 %3634, %v1290_v40   ;;  %1323 = vperm.xlu1 %3635, %v1289_v59   ;;  %v1623_v40 = vld [vmem:[%s5850_s11 + $0x78] sm:$0xff] }
 0x332   :  { %1892 = vperm.xlu0 %3634, %v1884_v43   ;;  %1333 = vperm.xlu1 %3635, %v1291_v60  }
 0x336   :  { %1902 = vperm.xlu0 %3634, %v1886_v51   ;;  %1897 = vperm.xlu1 %3635, %v1885_v57   ;;  %v3337_v57 = vpack.c.bf16 %v1618_v47, %v1616_v9  ;;  %v1643_v9 = vld [vmem:[%s5850_s11 + $0x118] sm:$0xff] }
 0x33a   :  { %1907 = vperm.xlu1 %3635, %v1887_v58   ;;  %v3339_v58 = vpack.c.bf16 %v1623_v40, %v1621_v38 }
 0x384   :  { %v1091_v56 = vpop.permute.xlu0 %1090 }
 0x385   :  { %v1129_v8 = vsel %vm658_vm2, %v4852_v48, %v1091_v56  ;;  %v1622_v56 = vld [vmem:[%s5850_s11 + $0x70] sm:$0xff] }
 0x386   :  { %1242 = vmatmul.mubr.f32.vlgmr.msra.gmra.mrb[0].mxu1 %v1129_v8 }
 0x387   :  { %3078 = vmatprep.mubr.msk.f32.mxu1 %vm658_vm2, %v1118_v6  ;;  %v1627_v6 = vld [vmem:[%s5850_s11 + $0x98] sm:$0xff] }
 0x388   :  { %v1093_v0 = vpop.permute.xlu1 %1092  ;;  %v1095_v17 = vpop.permute.xlu0 %1094 }
 0x389   :  { %v1130_v2 = vsel %vm658_vm2, %v4850_v41, %v1093_v0  ;;  %v1131_v26 = vsel %vm658_vm2, %v4860_v35, %v1095_v17  ;;  %v1292_v35 = vld [vmem:[%s5849_s10] sm:$0xff] }
 0x38a   :  { %1247 = vmatmul.mubr.f32.gmra.mrb[2].mxu1 %v1130_v2 }
 0x38b   :  { %3079 = vmatprep.mubr.msk.f32.mxu1 %vm658_vm2, %v1120_v11  ;;  %v3341_v11 = vpack.c.bf16 %v1622_v56, %v1620_v7  ;;  %v1645_v56 = vld [vmem:[%s5850_s11 + $0x128] sm:$0xff] }
 0x38c   :  { %v1097_v3 = vpop.permute.xlu1 %1096  ;;  %v1099_v21 = vpop.permute.xlu0 %1098 }
 0x38d   :  { %v1132_v12 = vsel %vm658_vm2, %v4858_v45, %v1097_v3  ;;  %v1133_v41 = vsel %vm658_vm2, %v4872_v29, %v1099_v21  ;;  %v1610_v29 = vld [vmem:[%s5850_s11 + $0x10] sm:$0xff] }
 0x38e   :  { %1252 = vmatmul.mubr.f32.gmra.mrb[4].mxu1 %v1131_v26  ;;  %v3329_v33 = vpack.c.bf16 %v1610_v29, %v1608_v30  ;;  %v3343_v26 = vpack.c.bf16 %v1627_v6, %v1625_v63  ;;  %v1626_v3 = vld [vmem:[%s5850_s11 + $0x90] sm:$0xff] }
 0x38f   :  { %3080 = vmatprep.mubr.msk.f32.mxu1 %vm658_vm2, %v1122_v15  ;;  %v1634_v29 = vld [vmem:[%s5850_s11 + $0xd0] sm:$0xff] }
 0x390   :  { %v1101_v48 = vpop.permute.xlu1 %1100  ;;  %v1103_v10 = vpop.permute.xlu0 %1102  ;;  %3330 = vmatpush1.bf16.msra.mxu0 %v3329_v33  ;;  %v1639_v33 = vld [vmem:[%s5850_s11 + $0xf8] sm:$0xff]  ;;  %v3353_v44 = vpack.c.bf16 %v1634_v29, %v1632_v13  ;;  %v1656_v29 = vld [vmem:[%s5850_s11 + $0x180] sm:$0xff] }
 0x391   :  { %v1134_v4 = vsel %vm658_vm2, %v4870_v62, %v1101_v48  ;;  %v1135_v20 = vsel %vm658_vm2, %v4882_v19, %v1103_v10  ;;  %3332 = vmatprep.subr.bf16.mxu0 %v3331_v14  ;;  %v3345_v48 = vpack.c.bf16 %v1626_v3, %v1624_v18  ;;  %v1630_v10 = vld [vmem:[%s5850_s11 + $0xb0] sm:$0xff]  ;;  %v1649_v18 = vld [vmem:[%s5850_s11 + $0x148] sm:$0xff]  ;;  %v1651_v3 = vld [vmem:[%s5850_s11 + $0x158] sm:$0xff] }
 0x392   :  { %1257 = vmatmul.mubr.f32.gmra.mrb[6].mxu1 %v1132_v12  ;;  %v1629_v12 = vld [vmem:[%s5850_s11 + $0xa8] sm:$0xff] }
 0x393   :  { %3081 = vmatprep.mubr.msk.f32.mxu1 %vm658_vm2, %v1124_v36 }
 0x394   :  { %v1105_v45 = vpop.permute.xlu1 %1104 }
 0x395   :  { %v1136_v25 = vsel %vm658_vm2, %v4880_v34, %v1105_v45  ;;  %v1614_v34 = vld [vmem:[%s5850_s11 + $0x30] sm:$0xff]  ;;  %v1635_v45 = vld [vmem:[%s5850_s11 + $0xd8] sm:$0xff] }
 0x396   :  { %1262 = vmatmul.mubr.f32.gmra.mrb[8].mxu1 %v1133_v41  ;;  %v3333_v49 = vpack.c.bf16 %v1614_v34, %v1612_v55 }
 0x397   :  { %3082 = vmatprep.mubr.msk.f32.mxu1 %vm658_vm2, %v1126_v27  ;;  %v3347_v27 = vpack.c.bf16 %v1631_v16, %v1629_v12 }
 0x398   :  { %3334 = vmatpush1.bf16.msra.mxu0 %v3333_v49 }
 0x399   :  { %3336 = vmatprep.subr.bf16.mxu0 %v3335_v39  ;;  %v1641_v39 = vld [vmem:[%s5850_s11 + $0x108] sm:$0xff] }
 0x39a   :  { %1267 = vmatmul.mubr.f32.gmra.mrb[10].mxu1 %v1134_v4  ;;  %v1628_v4 = vld [vmem:[%s5850_s11 + $0xa0] sm:$0xff] }
 0x39b   :  { %3083 = vmatprep.mubr.msk.f32.mxu1 %vm658_vm2, %v1128_v23  ;;  %v3349_v37 = vpack.c.bf16 %v1630_v10, %v1628_v4  ;;  %v1655_v4 = vld [vmem:[%s5850_s11 + $0x178] sm:$0xff] }
 0x39c   :  { %3338 = vmatpush1.bf16.msra.mxu0 %v3337_v57  ;;  %v1640_v57 = vld [vmem:[%s5850_s11 + $0x100] sm:$0xff] }
 0x39d   :  { %3340 = vmatprep.subr.bf16.mxu0 %v3339_v58  ;;  %v1642_v58 = vld [vmem:[%s5850_s11 + $0x110] sm:$0xff] }
 0x39e   :  { %1272 = vmatmul.mubr.f32.gmra.mrb[12].mxu1 %v1135_v20  ;;  %v1633_v20 = vld [vmem:[%s5850_s11 + $0xc8] sm:$0xff]  ;;  %v3361_v6 = vpack.c.bf16 %v1642_v58, %v1640_v57 }
 0x39f   :  { %3084 = vmatprep.mubr.msk.f32.mxu1 %vm658_vm2, %v1127_v52  ;;  %v3351_v30 = vpack.c.bf16 %v1635_v45, %v1633_v20 }
 0x3a0   :  { %3342 = vmatpush1.bf16.msra.mxu0 %v3341_v11  ;;  %v1644_v11 = vld [vmem:[%s5850_s11 + $0x120] sm:$0xff] }
 0x3a1   :  { %v4947_v62 = vpop.permute.xlu0 %1298  ;;  %3344 = vmatprep.subr.bf16.mxu0 %v3343_v26  ;;  %v1646_v26 = vld [vmem:[%s5850_s11 + $0x130] sm:$0xff] }
 0x3a2   :  { %1277 = vmatmul.mubr.f32.gmra.mrb[14].mxu1 %v1136_v25  ;;  %v3365_v12 = vpack.c.bf16 %v1646_v26, %v1644_v11 }
 0x3a3   :  { %3214 = vmatprep.mubr.msk.f32.mxu1 %vm1476_vm8, %v1292_v35 }
 0x3a4   :  { %3346 = vmatpush1.bf16.msra.mxu0 %v3345_v48  ;;  %v1650_v48 = vld [vmem:[%s5850_s11 + $0x150] sm:$0xff] }
 0x3a5   :  { %v4967_v19 = vpop.permute.xlu1 %1303  ;;  %v4990_v59 = vpop.permute.xlu0 %1308  ;;  %3348 = vmatprep.subr.bf16.mxu0 %v3347_v27  ;;  %v1653_v27 = vld [vmem:[%s5850_s11 + $0x168] sm:$0xff] }
 0x3a6   :  { %v3371_v45 = vpack.c.bf16 %v1655_v4, %v1653_v27 }
 0x3a8   :  { %3350 = vmatpush1.bf16.msra.mxu0 %v3349_v37  ;;  %v1657_v37 = vld [vmem:[%s5850_s11 + $0x188] sm:$0xff] }
 0x3a9   :  { %v5008_v0 = vpop.permute.xlu1 %1313  ;;  %v5026_v21 = vpop.permute.xlu0 %1318  ;;  %3352 = vmatprep.subr.bf16.mxu0 %v3351_v30  ;;  %v1659_v30 = vld [vmem:[%s5850_s11 + $0x198] sm:$0xff] }
 0x3ac   :  { %3354 = vmatpush1.bf16.msra.mxu0 %v3353_v44  ;;  %v1661_v44 = vld [vmem:[%s5850_s11 + $0x1a8] sm:$0xff] }
 0x3ad   :  { %v5044_v25 = vpop.permute.xlu1 %1323  ;;  %v5062_v14 = vpop.permute.xlu0 %1328 }
 0x3b1   :  { %v5080_v47 = vpop.permute.xlu1 %1333 }
 0x459   :  { %v4936_v5 = vpop.f32.mrb[0].mxu1 }
 0x45a   :  { %v1245_v24 = vpop.f32.mrb[1].mxu1  ;;  %v1336_v1 = vmul.f32 %v4947_v62, %v4936_v5 }
 0x45d   :  { %v4969_v28 = vpop.f32.mrb[2].mxu1 }
 0x45e   :  { %v1337_v54 = vmul.f32 %v4967_v19, %v4969_v28  ;;  %v1250_v42 = vpop.f32.mrb[3].mxu1 }
 0x45f   :  { %v1638_v42 = vld [vmem:[%s5850_s11 + $0xf0] sm:$0xff] }
 0x460   :  { %v1344_v53 = vadd.f32 %v1337_v54, %v1336_v1  ;;  %v3355_v1 = vpack.c.bf16 %v1639_v33, %v1637_v22  ;;  %v1636_v54 = vld [vmem:[%s5850_s11 + $0xe0] sm:$0xff] }
 0x461   :  { %v4992_v43 = vpop.f32.mrb[4].mxu1 }
 0x462   :  { %v1338_v60 = vmul.f32 %v4990_v59, %v4992_v43  ;;  %v1255_v51 = vpop.f32.mrb[5].mxu1  ;;  %3356 = vmatprep.subr.bf16.mxu0 %v3355_v1  ;;  %v1663_v1 = vld [vmem:[%s5850_s11 + $0x1b8] sm:$0xff] }
 0x463   :  { %v3359_v51 = vpack.c.bf16 %v1643_v9, %v1641_v39 }
 0x464   :  { %v1345_v8 = vadd.f32 %v1344_v53, %v1338_v60  ;;  %v3357_v60 = vpack.c.bf16 %v1638_v42, %v1636_v54 }
 0x465   :  { %v5010_v2 = vpop.f32.mrb[6].mxu1 }
 0x466   :  { %v1339_v61 = vmul.f32 %v5008_v0, %v5010_v2  ;;  %v1260_v17 = vpop.f32.mrb[7].mxu1  ;;  %3358 = vmatpush1.bf16.msra.mxu0 %v3357_v60 }
 0x467   :  { %3360 = vmatprep.subr.bf16.mxu0 %v3359_v51 }
 0x468   :  { %v1346_v15 = vadd.f32 %v1345_v8, %v1339_v61  ;;  %v1647_v8 = vld [vmem:[%s5850_s11 + $0x138] sm:$0xff] }
 0x469   :  { %v5028_v36 = vpop.f32.mrb[8].mxu1  ;;  %v3363_v17 = vpack.c.bf16 %v1647_v8, %v1645_v56 }
 0x46a   :  { %v1340_v41 = vmul.f32 %v5026_v21, %v5028_v36  ;;  %v1265_v52 = vpop.f32.mrb[9].mxu1  ;;  %3362 = vmatpush1.bf16.msra.mxu0 %v3361_v6 }
 0x46b   :  { %3364 = vmatprep.subr.bf16.mxu0 %v3363_v17  ;;  %v1648_v52 = vld [vmem:[%s5850_s11 + $0x140] sm:$0xff] }
 0x46c   :  { %v1347_v23 = vadd.f32 %v1346_v15, %v1340_v41  ;;  %v3367_v41 = vpack.c.bf16 %v1651_v3, %v1649_v18 }
 0x46d   :  { %v5046_v35 = vpop.f32.mrb[10].mxu1 }
 0x46e   :  { %v1341_v24 = vmul.f32 %v5044_v25, %v5046_v35  ;;  %v1270_v46 = vpop.f32.mrb[11].mxu1  ;;  %3366 = vmatpush1.bf16.msra.mxu0 %v3365_v12 }
 0x46f   :  { %3368 = vmatprep.subr.bf16.mxu0 %v3367_v41  ;;  %v1654_v46 = vld [vmem:[%s5850_s11 + $0x170] sm:$0xff] }
 0x470   :  { %v1348_v31 = vadd.f32 %v1347_v23, %v1341_v24  ;;  %v3369_v23 = vpack.c.bf16 %v1650_v48, %v1648_v52  ;;  %v1652_v24 = vld [vmem:[%s5850_s11 + $0x160] sm:$0xff] }
 0x471   :  { %v5064_v55 = vpop.f32.mrb[12].mxu1  ;;  %v3373_v22 = vpack.c.bf16 %v1654_v46, %v1652_v24  ;;  %v3085_v24 = vld [vmem:[#allocation8] ss:$0 sm:$0xff] }
 0x472   :  { %v1342_v34 = vmul.f32 %v5062_v14, %v5064_v55  ;;  %v1275_v32 = vpop.f32.mrb[13].mxu1  ;;  %3370 = vmatpush1.bf16.msra.mxu0 %v3369_v23 }
 0x473   :  { %3372 = vmatprep.subr.bf16.mxu0 %v3371_v45 }
 0x474   :  { %v1349_v49 = vadd.f32 %v1348_v31, %v1342_v34  ;;  %v1658_v31 = vld [vmem:[%s5850_s11 + $0x190] sm:$0xff]  ;;  %v3375_v34 = vpack.c.bf16 %v1659_v30, %v1657_v37  ;;  %v3086_v30 = vld [vmem:[#allocation10] ss:$0 sm:$0xff] }
 0x475   :  { %v1278_v53 = vpop.f32.mrb[14].mxu1  ;;  %v3377_v32 = vpack.c.bf16 %v1658_v31, %v1656_v29 }
 0x476   :  { %v1343_v38 = vmul.f32 %v5080_v47, %v1278_v53  ;;  %v1280_v40 = vpop.f32.mrb[15].mxu1  ;;  %3374 = vmatpush1.bf16.msra.mxu0 %v3373_v22 }
 0x477   :  { %3376 = vmatprep.subr.bf16.mxu0 %v3375_v34 }
 0x478   :  { %v1351_v7 = vsel %vm1350_vm9, %v1343_v38, 0.0 }
 0x479   :  { %v1352_v63 = vadd.f32 %v1351_v7, %v1349_v49  ;;  %v3379_v7 = vpack.c.bf16 %v1663_v1, %v1661_v44 }
 0x47a   :  { %3378 = vmatpush1.bf16.msra.mxu0 %v3377_v32 }
 0x47b   :  { %v1353_v61 = vrot.slane %v1352_v63, 4  ;;  %3380 = vmatprep.subr.bf16.mxu0 %v3379_v7 }
 0x47d   :  { %v1354_v15 = vadd.f32 %v1353_v61, %v1352_v63 }
 0x47f   :  { %v1355_v16 = vrot.slane %v1354_v15, 2 }
 0x481   :  { %v1356_v10 = vadd.f32 %v1355_v16, %v1354_v15 }
 0x483   :  { %v1357_v20 = vrot.slane %v1356_v10, 1 }
 0x485   :  { %v1358_v13 = vadd.f32 %v1357_v20, %v1356_v10 }
 0x487   :  { %v1359_v33 = vmul.f32 0.01724138, %v1358_v13 }
 0x489   :  { %v1360_v54 = vsub.f32 %v4936_v5, %v1359_v33  ;;  %v1361_v42 = vsub.f32 %v4969_v28, %v1359_v33  ;;  %v1362_v49 = vsub.f32 %v4992_v43, %v1359_v33  ;;  %v1363_v39 = vsub.f32 %v5010_v2, %v1359_v33  ;;  %v1660_v5 = vld [vmem:[%s5850_s11 + $0x1a0] sm:$0xff]  ;;  %v1662_v28 = vld [vmem:[%s5850_s11 + $0x1b0] sm:$0xff]  ;;  %v1665_v43 = vld [vmem:[%s5850_s11 + $0x1c8] sm:$0xff] }
 0x48a   :  { %v1364_v9 = vsub.f32 %v5028_v36, %v1359_v33  ;;  %v1365_v38 = vsub.f32 %v5046_v35, %v1359_v33  ;;  %v1366_v40 = vsub.f32 %v5064_v55, %v1359_v33  ;;  %v1367_v60 = vsub.f32 %v1278_v53, %v1359_v33  ;;  %v1667_v2 = vld [vmem:[%s5850_s11 + $0x1d8] sm:$0xff] }
 0x48b   :  { %v1368_v51 = vmul.f32 %v1360_v54, %v1360_v54  ;;  %v1369_v57 = vmul.f32 %v1361_v42, %v1361_v42  ;;  %v1370_v58 = vmul.f32 %v1362_v49, %v1362_v49  ;;  %v1371_v36 = vmul.f32 %v1363_v39, %v1363_v39 }
 0x48c   :  { %v3381_v53 = vpack.c.bf16 %v1662_v28, %v1660_v5  ;;  %v1372_v56 = vmul.f32 %v1364_v9, %v1364_v9  ;;  %v3383_v6 = vpack.c.bf16 %v1667_v2, %v1665_v43  ;;  %v1373_v61 = vmul.f32 %v1365_v38, %v1365_v38 }
 0x48d   :  { %v1376_v35 = vmul.f32 %v1368_v51, %v4947_v62  ;;  %v1377_v55 = vmul.f32 %v1369_v57, %v4967_v19  ;;  %v1378_v8 = vmul.f32 %v1370_v58, %v4990_v59  ;;  %v1379_v17 = vmul.f32 %v1371_v36, %v5008_v0 }
 0x48e   :  { %v1375_v26 = vmul.f32 %v1367_v60, %v1367_v60  ;;  %3382 = vmatpush1.bf16.msra.mxu0 %v3381_v53  ;;  %v1374_v18 = vmul.f32 %v1366_v40, %v1366_v40  ;;  %v1380_v3 = vmul.f32 %v1372_v56, %v5026_v21  ;;  %v1381_v19 = vmul.f32 %v1373_v61, %v5044_v25 }
 0x48f   :  { %v1384_v63 = vadd.f32 %v1377_v55, %v1376_v35  ;;  %3384 = vmatprep.subr.bf16.mxu0 %v3383_v6 }
 0x490   :  { %v1383_v12 = vmul.f32 %v1375_v26, %v5080_v47  ;;  %v1382_v59 = vmul.f32 %v1374_v18, %v5062_v14 }
 0x491   :  { %v1385_v11 = vadd.f32 %v1384_v63, %v1378_v8 }
 0x492   :  { %v1390_v52 = vsel %vm1350_vm9, %v1383_v12, 0.0 }
 0x493   :  { %v1386_v62 = vadd.f32 %v1385_v11, %v1379_v17 }
 0x495   :  { %v1387_v15 = vadd.f32 %v1386_v62, %v1380_v3 }
 0x497   :  { %v1388_v16 = vadd.f32 %v1387_v15, %v1381_v19 }
 0x499   :  { %v1389_v41 = vadd.f32 %v1388_v16, %v1382_v59 }
 0x49b   :  { %v1391_v0 = vadd.f32 %v1390_v52, %v1389_v41 }
 0x49d   :  { %v1392_v48 = vrot.slane %v1391_v0, 4 }
 0x49f   :  { %v1393_v27 = vadd.f32 %v1392_v48, %v1391_v0  ;;  %v1293_v0 = vld [vmem:[%s5849_s10 + $0x8] sm:$0xff]  ;;  %v1294_v48 = vld [vmem:[%s5849_s10 + $0x10] sm:$0xff] }
 0x4a1   :  { %v1394_v4 = vrot.slane %v1393_v27, 2 }
 0x4a3   :  { %v1395_v10 = vadd.f32 %v1394_v4, %v1393_v27  ;;  %v1295_v27 = vld [vmem:[%s5849_s10 + $0x18] sm:$0xf]  ;;  %v1664_v4 = vld [vmem:[%s5850_s11 + $0x1c0] sm:$0xff] }
 0x4a5   :  { %v1396_v23 = vrot.slane %v1395_v10, 1 }
 0x4a7   :  { %v1397_v21 = vadd.f32 %v1396_v23, %v1395_v10  ;;  %v1666_v10 = vld [vmem:[%s5850_s11 + $0x1d0] sm:$0xff] }
 0x4a8   :  { %v3385_v23 = vpack.c.bf16 %v1666_v10, %v1664_v4 }
 0x4a9   :  { %v1398_v20 = vmul.f32 0.01724138, %v1397_v21  ;;  %v1669_v21 = vld [vmem:[%s5850_s11 + $0x1e8] sm:$0xff] }
 0x4aa   :  { %3386 = vmatpush1.bf16.msra.mxu0 %v3385_v23  ;;  %v1692_v23 = vld [vmem:[%s5850_s11 + $0x2a0] sm:$0xff] }
 0x4ab   :  { %v1399_v45 = vadd.f32 1e-05, %v1398_v20  ;;  %v1671_v20 = vld [vmem:[%s5850_s11 + $0x1f8] sm:$0xff] }
 0x4ad   :  { %3638 = vrsqrt.f32 %v1399_v45  ;;  %v1668_v45 = vld [vmem:[%s5850_s11 + $0x1e0] sm:$0xff] }
 0x4b7   :  { %v3639_v25 = vpop.eup %3638 }
 0x4b8   :  { %v1407_v46 = vmul.f32 %v3639_v25, %v1366_v40  ;;  %v1408_v47 = vmul.f32 %v3639_v25, %v1367_v60  ;;  %v1401_v37 = vmul.f32 %v3639_v25, %v1360_v54  ;;  %v1402_v14 = vmul.f32 %v3639_v25, %v1361_v42 }
 0x4b9   :  { %v1403_v13 = vmul.f32 %v3639_v25, %v1362_v49  ;;  %v1404_v29 = vmul.f32 %v3639_v25, %v1363_v39  ;;  %v1405_v31 = vmul.f32 %v3639_v25, %v1364_v9  ;;  %v1406_v22 = vmul.f32 %v3639_v25, %v1365_v38 }
 0x4ba   :  { %v1422_v33 = vmul.f32 %v3085_v24, %v1408_v47  ;;  %v1415_v34 = vmul.f32 %v3085_v24, %v1401_v37  ;;  %v1416_v32 = vmul.f32 %v3085_v24, %v1402_v14  ;;  %v1421_v44 = vmul.f32 %v3085_v24, %v1407_v46  ;;  %v1673_v47 = vld [vmem:[%s5850_s11 + $0x208] sm:$0xff]  ;;  %v1675_v37 = vld [vmem:[%s5850_s11 + $0x218] sm:$0xff] }
 0x4bb   :  { %v1417_v1 = vmul.f32 %v3085_v24, %v1403_v13  ;;  %v1418_v51 = vmul.f32 %v3085_v24, %v1404_v29  ;;  %v1419_v57 = vmul.f32 %v3085_v24, %v1405_v31  ;;  %v1420_v58 = vmul.f32 %v3085_v24, %v1406_v22  ;;  %v1670_v24 = vld [vmem:[%s5850_s11 + $0x1f0] sm:$0xff] }
 0x4bc   :  { %v1436_v7 = vadd.f32 %v3086_v30, %v1422_v33  ;;  %v1429_v5 = vadd.f32 %v3086_v30, %v1415_v34  ;;  %v1430_v28 = vadd.f32 %v3086_v30, %v1416_v32  ;;  %v1435_v40 = vadd.f32 %v3086_v30, %v1421_v44  ;;  %v1672_v33 = vld [vmem:[%s5850_s11 + $0x200] sm:$0xff]  ;;  %v1674_v34 = vld [vmem:[%s5850_s11 + $0x210] sm:$0xff] }
 0x4bd   :  { %v1431_v60 = vadd.f32 %v3086_v30, %v1417_v1  ;;  %v1432_v54 = vadd.f32 %v3086_v30, %v1418_v51  ;;  %v1433_v42 = vadd.f32 %v3086_v30, %v1419_v57  ;;  %v1434_v43 = vadd.f32 %v3086_v30, %v1420_v58  ;;  %v1677_v1 = vld [vmem:[%s5850_s11 + $0x228] sm:$0xff]  ;;  %v1679_v51 = vld [vmem:[%s5850_s11 + $0x238] sm:$0xff] }
 0x4be   :  { %v1458_v49 = vrot.slane %v1436_v7, 1  ;;  %v1445_v39 = vrot.slane %v1429_v5, 1  ;;  %v1446_v9 = vrot.slane %v1430_v28, 1  ;;  %v1456_v38 = vrot.slane %v1435_v40, 1 }
 0x4bf   :  { %v1448_v2 = vrot.slane %v1431_v60, 1  ;;  %v1450_v36 = vrot.slane %v1432_v54, 1  ;;  %v1452_v35 = vrot.slane %v1433_v42, 1  ;;  %v1454_v55 = vrot.slane %v1434_v43, 1 }
 0x4c0   :  { %v1447_v53 = vsel %vm371_vm0, %v1445_v39, %v1446_v9  ;;  %v1459_v56 = vsel %vm371_vm0, %v1456_v38, %v1458_v49  ;;  %v1475_v8 = vmax.f32 %v1436_v7, %v1458_v49  ;;  %v3387_v25 = vpack.c.bf16 %v1671_v20, %v1669_v21  ;;  %v1678_v49 = vld [vmem:[%s5850_s11 + $0x230] sm:$0xff]  ;;  %v1681_v39 = vld [vmem:[%s5850_s11 + $0x248] sm:$0xff] }
 0x4c1   :  { %v1449_v63 = vsel %vm371_vm0, %v1446_v9, %v1448_v2  ;;  %v1468_v6 = vmax.f32 %v1429_v5, %v1447_v53  ;;  %v1451_v61 = vsel %vm371_vm0, %v1448_v2, %v1450_v36  ;;  %v1453_v17 = vsel %vm371_vm0, %v1450_v36, %v1452_v35  ;;  %v1683_v9 = vld [vmem:[%s5850_s11 + $0x258] sm:$0xff]  ;;  %v1694_v21 = vld [vmem:[%s5850_s11 + $0x2b0] sm:$0xff]  ;;  %v1697_v20 = vld [vmem:[%s5850_s11 + $0x2c8] sm:$0xff] }
 0x4c2   :  { %v1469_v11 = vmax.f32 %v1430_v28, %v1449_v63  ;;  %v1470_v26 = vmax.f32 %v1431_v60, %v1451_v61  ;;  %v1471_v18 = vmax.f32 %v1432_v54, %v1453_v17  ;;  %v1455_v3 = vsel %vm371_vm0, %v1452_v35, %v1454_v55  ;;  %3388 = vmatprep.subr.bf16.mxu0 %v3387_v25  ;;  %v1676_v60 = vld [vmem:[%s5850_s11 + $0x220] sm:$0xff]  ;;  %v1682_v63 = vld [vmem:[%s5850_s11 + $0x250] sm:$0xff] }
 0x4c3   :  { %v1457_v62 = vsel %vm371_vm0, %v1454_v55, %v1456_v38  ;;  %v1472_v19 = vmax.f32 %v1433_v42, %v1455_v3  ;;  %v1474_v15 = vmax.f32 %v1435_v40, %v1459_v56  ;;  %v3389_v46 = vpack.c.bf16 %v1670_v24, %v1668_v45  ;;  %v1699_v45 = vld [vmem:[%s5850_s11 + $0x2d8] sm:$0xff] }
 0x4c4   :  { %v3309_v12 = vpack.c.bf16 %v1469_v11, %v1468_v6  ;;  %v3313_v59 = vpack.c.bf16 %v1471_v18, %v1470_v26  ;;  %v1473_v16 = vmax.f32 %v1434_v43, %v1457_v62  ;;  %v3391_v14 = vpack.c.bf16 %v1675_v37, %v1673_v47  ;;  %v1685_v26 = vld [vmem:[%s5850_s11 + $0x268] sm:$0xff]  ;;  %v1687_v18 = vld [vmem:[%s5850_s11 + $0x278] sm:$0xff]  ;;  %v1698_v47 = vld [vmem:[%s5850_s11 + $0x2d0] sm:$0xff] }
 0x4c5   :  { %v3321_v41 = vpack.c.bf16 %v1475_v8, %v1474_v15  ;;  %3390 = vmatpush1.bf16.msra.mxu0 %v3389_v46  ;;  %v4000_v30 = vmov 0.0   ;;  %v3393_v5 = vpack.c.bf16 %v1674_v34, %v1672_v33  ;;  %v3395_v42 = vpack.c.bf16 %v1679_v51, %v1677_v1  ;;  %v1680_v8 = vld [vmem:[%s5850_s11 + $0x240] sm:$0xff]  ;;  %v1686_v15 = vld [vmem:[%s5850_s11 + $0x270] sm:$0xff]  ;;  %v1701_v37 = vld [vmem:[%s5850_s11 + $0x2e8] sm:$0xff]  ;;  %v5336_v1 = vpop.permute.xlu1 %1897 }
 0x4c6   :  { %3310 = vmatprep.subr.bf16.mxu1 %v3309_v12  ;;  %v3317_v52 = vpack.c.bf16 %v1473_v16, %v1472_v19  ;;  %3392 = vmatprep.subr.bf16.mxu0 %v3391_v14  ;;  %v3397_v53 = vpack.c.bf16 %v1678_v49, %v1676_v60  ;;  %v3399_v56 = vpack.c.bf16 %v1683_v9, %v1681_v39  ;;  %v1684_v19 = vld [vmem:[%s5850_s11 + $0x260] sm:$0xff]  ;;  %v1703_v14 = vld [vmem:[%s5850_s11 + $0x2f8] sm:$0xff] }
 0x4c7   :  { %3312 = vmatpush3.bf16.msra.mxu1 %v3309_v12  ;;  %v3401_v3 = vpack.c.bf16 %v1682_v63, %v1680_v8  ;;  %v3403_v62 = vpack.c.bf16 %v1687_v18, %v1685_v26  ;;  %v1689_v12 = vld [vmem:[%s5850_s11 + $0x288] sm:$0xff]  ;;  %v3405_v16 = vpack.c.bf16 %v1686_v15, %v1684_v19  ;;  %v3413_v25 = vpack.c.bf16 %v1694_v21, %v1692_v23  ;;  %v1696_v46 = vld [vmem:[%s5850_s11 + $0x2c0] sm:$0xff]  ;;  %v2330_v18 = vld [vmem:[%s5857_s18 + $0x38] sm:$0xff] }
 0x4c8   :  { %3314 = vmatprep.subr.bf16.mxu1 %v3313_v59  ;;  %v3415_v24 = vpack.c.bf16 %v1699_v45, %v1697_v20  ;;  %v2328_v26 = vld [vmem:[%s5857_s18 + $0x28] sm:$0xff]  ;;  %v2331_v21 = vld [vmem:[%s5857_s18 + $0x40] sm:$0xff]  ;;  %v2333_v20 = vld [vmem:[%s5857_s18 + $0x50] sm:$0xff] }
 0x4c9   :  { %v5383_v19 = vpack.c.bf16 %v2330_v18, %v2328_v26 }
 0x4cb   :  { %3316 = vmatpush3.bf16.msra.mxu1 %v3313_v59  ;;  %v1691_v59 = vld [vmem:[%s5850_s11 + $0x298] sm:$0xff] }
 0x4cc   :  { %3318 = vmatprep.subr.bf16.mxu1 %v3317_v52 }
 0x4cf   :  { %3320 = vmatpush3.bf16.msra.mxu1 %v3317_v52  ;;  %v1688_v52 = vld [vmem:[%s5850_s11 + $0x280] sm:$0xff] }
 0x4d0   :  { %3323 = vmatprep.subr.msk.bf16.mxu1 %vm3322_vm11, %v3321_v41 }
 0x4d3   :  { %3326 = vmatpush3.bf16.msk.msra.mxu1 %vm3322_vm11, %v3321_v41  ;;  %v3407_v41 = vpack.c.bf16 %v1691_v59, %v1689_v12  ;;  %v2327_v59 = vld [vmem:[%s5857_s18 + $0x20] sm:$0xff] }
 0x4d6   :  { %3215 = vmatmul.mubr.msk.f32.vlgmr.msra.gmra.mrb[16].mxu1 %vm1476_vm8, %v1293_v0  ;;  %v1690_v0 = vld [vmem:[%s5850_s11 + $0x290] sm:$0xff] }
 0x4d7   :  { %3217 = vmatprep.mubr.msk.f32.mxu1 %vm1476_vm8, %v1294_v48  ;;  %v1693_v48 = vld [vmem:[%s5850_s11 + $0x2a8] sm:$0xff]  ;;  %v3409_v4 = vpack.c.bf16 %v1690_v0, %v1688_v52 }
 0x4d8   :  { %v2332_v0 = vld [vmem:[%s5857_s18 + $0x48] sm:$0xff] }
 0x4da   :  { %3218 = vmatmul.mubr.msk.f32.gmra.mrb[18].mxu1 %vm1476_vm8, %v1295_v27  ;;  %v1695_v27 = vld [vmem:[%s5850_s11 + $0x2b8] sm:$0xff] }
 0x4db   :  { %2153 = vmatprep.mubr.f32.mxu1 %v4000_v30  ;;  %v3411_v10 = vpack.c.bf16 %v1695_v27, %v1693_v48  ;;  %v2334_v48 = vld [vmem:[%s5857_s18 + $0x58] sm:$0xff] }
 0x5a9   :  { %v3216_v13 = vpop.f32.mrb[16].mxu1 }
 0x5aa   :  { %v1579_v29 = vmax.f32 %v3216_v13, 0.0  ;;  %v1559_v31 = vpop.f32.mrb[17].mxu1  ;;  %v3417_v13 = vpack.c.bf16 %v1698_v47, %v1696_v46 }
 0x5ab   :  { %v1578_v22 = vmax.f32 %v1559_v31, 0.0  ;;  %v1700_v31 = vld [vmem:[%s5850_s11 + $0x2e0] sm:$0xff] }
 0x5ac   :  { %v1587_v32 = vrot.slane %v1579_v29, 1  ;;  %v1598_v44 = vrot.slane %v1579_v29, 2 }
 0x5ad   :  { %v1586_v57 = vrot.slane %v1578_v22, 1  ;;  %v1597_v58 = vrot.slane %v1578_v22, 2  ;;  %v3219_v7 = vpop.f32.mrb[18].mxu1 }
 0x5ae   :  { %v5229_v28 = vmax.f32 %v3219_v7, 0.0  ;;  %v1569_v40 = vpop.f32.mrb[19].mxu1 }
 0x5af   :  { %v1588_v54 = vsel %vm371_vm0, %v1586_v57, %v1587_v32  ;;  %v1580_v43 = vmax.f32 %v1569_v40, 0.0  ;;  %v5245_v38 = vsel %vm472_vm1, %v1597_v58, %v1598_v44 }
 0x5b0   :  { %1768 = vmatprep.mubr.f32.mxu0 %v1588_v54  ;;  %v1591_v2 = vrot.slane %v5229_v28, 1  ;;  %v1602_v36 = vrot.slane %v5229_v28, 2 }
 0x5b1   :  { %1769 = vmatmul.mubr.f32.vlgmr.msra.gmra.mrb[8].mxu0 %v1578_v22  ;;  %v1589_v35 = vrot.slane %v1580_v43, 1  ;;  %v1600_v55 = vrot.slane %v1580_v43, 2  ;;  %v1702_v22 = vld [vmem:[%s5850_s11 + $0x2f0] sm:$0xff] }
 0x5b2   :  { %3394 = vmatpush1.bf16.msra.mxu0 %v3393_v5  ;;  %v3421_v33 = vpack.c.bf16 %v1702_v22, %v1700_v31 }
 0x5b3   :  { %3396 = vmatprep.subr.bf16.mxu0 %v3395_v42  ;;  %v1590_v6 = vsel %vm371_vm0, %v1587_v32, %v1589_v35  ;;  %v1592_v61 = vsel %vm371_vm0, %v1589_v35, %v1591_v2  ;;  %v1601_v17 = vsel %vm472_vm1, %v1598_v44, %v1600_v55  ;;  %v1603_v11 = vsel %vm472_vm1, %v1600_v55, %v1602_v36  ;;  %v5334_v44 = vpop.permute.xlu0 %1892 }
 0x5b4   :  { %1774 = vmatprep.mubr.f32.mxu0 %v1590_v6  ;;  %v2323_v6 = vld [vmem:[%s5857_s18] sm:$0xff]  ;;  %vm3040_vm1 = vcmask 33792  }
 0x5b5   :  { %1775 = vmatmul.mubr.f32.gmra.mrb[10].mxu0 %v1579_v29  ;;  %v3419_v29 = vpack.c.bf16 %v1703_v14, %v1701_v37 }
 0x5b6   :  { %3398 = vmatpush1.bf16.msra.mxu0 %v3397_v53  ;;  %1780 = vmatprep.mubr.f32.mxu0 %v1592_v61  ;;  %v2325_v61 = vld [vmem:[%s5857_s18 + $0x10] sm:$0xff] }
 0x5b7   :  { %3400 = vmatprep.subr.bf16.mxu0 %v3399_v56  ;;  %v5350_v60 = vpop.permute.xlu0 %1902 }
 0x5b9   :  { %1781 = vmatmul.mubr.f32.gmra.mrb[12].mxu0 %v1580_v43 }
 0x5ba   :  { %3402 = vmatpush1.bf16.msra.mxu0 %v3401_v3  ;;  %1786 = vmatprep.mubr.f32.mxu0 %v1591_v2  ;;  %v2326_v2 = vld [vmem:[%s5857_s18 + $0x18] sm:$0xff] }
 0x5bb   :  { %3404 = vmatprep.subr.bf16.mxu0 %v3403_v62 }
 0x5bd   :  { %1787 = vmatmul.mubr.f32.gmra.mrb[14].mxu0 %v5229_v28 }
 0x5be   :  { %3406 = vmatpush1.bf16.msra.mxu0 %v3405_v16  ;;  %1857 = vmatprep.mubr.f32.mxu0 %v4000_v30  ;;  %v2329_v16 = vld [vmem:[%s5857_s18 + $0x30] sm:$0xff] }
 0x5bf   :  { %3408 = vmatprep.subr.bf16.mxu0 %v3407_v41  ;;  %v5393_v52 = vpack.c.bf16 %v2329_v16, %v2327_v59 }
 0x5c2   :  { %3410 = vmatpush1.bf16.msra.mxu0 %v3409_v4  ;;  %v5401_v4 = vpack.c.bf16 %v2334_v48, %v2332_v0 }
 0x5c3   :  { %3412 = vmatprep.subr.bf16.mxu0 %v3411_v10 }
 0x5c6   :  { %3414 = vmatpush1.bf16.msra.mxu0 %v3413_v25  ;;  %v5411_v25 = vpack.c.bf16 %v2333_v20, %v2331_v21  ;;  %v2000_v21 = vlaneseq }
 0x5c7   :  { %3416 = vmatprep.subr.bf16.mxu0 %v3415_v24 }
 0x5ca   :  { %3418 = vmatpush1.bf16.msra.mxu0 %v3417_v13 }
 0x5cb   :  { %3420 = vmatprep.subr.bf16.mxu0 %v3419_v29 }
 0x5ce   :  { %3422 = vmatpush1.bf16.msra.mxu0 %v3421_v33 }
 0x5d1   :  { %1858 = vmatmul.mubr.f32.vlgmr.msra.gmra.mrb[8].mxu0 %v5245_v38  ;;  %v2324_v38 = vld [vmem:[%s5857_s18 + $0x8] sm:$0xff] }
 0x5d2   :  { %1863 = vmatprep.mubr.f32.mxu0 %v4000_v30  ;;  %v5362_v53 = vpack.c.bf16 %v2326_v2, %v2324_v38 }
 0x5d4   :  { %3498 = vmatprep.subr.bf16.mxu0 %v5362_v53 }
 0x5d5   :  { %1864 = vmatmul.mubr.f32.gmra.mrb[10].mxu0 %v1601_v17 }
 0x5d6   :  { %1869 = vmatprep.mubr.f32.mxu0 %v4000_v30 }
 0x5d9   :  { %1870 = vmatmul.mubr.f32.gmra.mrb[12].mxu0 %v1603_v11  ;;  %v5374_v11 = vpack.c.bf16 %v2325_v61, %v2323_v6 }
 0x5da   :  { %1875 = vmatprep.mubr.f32.mxu0 %v4000_v30 }
 0x5db   :  { %3500 = vmatpush1.bf16.msra.mxu0 %v5374_v11 }
 0x5dc   :  { %3502 = vmatprep.subr.bf16.mxu0 %v5383_v19 }
 0x5dd   :  { %1876 = vmatmul.mubr.f32.gmra.mrb[14].mxu0 %v1602_v36  ;;  %v5360_v36 = vpop.permute.xlu1 %1907 }
 0x5de   :  { %2418 = vmatprep.mubr.f32.mxu0 %v4000_v30 }
 0x5df   :  { %3504 = vmatpush1.bf16.msra.mxu0 %v5393_v52 }
 0x5e0   :  { %3506 = vmatprep.subr.bf16.mxu0 %v5401_v4 }
 0x5e3   :  { %3508 = vmatpush1.bf16.msra.mxu0 %v5411_v25 }
 0x6a4   :  { %v5330_v34 = vpop.f32.mrb[8].mxu0 }
 0x6a5   :  { %v5332_v32 = vpop.f32.mrb[9].mxu0  ;;  %v1910_v57 = vmul.f32 %v5334_v44, %v5330_v34 }
 0x6a6   :  { %v1911_v5 = vmul.f32 %v5334_v44, %v5332_v32 }
 0x6a8   :  { %v5338_v51 = vpop.f32.mrb[10].mxu0 }
 0x6a9   :  { %v1912_v58 = vmul.f32 %v5336_v1, %v5338_v51  ;;  %v5344_v7 = vpop.f32.mrb[11].mxu0 }
 0x6aa   :  { %v1913_v28 = vmul.f32 %v5336_v1, %v5344_v7 }
 0x6ab   :  { %v1918_v40 = vadd.f32 %v1912_v58, %v1910_v57 }
 0x6ac   :  { %v1929_v54 = vadd.f32 %v1913_v28, %v1911_v5  ;;  %v1871_v42 = vpop.f32.mrb[12].mxu0 }
 0x6ad   :  { %v1914_v43 = vmul.f32 %v5350_v60, %v1871_v42  ;;  %v1873_v49 = vpop.f32.mrb[13].mxu0 }
 0x6ae   :  { %v1915_v39 = vmul.f32 %v5350_v60, %v1873_v49 }
 0x6af   :  { %v1919_v9 = vadd.f32 %v1918_v40, %v1914_v43 }
 0x6b0   :  { %v1930_v35 = vadd.f32 %v1929_v54, %v1915_v39  ;;  %v1877_v55 = vpop.f32.mrb[14].mxu0 }
 0x6b1   :  { %v1916_v56 = vmul.f32 %v5360_v36, %v1877_v55  ;;  %v1879_v8 = vpop.f32.mrb[15].mxu0 }
 0x6b2   :  { %v1917_v63 = vmul.f32 %v5360_v36, %v1879_v8 }
 0x6b3   :  { %v1921_v17 = vsel %vm1920_vm12, %v1916_v56, 0.0 }
 0x6b4   :  { %v1922_v3 = vadd.f32 %v1921_v17, %v1919_v9  ;;  %v1931_v62 = vsel %vm1920_vm12, %v1917_v63, 0.0 }
 0x6b5   :  { %v1932_v15 = vadd.f32 %v1931_v62, %v1930_v35 }
 0x6b6   :  { %v1923_v12 = vrot.slane %v1922_v3, 4 }
 0x6b7   :  { %v1933_v41 = vrot.slane %v1932_v15, 4 }
 0x6b8   :  { %v1924_v27 = vadd.f32 %v1923_v12, %v1922_v3 }
 0x6b9   :  { %v1934_v10 = vadd.f32 %v1933_v41, %v1932_v15 }
 0x6ba   :  { %v1925_v23 = vrot.slane %v1924_v27, 2 }
 0x6bb   :  { %v1935_v45 = vrot.slane %v1934_v10, 2 }
 0x6bc   :  { %v1926_v24 = vadd.f32 %v1925_v23, %v1924_v27 }
 0x6bd   :  { %v1936_v46 = vadd.f32 %v1935_v45, %v1934_v10 }
 0x6be   :  { %v1927_v47 = vrot.slane %v1926_v24, 1 }
 0x6bf   :  { %v1937_v37 = vrot.slane %v1936_v46, 1 }
 0x6c0   :  { %v1928_v14 = vadd.f32 %v1927_v47, %v1926_v24 }
 0x6c1   :  { %v1938_v13 = vadd.f32 %v1937_v37, %v1936_v46  ;;  %v2001_v46 = vshrl.u32 %v2000_v21, 7  ;;  %v1882_v37 = vld [vmem:[#allocation13] sm:$0x3] }
 0x6c2   :  { %v1939_v29 = vmul.f32 0.041666668, %v1928_v14 }
 0x6c3   :  { %v1940_v31 = vmul.f32 0.041666668, %v1938_v13  ;;  %v5448_v47 = vsub.s32 0, %v2001_v46  ;;  %v5450_v14 = vsub.s32 1, %v2001_v46  ;;  %v1883_v13 = vld [vmem:[#allocation14] sm:$0x3] }
 0x6c4   :  { %v5415_v22 = vsub.f32 %v5330_v34, %v1939_v29  ;;  %v5418_v33 = vsub.f32 %v5338_v51, %v1939_v29  ;;  %v1945_v57 = vsub.f32 %v1871_v42, %v1939_v29  ;;  %v1947_v58 = vsub.f32 %v1877_v55, %v1939_v29 }
 0x6c5   :  { %v5421_v5 = vsub.f32 %v5332_v32, %v1940_v31  ;;  %v5424_v28 = vsub.f32 %v5344_v7, %v1940_v31  ;;  %v5426_v40 = vsub.f32 %v1873_v49, %v1940_v31  ;;  %v1948_v54 = vsub.f32 %v1879_v8, %v1940_v31 }
 0x6c6   :  { %v1949_v43 = vmul.f32 %v5415_v22, %v5415_v22  ;;  %v1951_v34 = vmul.f32 %v5418_v33, %v5418_v33  ;;  %v1953_v39 = vmul.f32 %v1945_v57, %v1945_v57  ;;  %v1955_v51 = vmul.f32 %v1947_v58, %v1947_v58 }
 0x6c7   :  { %v1950_v42 = vmul.f32 %v5421_v5, %v5421_v5  ;;  %v1952_v32 = vmul.f32 %v5424_v28, %v5424_v28  ;;  %v1954_v7 = vmul.f32 %v5426_v40, %v5426_v40  ;;  %v1956_v49 = vmul.f32 %v1948_v54, %v1948_v54 }
 0x6c8   :  { %v1957_v9 = vmul.f32 %v1949_v43, %v5334_v44  ;;  %v1959_v38 = vmul.f32 %v1951_v34, %v5336_v1  ;;  %v1963_v2 = vmul.f32 %v1955_v51, %v5360_v36  ;;  %v1961_v56 = vmul.f32 %v1953_v39, %v5350_v60 }
 0x6c9   :  { %v1958_v35 = vmul.f32 %v1950_v42, %v5334_v44  ;;  %v1960_v55 = vmul.f32 %v1952_v32, %v5336_v1  ;;  %v1964_v63 = vmul.f32 %v1956_v49, %v5360_v36  ;;  %v1962_v6 = vmul.f32 %v1954_v7, %v5350_v60 }
 0x6ca   :  { %v1965_v8 = vadd.f32 %v1959_v38, %v1957_v9  ;;  %v1967_v26 = vsel %vm1920_vm12, %v1963_v2, 0.0  ;;  %v2003_v29 = vrot.slane %v1882_v37, %v5448_v47  ;;  %v2022_v43 = vrot.slane %v1883_v13, %v5448_v47 }
 0x6cb   :  { %v1975_v61 = vadd.f32 %v1960_v55, %v1958_v35  ;;  %v1977_v62 = vsel %vm1920_vm12, %v1964_v63, 0.0  ;;  %v2007_v34 = vrot.slane %v1882_v37, %v5450_v14  ;;  %v2026_v39 = vrot.slane %v1883_v13, %v5450_v14 }
 0x6cc   :  { %v1966_v17 = vadd.f32 %v1965_v8, %v1961_v56 }
 0x6cd   :  { %v1976_v18 = vadd.f32 %v1975_v61, %v1962_v6 }
 0x6ce   :  { %v1968_v3 = vadd.f32 %v1967_v26, %v1966_v17 }
 0x6cf   :  { %v1978_v15 = vadd.f32 %v1977_v62, %v1976_v18 }
 0x6d0   :  { %v1969_v12 = vrot.slane %v1968_v3, 4 }
 0x6d1   :  { %v1979_v44 = vrot.slane %v1978_v15, 4 }
 0x6d2   :  { %v1970_v59 = vadd.f32 %v1969_v12, %v1968_v3 }
 0x6d3   :  { %v1980_v1 = vadd.f32 %v1979_v44, %v1978_v15 }
 0x6d4   :  { %v1971_v16 = vrot.slane %v1970_v59, 2 }
 0x6d5   :  { %v1981_v41 = vrot.slane %v1980_v1, 2 }
 0x6d6   :  { %v1972_v0 = vadd.f32 %v1971_v16, %v1970_v59 }
 0x6d7   :  { %v1982_v48 = vadd.f32 %v1981_v41, %v1980_v1 }
 0x6d8   :  { %v1973_v36 = vrot.slane %v1972_v0, 1 }
 0x6d9   :  { %v1983_v27 = vrot.slane %v1982_v48, 1 }
 0x6da   :  { %v1974_v60 = vadd.f32 %v1973_v36, %v1972_v0 }
 0x6db   :  { %v1984_v10 = vadd.f32 %v1983_v27, %v1982_v48 }
 0x6dc   :  { %v1985_v23 = vmul.f32 0.041666668, %v1974_v60 }
 0x6dd   :  { %v1986_v20 = vmul.f32 0.041666668, %v1984_v10 }
 0x6de   :  { %v1987_v45 = vadd.f32 1e-05, %v1985_v23 }
 0x6df   :  { %v1988_v24 = vadd.f32 1e-05, %v1986_v20 }
 0x6e0   :  { %3640 = vrsqrt.f32 %v1987_v45 }
 0x6e1   :  { %3642 = vrsqrt.f32 %v1988_v24 }
 0x6ea   :  { %v3641_v31 = vpop.eup %3640 }
 0x6eb   :  { %v3643_v51 = vpop.eup %3642  ;;  %v1995_v42 = vmul.f32 %v3641_v31, %v1945_v57  ;;  %v1997_v32 = vmul.f32 %v3641_v31, %v1947_v58  ;;  %v1991_v7 = vmul.f32 %v3641_v31, %v5415_v22  ;;  %v1993_v49 = vmul.f32 %v3641_v31, %v5418_v33 }
 0x6ec   :  { %v1998_v9 = vmul.f32 %v3643_v51, %v1948_v54  ;;  %v1992_v38 = vmul.f32 %v3643_v51, %v5421_v5  ;;  %v1994_v2 = vmul.f32 %v3643_v51, %v5424_v28  ;;  %v1996_v35 = vmul.f32 %v3643_v51, %v5426_v40  ;;  %v2170_v51 = vld [vmem:[%s5855_s16] sm:$0xff] }
 0x6ed   :  { %v2014_v55 = vmul.f32 %v2003_v29, %v1995_v42  ;;  %v2016_v56 = vmul.f32 %v2003_v29, %v1997_v32  ;;  %v2010_v8 = vmul.f32 %v2003_v29, %v1991_v7  ;;  %v2012_v63 = vmul.f32 %v2003_v29, %v1993_v49  ;;  %v2172_v42 = vld [vmem:[%s5855_s16 + $0x10] sm:$0xff]  ;;  %v2175_v32 = vld [vmem:[%s5855_s16 + $0x28] sm:$0xff]  ;;  %v2177_v7 = vld [vmem:[%s5855_s16 + $0x38] sm:$0xff] }
 0x6ee   :  { %v2017_v6 = vmul.f32 %v2007_v34, %v1998_v9  ;;  %v2011_v61 = vmul.f32 %v2007_v34, %v1992_v38  ;;  %v2013_v57 = vmul.f32 %v2007_v34, %v1994_v2  ;;  %v2015_v58 = vmul.f32 %v2007_v34, %v1996_v35  ;;  %v2173_v34 = vld [vmem:[%s5855_s16 + $0x18] sm:$0xff]  ;;  %v1888_v49 = vld [vmem:[%s5854_s15] sm:$0xff]  ;;  %v2176_v35 = vld [vmem:[%s5855_s16 + $0x30] sm:$0xff] }
 0x6ef   :  { %v2033_v17 = vadd.f32 %v2022_v43, %v2014_v55  ;;  %v2035_v22 = vadd.f32 %v2022_v43, %v2016_v56  ;;  %v2029_v26 = vadd.f32 %v2022_v43, %v2010_v8  ;;  %v2031_v33 = vadd.f32 %v2022_v43, %v2012_v63  ;;  %v2171_v43 = vld [vmem:[%s5855_s16 + $0x8] sm:$0xff]  ;;  %v2174_v2 = vld [vmem:[%s5855_s16 + $0x20] sm:$0xff]  ;;  %v2181_v56 = vld [vmem:[%s5855_s16 + $0x58] sm:$0xff] }
 0x6f0   :  { %v2036_v54 = vadd.f32 %v2026_v39, %v2017_v6  ;;  %v2030_v18 = vadd.f32 %v2026_v39, %v2011_v61  ;;  %v2032_v5 = vadd.f32 %v2026_v39, %v2013_v57  ;;  %v2034_v3 = vadd.f32 %v2026_v39, %v2015_v58  ;;  %v2179_v55 = vld [vmem:[%s5855_s16 + $0x48] sm:$0xff]  ;;  %v2178_v6 = vld [vmem:[%s5855_s16 + $0x40] sm:$0xff]  ;;  %v2180_v61 = vld [vmem:[%s5855_s16 + $0x50] sm:$0xff] }
 0x6f1   :  { %v2051_v28 = vrot.slane %v2033_v17, 1  ;;  %v2055_v62 = vrot.slane %v2035_v22, 1  ;;  %v2045_v40 = vrot.slane %v2029_v26, 1  ;;  %v2046_v15 = vrot.slane %v2031_v33, 1  ;;  %v2183_v57 = vld [vmem:[%s5855_s16 + $0x68] sm:$0xff]  ;;  %v2185_v58 = vld [vmem:[%s5855_s16 + $0x78] sm:$0xff] }
 0x6f2   :  { %v2057_v12 = vrot.slane %v2036_v54, 1  ;;  %v2048_v44 = vrot.slane %v2030_v18, 1  ;;  %v2049_v59 = vrot.slane %v2032_v5, 1  ;;  %v2053_v1 = vrot.slane %v2034_v3, 1 }
 0x6f3   :  { %v2056_v16 = vsel %vm371_vm0, %v2051_v28, %v2055_v62  ;;  %v2073_v41 = vmax.f32 %v2035_v22, %v2055_v62  ;;  %v2047_v0 = vsel %vm371_vm0, %v2045_v40, %v2046_v15  ;;  %v2052_v48 = vsel %vm371_vm0, %v2046_v15, %v2051_v28  ;;  %v2186_v28 = vld [vmem:[%s5855_s16 + $0x80] sm:$0xff]  ;;  %v2188_v62 = vld [vmem:[%s5855_s16 + $0x90] sm:$0xff]  ;;  %v2191_v40 = vld [vmem:[%s5855_s16 + $0xa8] sm:$0xff] }
 0x6f4   :  { %v2071_v36 = vmax.f32 %v2033_v17, %v2056_v16  ;;  %v2050_v27 = vsel %vm371_vm0, %v2048_v44, %v2049_v59  ;;  %v2054_v60 = vsel %vm371_vm0, %v2049_v59, %v2053_v1  ;;  %v2067_v10 = vmax.f32 %v2029_v26, %v2047_v0  ;;  %v2182_v26 = vld [vmem:[%s5855_s16 + $0x60] sm:$0xff]  ;;  %v2193_v15 = vld [vmem:[%s5855_s16 + $0xb8] sm:$0xff]  ;;  %v2195_v16 = vld [vmem:[%s5855_s16 + $0xc8] sm:$0xff] }
 0x6f5   :  { %v2068_v23 = vmax.f32 %v2030_v18, %v2050_v27  ;;  %v2070_v21 = vmax.f32 %v2032_v5, %v2054_v60  ;;  %v2069_v20 = vmax.f32 %v2031_v33, %v2052_v48  ;;  %v2058_v45 = vsel %vm371_vm0, %v2053_v1, %v2057_v12  ;;  %v2184_v33 = vld [vmem:[%s5855_s16 + $0x70] sm:$0xff]  ;;  %v2189_v18 = vld [vmem:[%s5855_s16 + $0x98] sm:$0xff]  ;;  %v2190_v59 = vld [vmem:[%s5855_s16 + $0xa0] sm:$0xff] }
 0x6f6   :  { %v3430_v24 = vpack.c.bf16 %v2073_v41, %v2071_v36  ;;  %v2072_v46 = vmax.f32 %v2034_v3, %v2058_v45  ;;  %v2074_v37 = vmax.f32 %v2036_v54, %v2057_v12  ;;  %v3433_v39 = vpack.c.bf16 %v2173_v34, %v2171_v43  ;;  %v2187_v54 = vld [vmem:[%s5855_s16 + $0x88] sm:$0xff]  ;;  %v2192_v1 = vld [vmem:[%s5855_s16 + $0xb0] sm:$0xff]  ;;  %v2197_v41 = vld [vmem:[%s5855_s16 + $0xd8] sm:$0xff] }
 0x6f7   :  { %v3423_v13 = vpack.c.bf16 %v2070_v21, %v2068_v23  ;;  %v3425_v29 = vpack.c.bf16 %v2069_v20, %v2067_v10  ;;  %v3435_v9 = vpack.c.bf16 %v2172_v42, %v2170_v51  ;;  %v3437_v38 = vpack.c.bf16 %v2177_v7, %v2175_v32  ;;  %v2194_v36 = vld [vmem:[%s5855_s16 + $0xc0] sm:$0xff]  ;;  %v2196_v27 = vld [vmem:[%s5855_s16 + $0xd0] sm:$0xff]  ;;  %v2199_v60 = vld [vmem:[%s5855_s16 + $0xe8] sm:$0xff] }
 0x6f8   :  { %v3427_v31 = vpack.c.bf16 %v2074_v37, %v2072_v46  ;;  %v3439_v8 = vpack.c.bf16 %v2176_v35, %v2174_v2  ;;  %v3441_v63 = vpack.c.bf16 %v2181_v56, %v2179_v55  ;;  %v3443_v17 = vpack.c.bf16 %v2180_v61, %v2178_v6  ;;  %v2201_v10 = vld [vmem:[%s5855_s16 + $0xf8] sm:$0xff]  ;;  %v2198_v20 = vld [vmem:[%s5855_s16 + $0xe0] sm:$0xff]  ;;  %v2200_v45 = vld [vmem:[%s5855_s16 + $0xf0] sm:$0xff] }
 0x6f9   :  { %3424 = vmatprep.subr.bf16.mxu1 %v3423_v13  ;;  %v3445_v22 = vpack.c.bf16 %v2185_v58, %v2183_v57  ;;  %v3447_v5 = vpack.c.bf16 %v2184_v33, %v2182_v26  ;;  %v3449_v3 = vpack.c.bf16 %v2189_v18, %v2187_v54  ;;  %v3451_v12 = vpack.c.bf16 %v2188_v62, %v2186_v28  ;;  %v2205_v46 = vld [vmem:[%s5855_s16 + $0x118] sm:$0xff]  ;;  %v2207_v43 = vld [vmem:[%s5855_s16 + $0x128] sm:$0xff]  ;;  %v2206_v42 = vld [vmem:[%s5855_s16 + $0x120] sm:$0xff] }
 0x6fa   :  { %3426 = vmatpush1.bf16.msra.mxu1 %v3425_v29  ;;  %v3453_v44 = vpack.c.bf16 %v2193_v15, %v2191_v40  ;;  %v3455_v0 = vpack.c.bf16 %v2192_v1, %v2190_v59  ;;  %v3457_v48 = vpack.c.bf16 %v2197_v41, %v2195_v16  ;;  %v3459_v23 = vpack.c.bf16 %v2196_v27, %v2194_v36  ;;  %v2202_v29 = vld [vmem:[%s5855_s16 + $0x100] sm:$0xff]  ;;  %v2209_v34 = vld [vmem:[%s5855_s16 + $0x138] sm:$0xff]  ;;  %v2208_v32 = vld [vmem:[%s5855_s16 + $0x130] sm:$0xff] }
 0x6fb   :  { %3429 = vmatprep.subr.msk.bf16.mxu1 %vm3428_vm14, %v3427_v31  ;;  %v3461_v21 = vpack.c.bf16 %v2201_v10, %v2199_v60  ;;  %v3463_v37 = vpack.c.bf16 %v2200_v45, %v2198_v20  ;;  %v2204_v31 = vld [vmem:[%s5855_s16 + $0x110] sm:$0xff]  ;;  %v3469_v51 = vpack.c.bf16 %v2209_v34, %v2207_v43  ;;  %v2211_v7 = vld [vmem:[%s5855_s16 + $0x148] sm:$0xff]  ;;  %v2210_v2 = vld [vmem:[%s5855_s16 + $0x140] sm:$0xff]  ;;  %vm4001_vm0 = vmmov 0  }
 0x6fc   :  { %v2212_v35 = vld [vmem:[%s5855_s16 + $0x150] sm:$0xff]  ;;  %v2215_v55 = vld [vmem:[%s5855_s16 + $0x168] sm:$0xff]  ;;  %v2217_v56 = vld [vmem:[%s5855_s16 + $0x178] sm:$0xff] }
 0x6fd   :  { %v2214_v6 = vld [vmem:[%s5855_s16 + $0x160] sm:$0xff]  ;;  %v2216_v61 = vld [vmem:[%s5855_s16 + $0x170] sm:$0xff]  ;;  %v2219_v57 = vld [vmem:[%s5855_s16 + $0x188] sm:$0xff] }
 0x6fe   :  { %3432 = vmatpush1.bf16.msk.msra.mxu1 %vm3428_vm14, %v3430_v24  ;;  %v2203_v24 = vld [vmem:[%s5855_s16 + $0x108] sm:$0xff]  ;;  %v2221_v58 = vld [vmem:[%s5855_s16 + $0x198] sm:$0xff]  ;;  %v2218_v26 = vld [vmem:[%s5855_s16 + $0x180] sm:$0xff] }
 0x6ff   :  { %3434 = vmatprep.subr.bf16.mxu1 %v3433_v39  ;;  %v3465_v13 = vpack.c.bf16 %v2205_v46, %v2203_v24  ;;  %v3467_v39 = vpack.c.bf16 %v2204_v31, %v2202_v29  ;;  %v2220_v33 = vld [vmem:[%s5855_s16 + $0x190] sm:$0xff]  ;;  %v2223_v54 = vld [vmem:[%s5855_s16 + $0x1a8] sm:$0xff]  ;;  %v2225_v18 = vld [vmem:[%s5855_s16 + $0x1b8] sm:$0xff] }
 0x700   :  { %v2222_v28 = vld [vmem:[%s5855_s16 + $0x1a0] sm:$0xff]  ;;  %v2224_v62 = vld [vmem:[%s5855_s16 + $0x1b0] sm:$0xff]  ;;  %v2227_v40 = vld [vmem:[%s5855_s16 + $0x1c8] sm:$0xff] }
 0x701   :  { %3094 = vmatmul.mubr.msk.f32.vlgmr.msra.gmra.mrb[20].mxu1 %vm2075_vm15, %v1888_v49  ;;  %v2213_v49 = vld [vmem:[%s5855_s16 + $0x158] sm:$0xff]  ;;  %v2226_v59 = vld [vmem:[%s5855_s16 + $0x1c0] sm:$0xff]  ;;  %v2228_v1 = vld [vmem:[%s5855_s16 + $0x1d0] sm:$0xff] }
 0x702   :  { %3436 = vmatpush1.bf16.msra.mxu1 %v3435_v9  ;;  %2159 = vmatprep.mubr.f32.mxu1 %v4000_v30  ;;  %v3471_v9 = vpack.c.bf16 %v2208_v32, %v2206_v42  ;;  %v2229_v15 = vld [vmem:[%s5855_s16 + $0x1d8] sm:$0xff]  ;;  %v3491_v16 = vpack.c.bf16 %v2228_v1, %v2226_v59  ;;  %v1889_v41 = vld [vmem:[%s5854_s15 + $0x8] sm:$0xf]  ;;  %v2230_v10 = vld [vmem:[%s5855_s16 + $0x1e0] sm:$0xff] }
 0x703   :  { %3438 = vmatprep.subr.bf16.mxu1 %v3437_v38  ;;  %v3473_v38 = vpack.c.bf16 %v2213_v49, %v2211_v7  ;;  %v2336_v27 = vld [vmem:[%s5857_s18 + $0x68] sm:$0xff]  ;;  %v2338_v60 = vld [vmem:[%s5857_s18 + $0x78] sm:$0xff]  ;;  %v2335_v20 = vld [vmem:[%s5857_s18 + $0x60] sm:$0xff] }
 0x704   :  { %v2337_v45 = vld [vmem:[%s5857_s18 + $0x70] sm:$0xff]  ;;  %v2234_v49 = vld [vmem:[#allocation17] sm:$0x3] }
 0x705   :  { %3095 = vmatmul.mubr.msk.f32.gmra.mrb[22].mxu1 %vm2075_vm15, %v1889_v41  ;;  %v5684_v46 = vpack.c.bf16 %v2337_v45, %v2335_v20  ;;  %v2339_v7 = vld [vmem:[#allocation19] sm:$0x3] }
 0x706   :  { %3440 = vmatpush1.bf16.msra.mxu1 %v3439_v8  ;;  %v3475_v8 = vpack.c.bf16 %v2212_v35, %v2210_v2 }
 0x707   :  { %3442 = vmatprep.subr.bf16.mxu1 %v3441_v63  ;;  %v3477_v63 = vpack.c.bf16 %v2217_v56, %v2215_v55 }
 0x70a   :  { %3444 = vmatpush1.bf16.msra.mxu1 %v3443_v17  ;;  %v3479_v17 = vpack.c.bf16 %v2216_v61, %v2214_v6 }
 0x70b   :  { %3446 = vmatprep.subr.bf16.mxu1 %v3445_v22  ;;  %v3481_v22 = vpack.c.bf16 %v2221_v58, %v2219_v57  ;;  %v5721_v57 = vrot.slane %v2339_v7, %v5450_v14 }
 0x70e   :  { %3448 = vmatpush1.bf16.msra.mxu1 %v3447_v5  ;;  %v3483_v5 = vpack.c.bf16 %v2220_v33, %v2218_v26 }
 0x70f   :  { %3450 = vmatprep.subr.bf16.mxu1 %v3449_v3  ;;  %v3485_v3 = vpack.c.bf16 %v2225_v18, %v2223_v54 }
 0x712   :  { %3452 = vmatpush1.bf16.msra.mxu1 %v3451_v12  ;;  %v3487_v12 = vpack.c.bf16 %v2224_v62, %v2222_v28 }
 0x713   :  { %3454 = vmatprep.subr.bf16.mxu1 %v3453_v44  ;;  %v3489_v44 = vpack.c.bf16 %v2229_v15, %v2227_v40 }
 0x716   :  { %3456 = vmatpush1.bf16.msra.mxu1 %v3455_v0  ;;  %v2231_v0 = vld [vmem:[%s5855_s16 + $0x1e8] sm:$0xff] }
 0x717   :  { %3458 = vmatprep.subr.bf16.mxu1 %v3457_v48  ;;  %v2233_v48 = vld [vmem:[%s5855_s16 + $0x1f8] sm:$0xff] }
 0x718   :  { %v3493_v36 = vpack.c.bf16 %v2233_v48, %v2231_v0 }
 0x71a   :  { %3460 = vmatpush1.bf16.msra.mxu1 %v3459_v23  ;;  %v5673_v23 = vpack.c.bf16 %v2338_v60, %v2336_v27 }
 0x71b   :  { %3462 = vmatprep.subr.bf16.mxu1 %v3461_v21  ;;  %v2232_v21 = vld [vmem:[%s5855_s16 + $0x1f0] sm:$0xff] }
 0x71c   :  { %v3495_v24 = vpack.c.bf16 %v2232_v21, %v2230_v10  ;;  %3510 = vmatprep.subr.bf16.mxu0 %v5673_v23 }
 0x71d   :  { %3512 = vmatpush1.bf16.msra.mxu0 %v5684_v46 }
 0x71e   :  { %3464 = vmatpush1.bf16.msra.mxu1 %v3463_v37  ;;  %3530 = vmatprep.subr.bf16.mxu0 %v5362_v53 }
 0x71f   :  { %3466 = vmatprep.subr.bf16.mxu1 %v3465_v13 }
 0x720   :  { %2419 = vmatmul.mubr.f32.vlgmr.msra.gmra.mrb[16].mxu0 %v4000_v30 }
 0x721   :  { %3532 = vmatpush1.bf16.msra.mxu0 %v5374_v11  ;;  %2615 = vmatprep.mubr.f32.mxu0 %v4000_v30 }
 0x722   :  { %3468 = vmatpush1.bf16.msra.mxu1 %v3467_v39  ;;  %3534 = vmatprep.subr.bf16.mxu0 %v5383_v19 }
 0x723   :  { %3470 = vmatprep.subr.bf16.mxu1 %v3469_v51 }
 0x725   :  { %3536 = vmatpush1.bf16.msra.mxu0 %v5393_v52 }
 0x726   :  { %3472 = vmatpush1.bf16.msra.mxu1 %v3471_v9  ;;  %3538 = vmatprep.subr.bf16.mxu0 %v5401_v4  ;;  %v5710_v9 = vrot.slane %v2339_v7, %v5448_v47 }
 0x727   :  { %3474 = vmatprep.subr.bf16.mxu1 %v3473_v38  ;;  %v5713_v38 = vrot.slane %v2234_v49, %v5448_v47  ;;  %v5724_v47 = vrot.slane %v2234_v49, %v5450_v14 }
 0x729   :  { %3540 = vmatpush1.bf16.msra.mxu0 %v5411_v25 }
 0x72a   :  { %3476 = vmatpush1.bf16.msra.mxu1 %v3475_v8  ;;  %3542 = vmatprep.subr.bf16.mxu0 %v5673_v23 }
 0x72b   :  { %3478 = vmatprep.subr.bf16.mxu1 %v3477_v63 }
 0x72d   :  { %3544 = vmatpush1.bf16.msra.mxu0 %v5684_v46 }
 0x72e   :  { %3480 = vmatpush1.bf16.msra.mxu1 %v3479_v17  ;;  %3562 = vmatprep.subr.bf16.mxu0 %v5362_v53 }
 0x72f   :  { %3482 = vmatprep.subr.bf16.mxu1 %v3481_v22 }
 0x732   :  { %3484 = vmatpush1.bf16.msra.mxu1 %v3483_v5 }
 0x733   :  { %3486 = vmatprep.subr.bf16.mxu1 %v3485_v3 }
 0x736   :  { %3488 = vmatpush1.bf16.msra.mxu1 %v3487_v12 }
 0x737   :  { %3490 = vmatprep.subr.bf16.mxu1 %v3489_v44 }
 0x73a   :  { %3492 = vmatpush1.bf16.msra.mxu1 %v3491_v16 }
 0x73b   :  { %3494 = vmatprep.subr.bf16.mxu1 %v3493_v36 }
 0x73e   :  { %3496 = vmatpush1.bf16.msra.mxu1 %v3495_v24 }
 0x73f   :  { %3514 = vmatprep.subr.bf16.mxu1 %v5362_v53 }
 0x7d4   :  { %v2155_v37 = vpop.f32.mrb[20].mxu1 }
 0x7d5   :  { %v2157_v13 = vpop.f32.mrb[21].mxu1  ;;  %v2166_v31 = vmax.f32 %v2155_v37, 0.0 }
 0x7d6   :  { %v2167_v29 = vmax.f32 %v2157_v13, 0.0 }
 0x7d8   :  { %2310 = vmatprep.mubr.f32.mxu1 %v2167_v29  ;;  %v2161_v43 = vpop.f32.mrb[22].mxu1 }
 0x7d9   :  { %2311 = vmatmul.mubr.f32.vlgmr.msra.gmra.mrb[24].mxu1 %v2166_v31  ;;  %v2168_v34 = vmax.f32 %v2161_v43, 0.0  ;;  %v2163_v39 = vpop.f32.mrb[23].mxu1 }
 0x7da   :  { %3516 = vmatpush1.bf16.msra.mxu1 %v5374_v11  ;;  %v2169_v51 = vmax.f32 %v2163_v39, 0.0 }
 0x7db   :  { %3518 = vmatprep.subr.bf16.mxu1 %v5383_v19 }
 0x7dc   :  { %2316 = vmatprep.mubr.f32.mxu1 %v2169_v51 }
 0x7dd   :  { %2317 = vmatmul.mubr.f32.gmra.mrb[26].mxu1 %v2168_v34 }
 0x7de   :  { %3520 = vmatpush1.bf16.msra.mxu1 %v5393_v52  ;;  %2512 = vmatprep.mubr.f32.mxu1 %v4000_v30 }
 0x7df   :  { %3522 = vmatprep.subr.bf16.mxu1 %v5401_v4 }
 0x7e2   :  { %3524 = vmatpush1.bf16.msra.mxu1 %v5411_v25 }
 0x7e3   :  { %3526 = vmatprep.subr.bf16.mxu1 %v5673_v23 }
 0x7e6   :  { %3528 = vmatpush1.bf16.msra.mxu1 %v5684_v46 }
 0x7e7   :  { %3546 = vmatprep.subr.bf16.mxu1 %v5362_v53 }
 0x7f3   :  { %v2420_v42 = vpop.f32.mrb[16].mxu0 }
 0x7f4   :  { %v2422_v32 = vpop.f32.mrb[17].mxu0  ;;  %v2421_v2 = vadd.f32 %v2420_v42, %v5710_v9 }
 0x7f5   :  { %v2423_v58 = vadd.f32 %v2422_v32, %v5721_v57 }
 0x8ac   :  { %v2312_v35 = vpop.f32.mrb[24].mxu1 }
 0x8ad   :  { %v5717_v55 = vadd.f32 %v2312_v35, %v5713_v38  ;;  %v2314_v56 = vpop.f32.mrb[25].mxu1 }
 0x8ae   :  { %v5728_v22 = vadd.f32 %v2314_v56, %v5724_v47 }
 0x8af   :  { %v2425_v8 = vadd.f32 %v2421_v2, %v5717_v55 }
 0x8b0   :  { %v5732_v18 = vpop.f32.mrb[26].mxu1 }
 0x8b1   :  { %v3096_v63 = vmul.f32 -1.442695, %v2425_v8  ;;  %v5734_v5 = vpop.f32.mrb[27].mxu1 }
 0x8b3   :  { %3644 = vpow2.f32 %v3096_v63 }
 0x8bd   :  { %v3645_v6 = vpop.eup %3644 }
 0x8be   :  { %v2429_v61 = vadd.f32 1.0, %v3645_v6 }
 0x8c0   :  { %3646 = vrcp.f32 %v2429_v61 }
 0x8ca   :  { %v3647_v17 = vpop.eup %3646 }
 0x8cb   :  { %v2432_v26 = vmul.f32 %v3647_v17, %v2423_v58  ;;  %v2435_v3 = vsub.f32 1.0, %v3647_v17  ;;  %v2441_v28 = vmul.f32 0.0, %v3647_v17 }
 0x8cd   :  { %v2433_v33 = vadd.f32 %v2432_v26, %v5728_v22 }
 0x8cf   :  { %3648 = vtanh.f32 %v2433_v33 }
 0x8d9   :  { %v3649_v54 = vpop.eup %3648 }
 0x8da   :  { %2437 = vrot.lane.b32.xlu0 %v3649_v54, %s3999_s3 }
 0x94c   :  { %v2438_v14 = vpop.permute.xlu0 %2437 }
 0x94d   :  { %v2440_v62 = vmul.f32 %v2438_v14, %v2435_v3 }
 0x94f   :  { %v2442_v40 = vadd.f32 %v2441_v28, %v2440_v62 }
 0x951   :  { %2444 = vrot.lane.b32.xlu1 %v2442_v40, %s3999_s3  ;;  %v2541_v27 = vrot.slane %v2442_v40, 6 }
 0x9c3   :  { %v2445_v15 = vpop.permute.xlu1 %2444 }
 0x9c4   :  { %3097 = vmatmul.mubr.msk.f32.vlgmr.msra.gmra.mrb[28].mxu1 %vm658_vm2, %v2445_v15 }
 0x9c5   :  { %3548 = vmatpush1.bf16.msra.mxu1 %v5374_v11  ;;  %2718 = vmatprep.mubr.f32.mxu1 %v4000_v30 }
 0x9c6   :  { %3550 = vmatprep.subr.bf16.mxu1 %v5383_v19 }
 0x9c9   :  { %3552 = vmatpush1.bf16.msra.mxu1 %v5393_v52 }
 0x9ca   :  { %3554 = vmatprep.subr.bf16.mxu1 %v5401_v4 }
 0x9cd   :  { %3556 = vmatpush1.bf16.msra.mxu1 %v5411_v25 }
 0x9ce   :  { %3558 = vmatprep.subr.bf16.mxu1 %v5673_v23 }
 0x9d1   :  { %3560 = vmatpush1.bf16.msra.mxu1 %v5684_v46 }
 0x9d2   :  { %3578 = vmatprep.subr.bf16.mxu1 %v5362_v53 }
 0xa97   :  { %v2514_v12 = vpop.f32.mrb[28].mxu1 }
 0xa98   :  { %v2515_v44 = vadd.f32 %v2514_v12, %v5710_v9  ;;  %v2516_v59 = vpop.f32.mrb[29].mxu1 }
 0xa99   :  { %v2517_v36 = vadd.f32 %v2516_v59, %v5721_v57 }
 0xa9a   :  { %v2520_v1 = vrot.slane %v2515_v44, 6 }
 0xa9b   :  { %v2530_v60 = vrot.slane %v2517_v36, 6 }
 0xa9c   :  { %v2522_v16 = vadd.f32 %v2520_v1, %v5717_v55 }
 0xa9e   :  { %v3098_v41 = vmul.f32 -1.442695, %v2522_v16 }
 0xaa0   :  { %3650 = vpow2.f32 %v3098_v41 }
 0xaaa   :  { %v3651_v0 = vpop.eup %3650 }
 0xaab   :  { %v2526_v48 = vadd.f32 1.0, %v3651_v0 }
 0xaad   :  { %3652 = vrcp.f32 %v2526_v48 }
 0xab7   :  { %v3653_v10 = vpop.eup %3652 }
 0xab8   :  { %v2532_v21 = vmul.f32 %v3653_v10, %v2530_v60  ;;  %v2543_v20 = vmul.f32 %v3653_v10, %v2541_v27  ;;  %v2535_v24 = vsub.f32 1.0, %v3653_v10 }
 0xaba   :  { %v2533_v53 = vadd.f32 %v2532_v21, %v5728_v22  ;;  %v2319_v21 = vadd.f32 %v5732_v18, %v5713_v38 }
 0xabc   :  { %3654 = vtanh.f32 %v2533_v53 }
 0xac6   :  { %v3655_v45 = vpop.eup %3654 }
 0xac7   :  { %2537 = vrot.lane.b32.xlu0 %v3655_v45, %s3999_s3 }
 0xb39   :  { %v2538_v37 = vpop.permute.xlu0 %2537 }
 0xb3a   :  { %v2540_v13 = vmul.f32 %v2538_v37, %v2535_v24 }
 0xb3c   :  { %v2544_v29 = vadd.f32 %v2543_v20, %v2540_v13 }
 0xb3e   :  { %v2546_v31 = vrot.slane %v2544_v29, 2  ;;  %v2644_v56 = vrot.slane %v2544_v29, 6 }
 0xb40   :  { %2547 = vrot.lane.b32.xlu1 %v2546_v31, %s3999_s3  ;;  %v2321_v31 = vadd.f32 %v5734_v5, %v5724_v47 }
 0xbb2   :  { %v2548_v43 = vpop.permute.xlu1 %2547 }
 0xbb3   :  { %3099 = vmatmul.mubr.msk.f32.vlgmr.msra.gmra.mrb[18].mxu0 %vm658_vm2, %v2548_v43 }
 0xbb4   :  { %3564 = vmatpush1.bf16.msra.mxu0 %v5374_v11  ;;  %2821 = vmatprep.mubr.f32.mxu0 %v4000_v30 }
 0xbb5   :  { %3566 = vmatprep.subr.bf16.mxu0 %v5383_v19 }
 0xbb8   :  { %3568 = vmatpush1.bf16.msra.mxu0 %v5393_v52 }
 0xbb9   :  { %3570 = vmatprep.subr.bf16.mxu0 %v5401_v4 }
 0xbbc   :  { %3572 = vmatpush1.bf16.msra.mxu0 %v5411_v25 }
 0xbbd   :  { %3574 = vmatprep.subr.bf16.mxu0 %v5673_v23 }
 0xbc0   :  { %3576 = vmatpush1.bf16.msra.mxu0 %v5684_v46 }
 0xbc1   :  { %3593 = vmatprep.subr.bf16.mxu0 %v3998_v50 }
 0xc86   :  { %v2617_v34 = vpop.f32.mrb[18].mxu0 }
 0xc87   :  { %v2618_v39 = vadd.f32 %v2617_v34, %v5710_v9  ;;  %v2619_v51 = vpop.f32.mrb[19].mxu0 }
 0xc88   :  { %v2620_v35 = vadd.f32 %v2619_v51, %v5721_v57 }
 0xc89   :  { %v2623_v42 = vrot.slane %v2618_v39, 4 }
 0xc8a   :  { %v2633_v8 = vrot.slane %v2620_v35, 4 }
 0xc8b   :  { %v2625_v32 = vadd.f32 %v2623_v42, %v5717_v55 }
 0xc8d   :  { %v3100_v7 = vmul.f32 -1.442695, %v2625_v32 }
 0xc8f   :  { %3656 = vpow2.f32 %v3100_v7 }
 0xc99   :  { %v3657_v49 = vpop.eup %3656 }
 0xc9a   :  { %v2629_v2 = vadd.f32 1.0, %v3657_v49 }
 0xc9c   :  { %3658 = vrcp.f32 %v2629_v2 }
 0xca6   :  { %v3659_v63 = vpop.eup %3658 }
 0xca7   :  { %v2635_v6 = vmul.f32 %v3659_v63, %v2633_v8  ;;  %v2646_v61 = vmul.f32 %v3659_v63, %v2644_v56  ;;  %v2638_v26 = vsub.f32 1.0, %v3659_v63 }
 0xca9   :  { %v2636_v58 = vadd.f32 %v2635_v6, %v5728_v22 }
 0xcab   :  { %3660 = vtanh.f32 %v2636_v58 }
 0xcb5   :  { %v3661_v17 = vpop.eup %3660 }
 0xcb6   :  { %2640 = vrot.lane.b32.xlu0 %v3661_v17, %s3999_s3 }
 0xd28   :  { %v2641_v33 = vpop.permute.xlu0 %2640 }
 0xd29   :  { %v2643_v54 = vmul.f32 %v2641_v33, %v2638_v26 }
 0xd2b   :  { %v2647_v3 = vadd.f32 %v2646_v61, %v2643_v54 }
 0xd2d   :  { %v2649_v14 = vrot.slane %v2647_v3, 4 }
 0xd2f   :  { %2650 = vrot.lane.b32.xlu1 %v2649_v14, %s3999_s3  ;;  %v2951_v14 = vld [vmem:[%s5859_s20 + $0x10] sm:$0xff] }
 0xda1   :  { %v2651_v28 = vpop.permute.xlu1 %2650 }
 0xda2   :  { %3101 = vmatmul.mubr.msk.f32.vlgmr.msra.gmra.mrb[30].mxu1 %vm658_vm2, %v2651_v28  ;;  %v2952_v28 = vld [vmem:[%s5859_s20 + $0x18] sm:$0xff] }
 0xda3   :  { %3580 = vmatpush1.bf16.msra.mxu1 %v5374_v11  ;;  %2916 = vmatprep.mubr.f32.mxu1 %v4000_v30 }
 0xda4   :  { %3582 = vmatprep.subr.bf16.mxu1 %v5383_v19 }
 0xda7   :  { %3584 = vmatpush1.bf16.msra.mxu1 %v5393_v52 }
 0xda8   :  { %3586 = vmatprep.subr.bf16.mxu1 %v5401_v4  ;;  %v2747_v4 = vrot.slane %v2647_v3, 6  ;;  %v2950_v3 = vld [vmem:[%s5859_s20 + $0x8] sm:$0xff] }
 0xdab   :  { %3588 = vmatpush1.bf16.msra.mxu1 %v5411_v25 }
 0xdac   :  { %3590 = vmatprep.subr.bf16.mxu1 %v5673_v23 }
 0xdaf   :  { %3592 = vmatpush1.bf16.msra.mxu1 %v5684_v46 }
 0xe75   :  { %v2720_v62 = vpop.f32.mrb[30].mxu1 }
 0xe76   :  { %v2721_v40 = vadd.f32 %v2720_v62, %v5710_v9  ;;  %v2722_v15 = vpop.f32.mrb[31].mxu1  ;;  %v3597_v62 = vpack.c.bf16 %v2952_v28, %v2951_v14 }
 0xe77   :  { %v2723_v52 = vadd.f32 %v2722_v15, %v5721_v57  ;;  %v2954_v15 = vld [vmem:[%s5859_s20 + $0x28] sm:$0xff] }
 0xe78   :  { %v2726_v12 = vrot.slane %v2721_v40, 2  ;;  %v2953_v40 = vld [vmem:[%s5859_s20 + $0x20] sm:$0xff] }
 0xe79   :  { %v2736_v25 = vrot.slane %v2723_v52, 2 }
 0xe7a   :  { %v2728_v11 = vadd.f32 %v2726_v12, %v5717_v55 }
 0xe7c   :  { %v3102_v44 = vmul.f32 -1.442695, %v2728_v11  ;;  %v3600_v11 = vpack.c.bf16 %v2954_v15, %v2953_v40 }
 0xe7e   :  { %3662 = vpow2.f32 %v3102_v44  ;;  %v2956_v44 = vld [vmem:[%s5859_s20 + $0x38] sm:$0xff] }
 0xe88   :  { %v3663_v19 = vpop.eup %3662 }
 0xe89   :  { %v2732_v59 = vadd.f32 1.0, %v3663_v19 }
 0xe8b   :  { %3664 = vrcp.f32 %v2732_v59 }
 0xe95   :  { %v3665_v1 = vpop.eup %3664 }
 0xe96   :  { %v2738_v23 = vmul.f32 %v3665_v1, %v2736_v25  ;;  %v2749_v16 = vmul.f32 %v3665_v1, %v2747_v4  ;;  %v2741_v0 = vsub.f32 1.0, %v3665_v1 }
 0xe98   :  { %v2739_v46 = vadd.f32 %v2738_v23, %v5728_v22 }
 0xe9a   :  { %3666 = vtanh.f32 %v2739_v46 }
 0xea4   :  { %v3667_v41 = vpop.eup %3666 }
 0xea5   :  { %2743 = vrot.lane.b32.xlu0 %v3667_v41, %s3999_s3 }
 0xf17   :  { %v2744_v55 = vpop.permute.xlu0 %2743 }
 0xf18   :  { %v2746_v48 = vmul.f32 %v2744_v55, %v2741_v0 }
 0xf1a   :  { %v2750_v36 = vadd.f32 %v2749_v16, %v2746_v48  ;;  %v3107_v16 = vld [vmem:[#allocation20] ss:$0 sm:$0xff] }
 0xf1c   :  { %v2752_v27 = vrot.slane %v2750_v36, 6 }
 0xf1e   :  { %2753 = vrot.lane.b32.xlu1 %v2752_v27, %s3999_s3 }
 0xf90   :  { %v2754_v60 = vpop.permute.xlu1 %2753 }
 0xf91   :  { %3103 = vmatmul.mubr.msk.f32.vlgmr.msra.gmra.mrb[20].mxu0 %vm658_vm2, %v2754_v60 }
 0xf92   :  { %3236 = vmatprep.mubr.msk.f32.mxu0 %vm4001_vm0, %v4000_v30  ;;  %v2955_v30 = vld [vmem:[%s5859_s20 + $0x30] sm:$0xff] }
 0xf93   :  { %v3603_v19 = vpack.c.bf16 %v2956_v44, %v2955_v30 }
0x1064   :  { %v2823_v10 = vpop.f32.mrb[20].mxu0 }
0x1065   :  { %v2824_v22 = vadd.f32 %v2823_v10, %v5710_v9  ;;  %v2825_v20 = vpop.f32.mrb[21].mxu0 }
0x1066   :  { %v2826_v13 = vadd.f32 %v2825_v20, %v5721_v57 }
0x1067   :  { %v2828_v53 = vadd.f32 %v2824_v22, %v2319_v21 }
0x1069   :  { %v3104_v45 = vmul.f32 -1.442695, %v2828_v53 }
0x106b   :  { %3668 = vpow2.f32 %v3104_v45 }
0x1075   :  { %v3669_v24 = vpop.eup %3668 }
0x1076   :  { %v2832_v37 = vadd.f32 1.0, %v3669_v24 }
0x1078   :  { %3670 = vrcp.f32 %v2832_v37 }
0x1082   :  { %v3671_v29 = vpop.eup %3670 }
0x1083   :  { %v2835_v43 = vmul.f32 %v3671_v29, %v2826_v13  ;;  %v2838_v38 = vsub.f32 1.0, %v3671_v29  ;;  %v2845_v51 = vmul.f32 %v3671_v29, %v2752_v27 }
0x1085   :  { %v2836_v34 = vadd.f32 %v2835_v43, %v2321_v31 }
0x1087   :  { %3672 = vtanh.f32 %v2836_v34 }
0x1091   :  { %v3673_v39 = vpop.eup %3672 }
0x1092   :  { %2840 = vrot.lane.b32.xlu0 %v3673_v39, %s3999_s3 }
0x1104   :  { %v2841_v18 = vpop.permute.xlu0 %2840 }
0x1105   :  { %v2843_v42 = vmul.f32 %v2841_v18, %v2838_v38 }
0x1107   :  { %v2846_v32 = vadd.f32 %v2845_v51, %v2843_v42 }
0x1109   :  { %2848 = vrot.lane.b32.xlu1 %v2846_v32, %s3999_s3  ;;  %v2945_v61 = vrot.slane %v2846_v32, 6 }
0x117b   :  { %v2849_v7 = vpop.permute.xlu1 %2848 }
0x117c   :  { %3105 = vmatmul.mubr.msk.f32.vlgmr.msra.gmra.mrb[32].mxu1 %vm658_vm2, %v2849_v7 }
0x124f   :  { %v2918_v49 = vpop.f32.mrb[32].mxu1 }
0x1250   :  { %v2919_v2 = vadd.f32 %v2918_v49, %v5710_v9  ;;  %v2920_v47 = vpop.f32.mrb[33].mxu1  ;;  %v2949_v9 = vld [vmem:[%s5859_s20] sm:$0xff]  ;;  %s3944_s20 = scalar_lea.vmem %s3049_s1, 32 }
0x1251   :  { %v2921_v6 = vadd.f32 %v2920_v47, %v5721_v57  ;;  %v3594_v57 = vpack.c.bf16 %v2950_v3, %v2949_v9  ;;  %p3945_p12 = scmp.ne.s32.totalorder %s3049_s1, %s3944_s20  ;;  %p3950_p0 = scmp.lt.s32.totalorder %s3944_s20, %s3944_s20 }
0x1252   :  { %v2924_v5 = vrot.slane %v2919_v2, 6 }
0x1253   :  { %v2934_v58 = vrot.slane %v2921_v6, 6  ;;  %3595 = vmatpush3.bf16.msra.mxu0 %v3594_v57  ;;  %p3951_p1 = por %p3950_p0, %p3949_p13 }
0x1254   :  { %v2926_v35 = vadd.f32 %v2924_v5, %v2319_v21  ;;  %3596 = vmatprep.subr.bf16.mxu0 %v3998_v50 }
0x1255   :  { %p3952_p2 = pnand %p3951_p1, %p3945_p12 }
0x1256   :  { %v3106_v56 = vmul.f32 -1.442695, %v2926_v35 }
0x1257   :  { %3598 = vmatpush3.bf16.msra.mxu0 %v3597_v62 }
0x1258   :  { %3674 = vpow2.f32 %v3106_v56  ;;  %3599 = vmatprep.subr.bf16.mxu0 %v3998_v50 }
0x125b   :  { %3601 = vmatpush3.bf16.msra.mxu0 %v3600_v11 }
0x125c   :  { %3602 = vmatprep.subr.bf16.mxu0 %v3998_v50 }
0x125f   :  { %3604 = vmatpush3.bf16.msra.mxu0 %v3603_v19 }
0x1262   :  { %v3675_v8 = vpop.eup %3674 }
0x1263   :  { %v2930_v63 = vadd.f32 1.0, %v3675_v8 }
0x1265   :  { %3676 = vrcp.f32 %v2930_v63 }
0x126f   :  { %v3677_v17 = vpop.eup %3676 }
0x1270   :  { %v2936_v26 = vmul.f32 %v3677_v17, %v2934_v58  ;;  %v2947_v33 = vmul.f32 %v3677_v17, %v2945_v61  ;;  %v2939_v59 = vsub.f32 1.0, %v3677_v17 }
0x1272   :  { %v2937_v54 = vadd.f32 %v2936_v26, %v2321_v31 }
0x1274   :  { %3678 = vtanh.f32 %v2937_v54 }
0x127e   :  { %v3679_v12 = vpop.eup %3678 }
0x127f   :  { %2941 = vrot.lane.b32.xlu0 %v3679_v12, %s3999_s3 }
0x12f1   :  { %v2942_v52 = vpop.permute.xlu0 %2941 }
0x12f2   :  { %v2944_v4 = vmul.f32 %v2942_v52, %v2939_v59 }
0x12f4   :  { %v2948_v25 = vadd.f32 %v2947_v33, %v2944_v4 }
0x12f6   :  { %v2965_v1 = vrot.slane %v2948_v25, 2 }
0x12f8   :  { %2966 = vrot.lane.b32.xlu1 %v2965_v1, %s3999_s3 }
0x136a   :  { %v2967_v23 = vpop.permute.xlu1 %2966 }
0x136b   :  { %3237 = vmatmul.mubr.msk.f32.vlgmr.msra.gmra.mrb[22].mxu0 %vm658_vm2, %v2967_v23 }
0x143e   :  { %v3036_v46 = vpop.f32.mrb[22].mxu0 }
0x143f   :  { %v3037_v41 = vadd.f32 %v3107_v16, %v3036_v46  ;;  %v3238_v0 = vpop.f32.mrb[23].mxu0 }
0x1441   :  { %3041 = vst.msk [vmem:[#allocation22] sm:$0x3] %vm3040_vm1, %v3037_v41 }
0x1442   :  { %3955 = shalt.err (!%p3952_p2)
}
0x1443   :  { %s3956_s10 = scalar_lea.hbm %s5861_s22, 32 }
0x1444   :  { %p3957_p3 = scmp.ne.s32.totalorder %s5861_s22, %s3956_s10  ;;  %p3960_p4 = scmp.lt.u32.totalorder %s3956_s10, %s5861_s22 }
0x1446   :  { %p3962_p5 = pnand %p3960_p4, %p3957_p3 }
0x1448   :  { %3965 = shalt.err (!%p3962_p5)
}
0x1449   :  { %3051 = dma.vmem_to_hbm [thread:$0]  %s3049_s1, 32, %s5861_s22, [#allocation4]  }
0x144a   :  { %3980 = dma.done.wait [#allocation4], 32  }
0x144b   :  { %3981 = vsyncadd [#allocation4], 4294967264 }
0x144c   :  { %3055 = vsyncpa [#allocation3], 1 }
0x144d   :  { %3056 = vsyncpa [#allocation6], 1 }
0x144e   :  { %3057 = vsyncpa [#allocation9], 1 }
0x144f   :  { %3058 = vsyncpa [#allocation12], 1 }
0x1450   :  { %3059 = vsyncpa [#allocation15], 1 }
0x1451   :  { %3060 = vsyncpa [#allocation18], 1 }
0x1452   :  { %3061 = vsyncpa [#allocation21], 1 }
0x1453   :  { %3062 = vsyncpa [#allocation4], 1 }

</bundles_post_ra>
